<compile_context>
chip_gen: v7x
topology: tpu7x:2x2x1
jax: 0.10.0
libtpu: 0.0.40
codegen_flags: <defaults>
</compile_context>

<pallas_src>
import jax
import jax.numpy as jnp
from jax.experimental import pallas as pl
from jax.experimental.pallas import tpu as pltpu


def _round_up(a, m):
    return (a + m - 1) // m * m


def prepare_classifier_params(w_conv, b_conv, w_fc, b_fc,
                              compute_dtype=jnp.bfloat16):
    """One-time parameter prep (hoisted out of the per-call path).

    w_conv : (hidden, C, 3, 3)  PyTorch OIHW conv weight
    b_conv : (hidden,)
    w_fc   : (n_classes, hidden)
    b_fc   : (n_classes,)
    """
    hidden, c_in, kh, kw = w_conv.shape
    n_classes = w_fc.shape[0]
    ncls_pad = _round_up(n_classes, 128)          # lane-dense output slab

    # Per-tap GEMM weights, tap t = kh*K + kw -> (C, hidden), bf16 MXU operands.
    w_taps = jnp.transpose(w_conv, (2, 3, 1, 0)).reshape(kh * kw, c_in, hidden)
    w_taps = w_taps.astype(compute_dtype)
    b_conv2 = b_conv.reshape(1, hidden).astype(jnp.float32)

    w_fc_pad = jnp.zeros((hidden, ncls_pad), compute_dtype)
    w_fc_pad = w_fc_pad.at[:, :n_classes].set(w_fc.T.astype(compute_dtype))
    b_fc_pad = jnp.zeros((1, ncls_pad), jnp.float32)
    b_fc_pad = b_fc_pad.at[:, :n_classes].set(b_fc.astype(jnp.float32))

    return {"w_taps": w_taps, "b_conv": b_conv2,
            "w_fc": w_fc_pad, "b_fc": b_fc_pad}


def classifier_forward(x, params, *, n_classes, n_chunks=1):
    """x: (N, C, H, W) float32 -> logits (N, n_classes) float32."""
    N, C, H, W = x.shape
    K, PAD = 3, 1
    Hp, Wp = H + 2 * PAD, W + 2 * PAD
    HW = H * W

    w_taps = params["w_taps"]
    hidden = w_taps.shape[-1]
    ncls_pad = params["w_fc"].shape[-1]
    cdtype = w_taps.dtype

    if N % n_chunks != 0:
        raise ValueError(f"n_chunks={n_chunks} must divide batch N={N}")
    Nc = N // n_chunks

    # Row-form layout: each image occupies S rows (padded spatial extent,
    # rounded to a sublane multiple so the in-kernel (Nc*S,h)->(Nc,S,h) reshape
    # is a pure re-tiling), plus a zero tail per chunk so the 9 shifted tap
    # slices never read out of bounds.
    S = _round_up(Hp * Wp, 16)
    P = Nc * S                                    # conv-output rows per chunk
    tail = _round_up((K - 1) * Wp + (K - 1), 16)  # >= max row shift
    rows_pc = P + tail                            # input rows per chunk (block)

    # ---- per-call input prep (cheap: ~1.3x raw input bytes, no 9x im2col) ---
    xp = jnp.pad(jnp.transpose(x, (0, 2, 3, 1)),               # NCHW -> NHWC
                 ((0, 0), (PAD, PAD), (PAD, PAD), (0, 0)))
    x_rows = xp.reshape(N, Hp * Wp, C)
    x_rows = jnp.pad(x_rows, ((0, 0), (0, S - Hp * Wp), (0, 0)))   # (N, S, C)
    x_rows = x_rows.reshape(n_chunks, Nc * S, C)
    x_rows = jnp.pad(x_rows, ((0, 0), (0, tail), (0, 0)))          # zero tail
    x_rows = x_rows.reshape(n_chunks * rows_pc, C).astype(cdtype)

    # Pooling mask (shared by all chunks): 1/HW at valid conv-output rows,
    # 0 at padded / out-of-image rows (average-pool scale folded in).
    q = jnp.arange(P, dtype=jnp.int32) % S
    hq, wq = q // Wp, q % Wp
    mask = jnp.where((hq < H) & (wq < W), 1.0 / HW, 0.0)
    mask = mask.astype(jnp.float32).reshape(P, 1)

    def kernel(x_ref, w_ref, bc_ref, mask_ref, wfc_ref, bfc_ref, out_ref):
        # 3x3 conv as 9 row-shifted GEMMs accumulated in f32 (in-kernel im2col).
        acc = None
        for kh in range(K):
            for kw in range(K):
                shift = kh * Wp + kw
                lhs = x_ref[pl.ds(shift, P), :]                  # (P, C) bf16
                part = jnp.dot(lhs, w_ref[kh * K + kw],
                               preferred_element_type=jnp.float32)
                acc = part if acc is None else acc + part        # (P, hidden) f32
        act = jnp.maximum(acc + bc_ref[...], 0.0)                # bias + ReLU
        # Global average pool: mask invalid rows (1/HW folded into the mask),
        # then a per-image sublane sum -- no pooling matmul.
        feat = jnp.sum((act * mask_ref[...]).reshape(Nc, S, hidden), axis=1)
        logits = jnp.dot(feat.astype(wfc_ref.dtype), wfc_ref[...],
                         preferred_element_type=jnp.float32) + bfc_ref[...]
        out_ref[...] = logits.astype(out_ref.dtype).reshape(1, Nc, ncls_pad)

    flops = (2 * n_chunks * P * C * hidden * K * K           # conv GEMMs
             + 3 * n_chunks * P * hidden                     # bias+relu+mask (VPU)
             + 2 * N * hidden * ncls_pad)                    # FC GEMM
    bytes_accessed = (x_rows.size * x_rows.dtype.itemsize
                      + mask.size * 4
                      + sum(int(v.size) * v.dtype.itemsize for v in params.values())
                      + N * ncls_pad * 4)

    grid_spec = pltpu.PrefetchScalarGridSpec(
        num_scalar_prefetch=0,
        grid=(n_chunks,),
        in_specs=[
            pl.BlockSpec((rows_pc, C), lambda c: (c, 0)),
            pl.BlockSpec((K * K, C, hidden), lambda c: (0, 0, 0)),
            pl.BlockSpec((1, hidden), lambda c: (0, 0)),
            pl.BlockSpec((P, 1), lambda c: (0, 0)),
            pl.BlockSpec((hidden, ncls_pad), lambda c: (0, 0)),
            pl.BlockSpec((1, ncls_pad), lambda c: (0, 0)),
        ],
        out_specs=pl.BlockSpec((1, Nc, ncls_pad), lambda c: (c, 0, 0)),
    )

    out_pad = pl.pallas_call(
        kernel,
        out_shape=jax.ShapeDtypeStruct((n_chunks, Nc, ncls_pad), jnp.float32),
        grid_spec=grid_spec,
        compiler_params=pltpu.CompilerParams(
            dimension_semantics=("parallel",),
            vmem_limit_bytes=32 * 1024 * 1024),
        cost_estimate=pl.CostEstimate(flops=int(flops), transcendentals=0,
                                      bytes_accessed=int(bytes_accessed)),
    )(x_rows, params["w_taps"], params["b_conv"], mask,
      params["w_fc"], params["b_fc"])

    return out_pad.reshape(N, ncls_pad)[:, :n_classes]


def _reference_forward(x, w_conv, b_conv, w_fc, b_fc):
    """Pure-JAX f32 reference (PyTorch-equivalent semantics)."""
    conv = jax.lax.conv_general_dilated(
        x, w_conv, window_strides=(1, 1), padding="SAME",
        dimension_numbers=("NCHW", "OIHW", "NCHW"))
    conv = conv + b_conv[None, :, None, None]
    act = jnp.maximum(conv, 0.0)
    feat = jnp.mean(act, axis=(2, 3))                           # (N, hidden)
    return feat @ w_fc.T + b_fc[None, :]


if __name__ == "__main__":
    # Small shapes consistent with the forward: batch=2, channels=4, 16x16.
    N, C, H, W = 2, 4, 16, 16
    hidden = 32          # encoder.out_dim
    n_classes = 10       # classifier_args['n_classes']

    key = jax.random.PRNGKey(0)
    k_x, k_wc, k_bc, k_wf, k_bf = jax.random.split(key, 5)

    x = jax.random.normal(k_x, (N, C, H, W), dtype=jnp.float32)
    w_conv = 0.1 * jax.random.normal(k_wc, (hidden, C, 3, 3), dtype=jnp.float32)
    b_conv = 0.1 * jax.random.normal(k_bc, (hidden,), dtype=jnp.float32)
    w_fc = 0.1 * jax.random.normal(k_wf, (n_classes, hidden), dtype=jnp.float32)
    b_fc = 0.1 * jax.random.normal(k_bf, (n_classes,), dtype=jnp.float32)

    # One-time parameter prep, hoisted out of the per-call path.
    params = prepare_classifier_params(w_conv, b_conv, w_fc, b_fc)

    fwd = jax.jit(classifier_forward, static_argnames=("n_classes", "n_chunks"))
    # n_chunks=1 for single-TensorCore chips (v5e/v6e); use 2 on v7x.
    out = fwd(x, params, n_classes=n_classes, n_chunks=1)
    out = jax.block_until_ready(out)

    ref = _reference_forward(x, w_conv, b_conv, w_fc, b_fc)
    assert out.shape == (N, n_classes)
    # bf16 MXU operands with f32 accumulation -> loose-ish tolerance vs f32 ref.
    assert jnp.allclose(out, ref, atol=3e-2, rtol=3e-2), "mismatch vs reference"

    print("KERNEL_OK")
</pallas_src>

<mosaic_0001>
module attributes {stable_mosaic.version = 11 : i64} {
  func.func @kernel(%arg0: i32, %arg1: memref<720x4xbf16, #tpu.memory_space<vmem>>, %arg2: memref<9x4x32xbf16, #tpu.memory_space<vmem>>, %arg3: memref<1x32xf32, #tpu.memory_space<vmem>>, %arg4: memref<672x1xf32, #tpu.memory_space<vmem>>, %arg5: memref<32x128xbf16, #tpu.memory_space<vmem>>, %arg6: memref<1x128xf32, #tpu.memory_space<vmem>>, %arg7: memref<1x2x128xf32, #tpu.memory_space<vmem>>) attributes {dimension_semantics = [#tpu.dimension_semantics<parallel>], iteration_bounds = array<i64: 1>, scalar_prefetch = 0 : i64, scratch_operands = 0 : i64, tpu.core_type = #tpu.core_type<tc>, window_params = [{transform_indices = @transform_0, window_bounds = array<i64: 720, 4>}, {pipeline_mode = #tpu.pipeline_mode<synchronous>, transform_indices = @transform_1, window_bounds = array<i64: 9, 4, 32>}, {pipeline_mode = #tpu.pipeline_mode<synchronous>, transform_indices = @transform_2, window_bounds = array<i64: 1, 32>}, {pipeline_mode = #tpu.pipeline_mode<synchronous>, transform_indices = @transform_3, window_bounds = array<i64: 672, 1>}, {pipeline_mode = #tpu.pipeline_mode<synchronous>, transform_indices = @transform_4, window_bounds = array<i64: 32, 128>}, {pipeline_mode = #tpu.pipeline_mode<synchronous>, transform_indices = @transform_5, window_bounds = array<i64: 1, 128>}, {transform_indices = @transform_6, window_bounds = array<i64: 1, 2, 128>}]} {
    %c0 = arith.constant 0 : index
    %c0_0 = arith.constant 0 : index
    %0 = vector.load %arg1[%c0, %c0_0] : memref<720x4xbf16, #tpu.memory_space<vmem>>, vector<672x4xbf16>
    %c0_1 = arith.constant 0 : index
    %c0_2 = arith.constant 0 : index
    %c0_3 = arith.constant 0 : index
    %1 = vector.load %arg2[%c0_1, %c0_2, %c0_3] : memref<9x4x32xbf16, #tpu.memory_space<vmem>>, vector<1x4x32xbf16>
    %2 = vector.shape_cast %1 : vector<1x4x32xbf16> to vector<4x32xbf16>
    %cst = arith.constant dense<0.000000e+00> : vector<672x32xf32>
    %3 = tpu.matmul %0, %2, %cst {dimension_numbers = #tpu.dot_dimension_numbers<[1], [0], [0], [1], [0, 0, 1, 1], [], []>} : vector<672x4xbf16>, vector<4x32xbf16>, vector<672x32xf32> -> vector<672x32xf32>
    %c1 = arith.constant 1 : index
    %c0_4 = arith.constant 0 : index
    %4 = vector.load %arg1[%c1, %c0_4] : memref<720x4xbf16, #tpu.memory_space<vmem>>, vector<672x4xbf16>
    %c1_5 = arith.constant 1 : index
    %c0_6 = arith.constant 0 : index
    %c0_7 = arith.constant 0 : index
    %5 = vector.load %arg2[%c1_5, %c0_6, %c0_7] : memref<9x4x32xbf16, #tpu.memory_space<vmem>>, vector<1x4x32xbf16>
    %6 = vector.shape_cast %5 : vector<1x4x32xbf16> to vector<4x32xbf16>
    %cst_8 = arith.constant dense<0.000000e+00> : vector<672x32xf32>
    %7 = tpu.matmul %4, %6, %cst_8 {dimension_numbers = #tpu.dot_dimension_numbers<[1], [0], [0], [1], [0, 0, 1, 1], [], []>} : vector<672x4xbf16>, vector<4x32xbf16>, vector<672x32xf32> -> vector<672x32xf32>
    %8 = arith.addf %3, %7 : vector<672x32xf32>
    %c2 = arith.constant 2 : index
    %c0_9 = arith.constant 0 : index
    %9 = vector.load %arg1[%c2, %c0_9] : memref<720x4xbf16, #tpu.memory_space<vmem>>, vector<672x4xbf16>
    %c2_10 = arith.constant 2 : index
    %c0_11 = arith.constant 0 : index
    %c0_12 = arith.constant 0 : index
    %10 = vector.load %arg2[%c2_10, %c0_11, %c0_12] : memref<9x4x32xbf16, #tpu.memory_space<vmem>>, vector<1x4x32xbf16>
    %11 = vector.shape_cast %10 : vector<1x4x32xbf16> to vector<4x32xbf16>
    %cst_13 = arith.constant dense<0.000000e+00> : vector<672x32xf32>
    %12 = tpu.matmul %9, %11, %cst_13 {dimension_numbers = #tpu.dot_dimension_numbers<[1], [0], [0], [1], [0, 0, 1, 1], [], []>} : vector<672x4xbf16>, vector<4x32xbf16>, vector<672x32xf32> -> vector<672x32xf32>
    %13 = arith.addf %8, %12 : vector<672x32xf32>
    %c18 = arith.constant 18 : index
    %c0_14 = arith.constant 0 : index
    %14 = vector.load %arg1[%c18, %c0_14] : memref<720x4xbf16, #tpu.memory_space<vmem>>, vector<672x4xbf16>
    %c3 = arith.constant 3 : index
    %c0_15 = arith.constant 0 : index
    %c0_16 = arith.constant 0 : index
    %15 = vector.load %arg2[%c3, %c0_15, %c0_16] : memref<9x4x32xbf16, #tpu.memory_space<vmem>>, vector<1x4x32xbf16>
    %16 = vector.shape_cast %15 : vector<1x4x32xbf16> to vector<4x32xbf16>
    %cst_17 = arith.constant dense<0.000000e+00> : vector<672x32xf32>
    %17 = tpu.matmul %14, %16, %cst_17 {dimension_numbers = #tpu.dot_dimension_numbers<[1], [0], [0], [1], [0, 0, 1, 1], [], []>} : vector<672x4xbf16>, vector<4x32xbf16>, vector<672x32xf32> -> vector<672x32xf32>
    %18 = arith.addf %13, %17 : vector<672x32xf32>
    %c19 = arith.constant 19 : index
    %c0_18 = arith.constant 0 : index
    %19 = vector.load %arg1[%c19, %c0_18] : memref<720x4xbf16, #tpu.memory_space<vmem>>, vector<672x4xbf16>
    %c4 = arith.constant 4 : index
    %c0_19 = arith.constant 0 : index
    %c0_20 = arith.constant 0 : index
    %20 = vector.load %arg2[%c4, %c0_19, %c0_20] : memref<9x4x32xbf16, #tpu.memory_space<vmem>>, vector<1x4x32xbf16>
    %21 = vector.shape_cast %20 : vector<1x4x32xbf16> to vector<4x32xbf16>
    %cst_21 = arith.constant dense<0.000000e+00> : vector<672x32xf32>
    %22 = tpu.matmul %19, %21, %cst_21 {dimension_numbers = #tpu.dot_dimension_numbers<[1], [0], [0], [1], [0, 0, 1, 1], [], []>} : vector<672x4xbf16>, vector<4x32xbf16>, vector<672x32xf32> -> vector<672x32xf32>
    %23 = arith.addf %18, %22 : vector<672x32xf32>
    %c20 = arith.constant 20 : index
    %c0_22 = arith.constant 0 : index
    %24 = vector.load %arg1[%c20, %c0_22] : memref<720x4xbf16, #tpu.memory_space<vmem>>, vector<672x4xbf16>
    %c5 = arith.constant 5 : index
    %c0_23 = arith.constant 0 : index
    %c0_24 = arith.constant 0 : index
    %25 = vector.load %arg2[%c5, %c0_23, %c0_24] : memref<9x4x32xbf16, #tpu.memory_space<vmem>>, vector<1x4x32xbf16>
    %26 = vector.shape_cast %25 : vector<1x4x32xbf16> to vector<4x32xbf16>
    %cst_25 = arith.constant dense<0.000000e+00> : vector<672x32xf32>
    %27 = tpu.matmul %24, %26, %cst_25 {dimension_numbers = #tpu.dot_dimension_numbers<[1], [0], [0], [1], [0, 0, 1, 1], [], []>} : vector<672x4xbf16>, vector<4x32xbf16>, vector<672x32xf32> -> vector<672x32xf32>
    %28 = arith.addf %23, %27 : vector<672x32xf32>
    %c36 = arith.constant 36 : index
    %c0_26 = arith.constant 0 : index
    %29 = vector.load %arg1[%c36, %c0_26] : memref<720x4xbf16, #tpu.memory_space<vmem>>, vector<672x4xbf16>
    %c6 = arith.constant 6 : index
    %c0_27 = arith.constant 0 : index
    %c0_28 = arith.constant 0 : index
    %30 = vector.load %arg2[%c6, %c0_27, %c0_28] : memref<9x4x32xbf16, #tpu.memory_space<vmem>>, vector<1x4x32xbf16>
    %31 = vector.shape_cast %30 : vector<1x4x32xbf16> to vector<4x32xbf16>
    %cst_29 = arith.constant dense<0.000000e+00> : vector<672x32xf32>
    %32 = tpu.matmul %29, %31, %cst_29 {dimension_numbers = #tpu.dot_dimension_numbers<[1], [0], [0], [1], [0, 0, 1, 1], [], []>} : vector<672x4xbf16>, vector<4x32xbf16>, vector<672x32xf32> -> vector<672x32xf32>
    %33 = arith.addf %28, %32 : vector<672x32xf32>
    %c37 = arith.constant 37 : index
    %c0_30 = arith.constant 0 : index
    %34 = vector.load %arg1[%c37, %c0_30] : memref<720x4xbf16, #tpu.memory_space<vmem>>, vector<672x4xbf16>
    %c7 = arith.constant 7 : index
    %c0_31 = arith.constant 0 : index
    %c0_32 = arith.constant 0 : index
    %35 = vector.load %arg2[%c7, %c0_31, %c0_32] : memref<9x4x32xbf16, #tpu.memory_space<vmem>>, vector<1x4x32xbf16>
    %36 = vector.shape_cast %35 : vector<1x4x32xbf16> to vector<4x32xbf16>
    %cst_33 = arith.constant dense<0.000000e+00> : vector<672x32xf32>
    %37 = tpu.matmul %34, %36, %cst_33 {dimension_numbers = #tpu.dot_dimension_numbers<[1], [0], [0], [1], [0, 0, 1, 1], [], []>} : vector<672x4xbf16>, vector<4x32xbf16>, vector<672x32xf32> -> vector<672x32xf32>
    %38 = arith.addf %33, %37 : vector<672x32xf32>
    %c38 = arith.constant 38 : index
    %c0_34 = arith.constant 0 : index
    %39 = vector.load %arg1[%c38, %c0_34] : memref<720x4xbf16, #tpu.memory_space<vmem>>, vector<672x4xbf16>
    %c8 = arith.constant 8 : index
    %c0_35 = arith.constant 0 : index
    %c0_36 = arith.constant 0 : index
    %40 = vector.load %arg2[%c8, %c0_35, %c0_36] : memref<9x4x32xbf16, #tpu.memory_space<vmem>>, vector<1x4x32xbf16>
    %41 = vector.shape_cast %40 : vector<1x4x32xbf16> to vector<4x32xbf16>
    %cst_37 = arith.constant dense<0.000000e+00> : vector<672x32xf32>
    %42 = tpu.matmul %39, %41, %cst_37 {dimension_numbers = #tpu.dot_dimension_numbers<[1], [0], [0], [1], [0, 0, 1, 1], [], []>} : vector<672x4xbf16>, vector<4x32xbf16>, vector<672x32xf32> -> vector<672x32xf32>
    %43 = arith.addf %38, %42 : vector<672x32xf32>
    %c0_38 = arith.constant 0 : index
    %c0_39 = arith.constant 0 : index
    %44 = vector.load %arg3[%c0_38, %c0_39] : memref<1x32xf32, #tpu.memory_space<vmem>>, vector<1x32xf32>
    %45 = vector.broadcast %44 : vector<1x32xf32> to vector<672x32xf32>
    %46 = arith.addf %43, %45 : vector<672x32xf32>
    %cst_40 = arith.constant 0.000000e+00 : f32
    %47 = vector.broadcast %cst_40 : f32 to vector<672x32xf32>
    %48 = arith.maximumf %46, %47 : vector<672x32xf32>
    %c0_41 = arith.constant 0 : index
    %c0_42 = arith.constant 0 : index
    %49 = vector.load %arg4[%c0_41, %c0_42] : memref<672x1xf32, #tpu.memory_space<vmem>>, vector<672x1xf32>
    %50 = vector.broadcast %49 : vector<672x1xf32> to vector<672x32xf32>
    %51 = arith.mulf %48, %50 : vector<672x32xf32>
    %52 = vector.shape_cast %51 : vector<672x32xf32> to vector<2x336x32xf32>
    %cst_43 = arith.constant dense<0.000000e+00> : vector<2x32xf32>
    %53 = vector.multi_reduction <add>, %52, %cst_43 [1] : vector<2x336x32xf32> to vector<2x32xf32>
    %54 = arith.truncf %53 : vector<2x32xf32> to vector<2x32xbf16>
    %c0_44 = arith.constant 0 : index
    %c0_45 = arith.constant 0 : index
    %55 = vector.load %arg5[%c0_44, %c0_45] : memref<32x128xbf16, #tpu.memory_space<vmem>>, vector<32x128xbf16>
    %cst_46 = arith.constant dense<0.000000e+00> : vector<2x128xf32>
    %56 = tpu.matmul %54, %55, %cst_46 {dimension_numbers = #tpu.dot_dimension_numbers<[1], [0], [0], [1], [0, 0, 1, 1], [], []>} : vector<2x32xbf16>, vector<32x128xbf16>, vector<2x128xf32> -> vector<2x128xf32>
    %c0_47 = arith.constant 0 : index
    %c0_48 = arith.constant 0 : index
    %57 = vector.load %arg6[%c0_47, %c0_48] : memref<1x128xf32, #tpu.memory_space<vmem>>, vector<1x128xf32>
    %58 = vector.broadcast %57 : vector<1x128xf32> to vector<2x128xf32>
    %59 = arith.addf %56, %58 : vector<2x128xf32>
    %60 = vector.shape_cast %59 : vector<2x128xf32> to vector<1x2x128xf32>
    %c0_49 = arith.constant 0 : index
    %c0_50 = arith.constant 0 : index
    %c0_51 = arith.constant 0 : index
    %61 = vector.load %arg7[%c0_49, %c0_50, %c0_51] : memref<1x2x128xf32, #tpu.memory_space<vmem>>, vector<1x2x128xf32>
    tpu.vector_store %arg7[%c0_49, %c0_50, %c0_51], %60 {strides = array<i32>} : memref<1x2x128xf32, #tpu.memory_space<vmem>>, vector<1x2x128xf32>,
    return
  }
  func.func @transform_0(%arg0: i32) -> (i32, i32) {
    %c0_i32 = arith.constant 0 : i32
    %c0_i32_0 = arith.constant 0 : i32
    return %arg0, %c0_i32 : i32, i32
  }
  func.func @transform_1(%arg0: i32) -> (i32, i32, i32) {
    %c0_i32 = arith.constant 0 : i32
    %c0_i32_0 = arith.constant 0 : i32
    %c0_i32_1 = arith.constant 0 : i32
    %c0_i32_2 = arith.constant 0 : i32
    return %c0_i32, %c0_i32_0, %c0_i32_1 : i32, i32, i32
  }
  func.func @transform_2(%arg0: i32) -> (i32, i32) {
    %c0_i32 = arith.constant 0 : i32
    %c0_i32_0 = arith.constant 0 : i32
    %c0_i32_1 = arith.constant 0 : i32
    return %c0_i32, %c0_i32_0 : i32, i32
  }
  func.func @transform_3(%arg0: i32) -> (i32, i32) {
    %c0_i32 = arith.constant 0 : i32
    %c0_i32_0 = arith.constant 0 : i32
    %c0_i32_1 = arith.constant 0 : i32
    return %c0_i32, %c0_i32_0 : i32, i32
  }
  func.func @transform_4(%arg0: i32) -> (i32, i32) {
    %c0_i32 = arith.constant 0 : i32
    %c0_i32_0 = arith.constant 0 : i32
    %c0_i32_1 = arith.constant 0 : i32
    return %c0_i32, %c0_i32_0 : i32, i32
  }
  func.func @transform_5(%arg0: i32) -> (i32, i32) {
    %c0_i32 = arith.constant 0 : i32
    %c0_i32_0 = arith.constant 0 : i32
    %c0_i32_1 = arith.constant 0 : i32
    return %c0_i32, %c0_i32_0 : i32, i32
  }
  func.func @transform_6(%arg0: i32) -> (i32, i32, i32) {
    %c0_i32 = arith.constant 0 : i32
    %c0_i32_0 = arith.constant 0 : i32
    %c0_i32_1 = arith.constant 0 : i32
    return %arg0, %c0_i32, %c0_i32_0 : i32, i32, i32
  }
}

</mosaic_0001>

<bundles_post_ra>
// kernel: classifier_forward.1
= control target key start
LH: loop header
LB: loop body
LE: loop exit
PB: predicated region body
PF: predicated region fallthrough
CT: control target
= control target key end

     0   :  { %vm794_vm0 = vcmask 1041408   ;;  %vm326_vm1 = vsmask.f32 7424  ;;  %vm667_vm2 = vcmask 31744   ;;  %vm3270_vm3 = vsmask.f32 6400  ;;  %s14295_s0 = inlined_call_operand.vmem [shape: bf16[720,4], index: 0, kind: input, shape index: {}]   ;;  %s14296_s1 = inlined_call_operand.vmem [shape: bf16[9,4,32], index: 1, kind: input, shape index: {}]   ;;  %s14297_s2 = inlined_call_operand.vmem [shape: f32[1,32], index: 2, kind: input, shape index: {}]   ;;  %s14298_s3 = inlined_call_operand.vmem [shape: f32[672,1], index: 3, kind: input, shape index: {}]   ;;  %s14299_s4 = inlined_call_operand.vmem [shape: bf16[32,128], index: 4, kind: input, shape index: {}]   ;;  %s14300_s5 = inlined_call_operand.vmem [shape: f32[1,128], index: 5, kind: input, shape index: {}]   ;;  %s14301_s6 = inlined_call_operand.hbm [shape: f32[1,2,128], index: 6, kind: output, shape index: {}]  }
   0x1   :  { %v8819_v0 = vld [vmem:[%s14296_s1 + $0x8] sm:$0x3]  ;;  %v8561_v1 = vld [vmem:[%s14296_s1 + $0x2] sm:$0x3]  ;;  %v26_v6 = vld [vmem:[%s14295_s0 + $0x4] sm:$0xf] }
   0x2   :  { %v10949_v2 = vld [vmem:[%s14295_s0 + $0x8] sm:$0xff]   ;;  %10936 = vmatprep.subr.msk.bf16.mxu0 %vm794_vm0, %v8819_v0  ;;  %10932 = vmatprep.subr.msk.bf16.mxu1 %vm794_vm0, %v8561_v1  ;;  %v11288_v3 = vsel %vm794_vm0, %v8819_v0, 0  ;;  %v796_v4 = vsel %vm794_vm0, %v8561_v1, 0  ;;  %v25_v5 = vld [vmem:[%s14295_s0] sm:$0xf]  ;;  %v11306_v11 = vld [vmem:[%s14295_s0 + $0x10] sm:$0xff]  }
   0x3   :  { %9821 = vmatpush3.bf16.msra.mxu0 %v11288_v3  ;;  %9477 = vmatpush3.bf16.msra.mxu1 %v796_v4  ;;  %v11298_v7 = vcombine.low %v25_v5, %v26_v6  ;;  %v335_v8 = vshll.u32 %v10949_v2, 16  ;;  %v339_v9 = vshrl.u32 %v10949_v2, 16  ;;  %v2297_v10 = vld [vmem:[%s14295_s0 + $0x8] sm:$0xe]  ;;  %v11313_v14 = vld [vmem:[%s14295_s0 + $0xc] sm:$0xf] }
   0x4   :  { %v11316_v16 = vcombine.low %v2297_v10, %v11313_v14  ;;  %v3280_v17 = vshrl.u32 %v11306_v11, 16  ;;  %v3283_v19 = vshll.u32 %v11306_v11, 16  ;;  %v8863_v20 = vld [vmem:[%s14296_s1 + $0xa] sm:$0x3]  ;;  %v10952_v24 = vld [vmem:[%s14295_s0 + $0x10] sm:$0xff]   ;;  %v11332_v28 = vld [vmem:[%s14295_s0 + $0x18] sm:$0xff]  }
   0x5   :  { %v328_v12 = vshrl.u32 %v11298_v7, 16  ;;  %v330_v13 = vshll.u32 %v11298_v7, 16  ;;  %v337_v15 = vrot.slane %v335_v8, 1  ;;  %10938 = vmatprep.subr.msk.bf16.mxu0 %vm794_vm0, %v8863_v20  ;;  %v343_v31 = vshll.u32 %v10952_v24, 16  ;;  %v10954_v37 = vld [vmem:[%s14295_s0 + $0x18] sm:$0xff]   ;;  %v11344_v38 = vld [vmem:[%s14295_s0 + $0x20] sm:$0xff]  }
   0x6   :  { %v3272_v21 = vshrl.u32 %v11316_v16, 16  ;;  %v3275_v22 = vshll.u32 %v11316_v16, 16  ;;  %v3282_v23 = vrot.slane %v3280_v17, 1  ;;  %v3285_v27 = vrot.slane %v3283_v19, 2  ;;  %v109_v42 = vld [vmem:[%s14296_s1] sm:$0x3] }
   0x7   :  { %v332_v18 = vrot.slane %v330_v13, 1  ;;  %v341_v26 = vor.u32 %v339_v9, %v337_v15  ;;  %v4458_v32 = vsel %vm794_vm0, %v8863_v20, 0  ;;  %v3289_v35 = vshrl.u32 %v11332_v28, 16  ;;  %10933 = vmatprep.subr.msk.bf16.mxu1 %vm794_vm0, %v109_v42  ;;  %v10956_v51 = vld [vmem:[%s14295_s0 + $0x20] sm:$0xff]   ;;  %v11363_v56 = vld [vmem:[%s14295_s0 + $0x28] sm:$0xff]   ;;  %v11375_v1 = vld [vmem:[%s14295_s0 + $0x30] sm:$0xff]  }
   0x8   :  { %v3274_v29 = vrot.slane %v3272_v21, 1  ;;  %v3277_v30 = vrot.slane %v3275_v22, 2  ;;  %v3286_v34 = vor.u32 %v3285_v27, %v3282_v23  ;;  %v3292_v36 = vshll.u32 %v11332_v28, 16  ;;  %v10958_v60 = vld [vmem:[%s14295_s0 + $0x28] sm:$0xff]   ;;  %v10960_v8 = vld [vmem:[%s14295_s0 + $0x30] sm:$0xff]   ;;  %v11390_v20 = vld [vmem:[%s14295_s0 + $0x38] sm:$0xff]  }
   0x9   :  { %v333_v25 = vor.u32 %v332_v18, %v328_v12  ;;  %v345_v40 = vrot.slane %v343_v31, 1  ;;  %v347_v41 = vshrl.u32 %v10952_v24, 16  ;;  %v3291_v43 = vrot.slane %v3289_v35, 1  ;;  %v11403_v35 = vld [vmem:[%s14295_s0 + $0x40] sm:$0xff]  }
   0xa   :  { %v3278_v39 = vor.u32 %v3277_v30, %v3274_v29  ;;  %v3294_v44 = vrot.slane %v3292_v36, 2  ;;  %v351_v45 = vshll.u32 %v10954_v37, 16  ;;  %v3298_v46 = vshrl.u32 %v11344_v38, 16  ;;  %v10962_v30 = vld [vmem:[%s14295_s0 + $0x38] sm:$0xff]  }
   0xb   :  { %v338_v33 = vsel %vm326_vm1, %v333_v25, %v337_v15  ;;  %v346_v48 = vsel %vm326_vm1, %v341_v26, %v345_v40  ;;  %v349_v49 = vor.u32 %v347_v41, %v345_v40  ;;  %v3301_v50 = vshll.u32 %v11344_v38, 16  ;;  %v10964_v41 = vld [vmem:[%s14295_s0 + $0x40] sm:$0xff]  }
   0xc   :  { %9478 = vmatprep.mubr.msk.bf16.mxu1 %vm667_vm2, %v338_v33  ;;  %v3287_v47 = vsel %vm3270_vm3, %v3278_v39, %v3286_v34  ;;  %v3295_v52 = vor.u32 %v3294_v44, %v3291_v43  ;;  %v353_v53 = vrot.slane %v351_v45, 1  ;;  %v3300_v54 = vrot.slane %v3298_v46, 1  ;;  %v11416_v46 = vld [vmem:[%s14295_s0 + $0x48] sm:$0xff]  }
   0xd   :  { %9822 = vmatprep.mubr.msk.bf16.mxu0 %vm667_vm2, %v3287_v47  ;;  %9479 = vmatmul.mubr.msk.bf16.vlgmr.msra.gmra.mrb[0].mxu1 %vm667_vm2, %v346_v48  ;;  %v355_v55 = vshrl.u32 %v10954_v37, 16  ;;  %v3303_v57 = vrot.slane %v3301_v50, 2  ;;  %v359_v58 = vshll.u32 %v10956_v51, 16  ;;  %v1252_v59 = vsel %vm794_vm0, %v109_v42, 0  ;;  %v10966_v50 = vld [vmem:[%s14295_s0 + $0x48] sm:$0xff]  }
   0xe   :  { %v3296_v61 = vsel %vm3270_vm3, %v3286_v34, %v3295_v52  ;;  %v354_v62 = vsel %vm326_vm1, %v349_v49, %v353_v53  ;;  %9563 = vmatpush3.bf16.msra.mxu1 %v1252_v59  ;;  %v3307_v0 = vshrl.u32 %v11363_v56, 16  ;;  %v3310_v5 = vshll.u32 %v11363_v56, 16 }
   0xf   :  { %v357_v63 = vor.u32 %v355_v55, %v353_v53  ;;  %9823 = vmatmul.mubr.msk.bf16.vlgmr.msra.gmra.mrb[0].mxu0 %vm667_vm2, %v3296_v61  ;;  %9482 = vmatprep.mubr.msk.bf16.mxu1 %vm667_vm2, %v354_v62  ;;  %v3304_v2 = vor.u32 %v3303_v57, %v3300_v54  ;;  %v361_v4 = vrot.slane %v359_v58, 1  ;;  %v363_v6 = vshrl.u32 %v10956_v51, 16  ;;  %v11430_v62 = vld [vmem:[%s14295_s0 + $0x50] sm:$0xff]  }
  0x10   :  { %9907 = vmatpush3.bf16.msra.mxu0 %v4458_v32  ;;  %v3309_v9 = vrot.slane %v3307_v0, 1  ;;  %v367_v10 = vshll.u32 %v10958_v60, 16  ;;  %v3316_v12 = vshrl.u32 %v11375_v1, 16  ;;  %v3319_v13 = vshll.u32 %v11375_v1, 16 }
  0x11   :  { %v3305_v15 = vsel %vm3270_vm3, %v3295_v52, %v3304_v2  ;;  %v362_v17 = vsel %vm326_vm1, %v357_v63, %v361_v4  ;;  %v3312_v18 = vrot.slane %v3310_v5, 2  ;;  %v365_v19 = vor.u32 %v363_v6, %v361_v4 }
  0x12   :  { %9826 = vmatprep.mubr.msk.bf16.mxu0 %vm667_vm2, %v3305_v15  ;;  %v369_v21 = vrot.slane %v367_v10, 1  ;;  %v3318_v22 = vrot.slane %v3316_v12, 1  ;;  %v3321_v23 = vrot.slane %v3319_v13, 2  ;;  %v371_v24 = vshrl.u32 %v10958_v60, 16  ;;  %v10968_v13 = vld [vmem:[%s14295_s0 + $0x50] sm:$0xff]   ;;  %v11444_v15 = vld [vmem:[%s14295_s0 + $0x58] sm:$0xff]  }
  0x13   :  { %v3313_v25 = vor.u32 %v3312_v18, %v3309_v9  ;;  %v375_v26 = vshll.u32 %v10960_v8, 16  ;;  %v3325_v27 = vshrl.u32 %v11390_v20, 16  ;;  %v3328_v29 = vshll.u32 %v11390_v20, 16 }
  0x14   :  { %v370_v31 = vsel %vm326_vm1, %v365_v19, %v369_v21  ;;  %v3322_v32 = vor.u32 %v3321_v23, %v3318_v22  ;;  %v373_v33 = vor.u32 %v371_v24, %v369_v21  ;;  %v379_v34 = vshrl.u32 %v10960_v8, 16  ;;  %v10970_v21 = vld [vmem:[%s14295_s0 + $0x58] sm:$0xff]  }
  0x15   :  { %9483 = vmatmul.mubr.msk.bf16.gmra.mrb[4].mxu1 %vm667_vm2, %v362_v17  ;;  %v3314_v36 = vsel %vm3270_vm3, %v3304_v2, %v3313_v25  ;;  %v377_v37 = vrot.slane %v375_v26, 1  ;;  %v3327_v39 = vrot.slane %v3325_v27, 1  ;;  %v3330_v40 = vrot.slane %v3328_v29, 2  ;;  %v11456_v26 = vld [vmem:[%s14295_s0 + $0x60] sm:$0xff]  }
  0x16   :  { %9486 = vmatprep.mubr.msk.bf16.mxu1 %vm667_vm2, %v370_v31  ;;  %v3323_v42 = vsel %vm3270_vm3, %v3313_v25, %v3322_v32  ;;  %v383_v43 = vshll.u32 %v10962_v30, 16  ;;  %v3334_v44 = vshrl.u32 %v11403_v35, 16  ;;  %v3337_v45 = vshll.u32 %v11403_v35, 16 }
  0x17   :  { %9827 = vmatmul.mubr.msk.bf16.gmra.mrb[4].mxu0 %vm667_vm2, %v3314_v36  ;;  %v3331_v47 = vor.u32 %v3330_v40, %v3327_v39  ;;  %v381_v48 = vor.u32 %v379_v34, %v377_v37  ;;  %v387_v49 = vshrl.u32 %v10962_v30, 16  ;;  %v391_v54 = vshll.u32 %v10964_v41, 16 }
  0x18   :  { %9830 = vmatprep.mubr.msk.bf16.mxu0 %vm667_vm2, %v3323_v42  ;;  %v385_v51 = vrot.slane %v383_v43, 1  ;;  %v3336_v52 = vrot.slane %v3334_v44, 1  ;;  %v3339_v53 = vrot.slane %v3337_v45, 2  ;;  %v378_v55 = vsel %vm326_vm1, %v373_v33, %v377_v37  ;;  %v10972_v37 = vld [vmem:[%s14295_s0 + $0x60] sm:$0xff]   ;;  %v11470_v43 = vld [vmem:[%s14295_s0 + $0x68] sm:$0xff]  }
  0x19   :  { %v3343_v57 = vshrl.u32 %v11416_v46, 16  ;;  %v3346_v58 = vshll.u32 %v11416_v46, 16  ;;  %v393_v61 = vrot.slane %v391_v54, 1  ;;  %v395_v2 = vshrl.u32 %v10964_v41, 16 }
  0x1a   :  { %v386_v59 = vsel %vm326_vm1, %v381_v48, %v385_v51  ;;  %v3340_v60 = vor.u32 %v3339_v53, %v3336_v52  ;;  %v399_v4 = vshll.u32 %v10966_v50, 16  ;;  %v3332_v5 = vsel %vm3270_vm3, %v3322_v32, %v3331_v47  ;;  %v10974_v52 = vld [vmem:[%s14295_s0 + $0x68] sm:$0xff]  }
  0x1b   :  { %v3345_v63 = vrot.slane %v3343_v57, 1  ;;  %v3348_v0 = vrot.slane %v3346_v58, 2  ;;  %v3352_v6 = vshrl.u32 %v11430_v62, 16  ;;  %v3355_v8 = vshll.u32 %v11430_v62, 16 }
  0x1c   :  { %v3341_v9 = vsel %vm3270_vm3, %v3331_v47, %v3340_v60  ;;  %v389_v10 = vor.u32 %v387_v49, %v385_v51  ;;  %v401_v12 = vrot.slane %v399_v4, 1  ;;  %v397_v17 = vor.u32 %v395_v2, %v393_v61  ;;  %v11477_v49 = vld [vmem:[%s14295_s0 + $0x70] sm:$0xff]  }
  0x1d   :  { %9487 = vmatmul.mubr.msk.bf16.gmra.mrb[8].mxu1 %vm667_vm2, %v378_v55  ;;  %v3354_v18 = vrot.slane %v3352_v6, 1  ;;  %v3357_v19 = vrot.slane %v3355_v8, 2  ;;  %v3349_v22 = vor.u32 %v3348_v0, %v3345_v63  ;;  %v407_v23 = vshll.u32 %v10968_v13, 16 }
  0x1e   :  { %9490 = vmatprep.mubr.msk.bf16.mxu1 %vm667_vm2, %v386_v59  ;;  %v3361_v24 = vshrl.u32 %v11444_v15, 16  ;;  %v3364_v25 = vshll.u32 %v11444_v15, 16  ;;  %v394_v27 = vsel %vm326_vm1, %v389_v10, %v393_v61  ;;  %v403_v30 = vshrl.u32 %v10966_v50, 16 }
  0x1f   :  { %9831 = vmatmul.mubr.msk.bf16.gmra.mrb[8].mxu0 %vm667_vm2, %v3332_v5  ;;  %v3358_v29 = vor.u32 %v3357_v19, %v3354_v18  ;;  %v402_v31 = vsel %vm326_vm1, %v397_v17, %v401_v12  ;;  %v411_v32 = vshrl.u32 %v10968_v13, 16  ;;  %v415_v33 = vshll.u32 %v10970_v21, 16  ;;  %v10976_v5 = vld [vmem:[%s14295_s0 + $0x70] sm:$0xff]  }
  0x20   :  { %9834 = vmatprep.mubr.msk.bf16.mxu0 %vm667_vm2, %v3341_v9  ;;  %v3370_v34 = vshrl.u32 %v11456_v26, 16  ;;  %v3373_v36 = vshll.u32 %v11456_v26, 16  ;;  %v3350_v39 = vsel %vm3270_vm3, %v3340_v60, %v3349_v22  ;;  %v409_v40 = vrot.slane %v407_v23, 1 }
  0x21   :  { %v3363_v41 = vrot.slane %v3361_v24, 1  ;;  %v3366_v42 = vrot.slane %v3364_v25, 2  ;;  %v3359_v44 = vsel %vm3270_vm3, %v3349_v22, %v3358_v29  ;;  %v405_v45 = vor.u32 %v403_v30, %v401_v12  ;;  %v11498_v12 = vld [vmem:[%s14295_s0 + $0x78] sm:$0xff]  }
  0x22   :  { %v3372_v47 = vrot.slane %v3370_v34, 1  ;;  %v3375_v48 = vrot.slane %v3373_v36, 2  ;;  %v413_v50 = vor.u32 %v411_v32, %v409_v40  ;;  %v417_v51 = vrot.slane %v415_v33, 1  ;;  %v10978_v24 = vld [vmem:[%s14295_s0 + $0x78] sm:$0xff]  }
  0x23   :  { %v419_v53 = vshrl.u32 %v10970_v21, 16  ;;  %v423_v54 = vshll.u32 %v10972_v37, 16  ;;  %v3367_v55 = vor.u32 %v3366_v42, %v3363_v41  ;;  %v3379_v57 = vshrl.u32 %v11470_v43, 16  ;;  %v11505_v21 = vld [vmem:[%s14295_s0 + $0x80] sm:$0xff]  }
  0x24   :  { %v3382_v58 = vshll.u32 %v11470_v43, 16  ;;  %v410_v59 = vsel %vm326_vm1, %v405_v45, %v409_v40  ;;  %v3376_v60 = vor.u32 %v3375_v48, %v3372_v47  ;;  %v3388_v61 = vshrl.u32 %v11477_v49, 16  ;;  %v10980_v42 = vld [vmem:[%s14295_s0 + $0x80] sm:$0xff]  }
  0x25   :  { %9491 = vmatmul.mubr.msk.bf16.gmra.mrb[12].mxu1 %vm667_vm2, %v394_v27  ;;  %v3391_v63 = vshll.u32 %v11477_v49, 16  ;;  %v418_v0 = vsel %vm326_vm1, %v413_v50, %v417_v51  ;;  %v427_v2 = vshrl.u32 %v10972_v37, 16  ;;  %v431_v4 = vshll.u32 %v10974_v52, 16 }
  0x26   :  { %9494 = vmatprep.mubr.msk.bf16.mxu1 %vm667_vm2, %v402_v31  ;;  %v3368_v6 = vsel %vm3270_vm3, %v3358_v29, %v3367_v55  ;;  %v425_v8 = vrot.slane %v423_v54, 1  ;;  %v3381_v9 = vrot.slane %v3379_v57, 1  ;;  %v3384_v10 = vrot.slane %v3382_v58, 2  ;;  %v11533_v54 = vld [vmem:[%s14295_s0 + $0x90] sm:$0xff]   ;;  %v10982_v58 = vld [vmem:[%s14295_s0 + $0x88] sm:$0xff]  }
  0x27   :  { %9835 = vmatmul.mubr.msk.bf16.gmra.mrb[12].mxu0 %vm667_vm2, %v3350_v39  ;;  %v3377_v13 = vsel %vm3270_vm3, %v3367_v55, %v3376_v60  ;;  %v421_v17 = vor.u32 %v419_v53, %v417_v51  ;;  %v3390_v18 = vrot.slane %v3388_v61, 1  ;;  %v3393_v19 = vrot.slane %v3391_v63, 2 }
  0x28   :  { %9838 = vmatprep.mubr.msk.bf16.mxu0 %vm667_vm2, %v3359_v44  ;;  %v429_v22 = vor.u32 %v427_v2, %v425_v8  ;;  %v433_v23 = vrot.slane %v431_v4, 1  ;;  %v439_v25 = vshll.u32 %v10976_v5, 16  ;;  %v3385_v27 = vor.u32 %v3384_v10, %v3381_v9  ;;  %v11524_v44 = vld [vmem:[%s14295_s0 + $0x88] sm:$0xff]  }
  0x29   :  { %v435_v29 = vshrl.u32 %v10974_v52, 16  ;;  %v3397_v30 = vshrl.u32 %v11498_v12, 16  ;;  %v3400_v31 = vshll.u32 %v11498_v12, 16  ;;  %v426_v32 = vsel %vm326_vm1, %v421_v17, %v425_v8 }
  0x2a   :  { %v3394_v33 = vor.u32 %v3393_v19, %v3390_v18  ;;  %v3406_v34 = vshrl.u32 %v11505_v21, 16  ;;  %v3409_v36 = vshll.u32 %v11505_v21, 16  ;;  %v434_v37 = vsel %vm326_vm1, %v429_v22, %v433_v23  ;;  %v11552_v19 = vld [vmem:[%s14295_s0 + $0x98] sm:$0xff]  }
  0x2b   :  { %v443_v39 = vshrl.u32 %v10976_v5, 16  ;;  %v447_v40 = vshll.u32 %v10978_v24, 16  ;;  %v441_v41 = vrot.slane %v439_v25, 1  ;;  %v3386_v45 = vsel %vm3270_vm3, %v3376_v60, %v3385_v27 }
  0x2c   :  { %v3399_v47 = vrot.slane %v3397_v30, 1  ;;  %v3402_v48 = vrot.slane %v3400_v31, 2  ;;  %v3395_v50 = vsel %vm3270_vm3, %v3385_v27, %v3394_v33  ;;  %v437_v51 = vor.u32 %v435_v29, %v433_v23 }
  0x2d   :  { %9495 = vmatmul.mubr.msk.bf16.gmra.mrb[16].mxu1 %vm667_vm2, %v410_v59  ;;  %v3408_v52 = vrot.slane %v3406_v34, 1  ;;  %v3411_v53 = vrot.slane %v3409_v36, 2  ;;  %v445_v55 = vor.u32 %v443_v39, %v441_v41  ;;  %v449_v57 = vrot.slane %v447_v40, 1 }
  0x2e   :  { %9498 = vmatprep.mubr.msk.bf16.mxu1 %vm667_vm2, %v418_v0  ;;  %v455_v59 = vshll.u32 %v10980_v42, 16  ;;  %v3415_v60 = vshrl.u32 %v11524_v44, 16  ;;  %v3403_v61 = vor.u32 %v3402_v48, %v3399_v47  ;;  %v451_v63 = vshrl.u32 %v10978_v24, 16  ;;  %v11559_v24 = vld [vmem:[%s14295_s0 + $0xa0] sm:$0xff]  }
  0x2f   :  { %9839 = vmatmul.mubr.msk.bf16.gmra.mrb[16].mxu0 %vm667_vm2, %v3368_v6  ;;  %v3418_v0 = vshll.u32 %v11524_v44, 16  ;;  %v442_v2 = vsel %vm326_vm1, %v437_v51, %v441_v41  ;;  %v3412_v4 = vor.u32 %v3411_v53, %v3408_v52  ;;  %v3424_v5 = vshrl.u32 %v11533_v54, 16  ;;  %v11577_v52 = vld [vmem:[%s14296_s1 + $0xc] sm:$0x3] }
  0x30   :  { %9842 = vmatprep.mubr.msk.bf16.mxu0 %vm667_vm2, %v3377_v13  ;;  %v3427_v6 = vshll.u32 %v11533_v54, 16  ;;  %v450_v8 = vsel %vm326_vm1, %v445_v55, %v449_v57  ;;  %v459_v9 = vshrl.u32 %v10980_v42, 16  ;;  %v463_v10 = vshll.u32 %v10982_v58, 16  ;;  %v10984_v13 = vld [vmem:[%s14295_s0 + $0x90] sm:$0xff]   ;;  %10939 = vmatprep.subr.msk.bf16.mxu0 %vm794_vm0, %v11577_v52 }
  0x31   :  { %v457_v17 = vrot.slane %v455_v59, 1  ;;  %v3417_v18 = vrot.slane %v3415_v60, 1  ;;  %v3404_v22 = vsel %vm3270_vm3, %v3394_v33, %v3403_v61  ;;  %v3420_v23 = vrot.slane %v3418_v0, 2  ;;  %v10986_v33 = vld [vmem:[%s14295_s0 + $0x98] sm:$0xff]  }
  0x32   :  { %v3413_v25 = vsel %vm3270_vm3, %v3403_v61, %v3412_v4  ;;  %v453_v27 = vor.u32 %v451_v63, %v449_v57  ;;  %v3426_v29 = vrot.slane %v3424_v5, 1  ;;  %v3429_v30 = vrot.slane %v3427_v6, 2  ;;  %v11589_v63 = vld [vmem:[%s14295_s0 + $0xa8] sm:$0xff]   ;;  %v11596_v5 = vld [vmem:[%s14295_s0 + $0xb0] sm:$0xff]  }
  0x33   :  { %v461_v31 = vor.u32 %v459_v9, %v457_v17  ;;  %v471_v34 = vshll.u32 %v10984_v13, 16  ;;  %v3433_v36 = vshrl.u32 %v11552_v19, 16  ;;  %v3421_v39 = vor.u32 %v3420_v23, %v3417_v18 }
  0x34   :  { %v467_v40 = vshrl.u32 %v10982_v58, 16  ;;  %v3442_v41 = vshrl.u32 %v11559_v24, 16  ;;  %v458_v42 = vsel %vm326_vm1, %v453_v27, %v457_v17  ;;  %v3445_v47 = vshll.u32 %v11559_v24, 16  ;;  %v10988_v58 = vld [vmem:[%s14295_s0 + $0xa0] sm:$0xff]  }
  0x35   :  { %9499 = vmatmul.mubr.msk.bf16.gmra.mrb[20].mxu1 %vm667_vm2, %v426_v32  ;;  %v465_v32 = vrot.slane %v463_v10, 1  ;;  %v479_v51 = vshll.u32 %v10986_v33, 16  ;;  %v473_v53 = vrot.slane %v471_v34, 1  ;;  %v3435_v55 = vrot.slane %v3433_v36, 1 }
  0x36   :  { %9502 = vmatprep.mubr.msk.bf16.mxu1 %vm667_vm2, %v434_v37  ;;  %v3436_v37 = vshll.u32 %v11552_v19, 16  ;;  %v3422_v59 = vsel %vm3270_vm3, %v3412_v4, %v3421_v39  ;;  %v3444_v61 = vrot.slane %v3442_v41, 1  ;;  %v10990_v4 = vld [vmem:[%s14295_s0 + $0xa8] sm:$0xff]   ;;  %v487_v9 = vshll.u32 %v10988_v58, 16 }
  0x37   :  { %9843 = vmatmul.mubr.msk.bf16.gmra.mrb[20].mxu0 %vm667_vm2, %v3386_v45  ;;  %v3430_v45 = vor.u32 %v3429_v30, %v3426_v29  ;;  %v466_v48 = vsel %vm326_vm1, %v461_v31, %v465_v32  ;;  %v469_v60 = vor.u32 %v467_v40, %v465_v32  ;;  %v3451_v17 = vshrl.u32 %v11589_v63, 16  ;;  %v10992_v32 = vld [vmem:[%s14295_s0 + $0xb0] sm:$0xff]  }
  0x38   :  { %9846 = vmatprep.mubr.msk.bf16.mxu0 %vm667_vm2, %v3395_v50  ;;  %v475_v50 = vshrl.u32 %v10984_v13, 16  ;;  %v3438_v57 = vrot.slane %v3436_v37, 2  ;;  %v3454_v18 = vshll.u32 %v11589_v63, 16  ;;  %v483_v23 = vshrl.u32 %v10986_v33, 16  ;;  %v11617_v33 = vld [vmem:[%s14295_s0 + $0xb8] sm:$0xff]  }
  0x39   :  { %v3431_v0 = vsel %vm3270_vm3, %v3421_v39, %v3430_v45  ;;  %v474_v10 = vsel %vm326_vm1, %v469_v60, %v473_v53  ;;  %v3463_v27 = vshll.u32 %v11596_v5, 16  ;;  %v491_v30 = vshrl.u32 %v10988_v58, 16 }
  0x3a   :  { %v477_v6 = vor.u32 %v475_v50, %v473_v53  ;;  %v3439_v13 = vor.u32 %v3438_v57, %v3435_v55  ;;  %v495_v31 = vshll.u32 %v10990_v4, 16  ;;  %v489_v36 = vrot.slane %v487_v9, 1 }
  0x3b   :  { %v3453_v37 = vrot.slane %v3451_v17, 1  ;;  %v3456_v39 = vrot.slane %v3454_v18, 2  ;;  %v3469_v55 = vshrl.u32 %v11617_v33, 16  ;;  %v3472_v57 = vshll.u32 %v11617_v33, 16 }
  0x3c   :  { %v3440_v34 = vsel %vm3270_vm3, %v3430_v45, %v3439_v13  ;;  %v497_v50 = vrot.slane %v495_v31, 1  ;;  %v11624_v45 = vld [vmem:[%s14295_s0 + $0xb8] sm:$0xff]   ;;  %v499_v60 = vshrl.u32 %v10990_v4, 16  ;;  %v11641_v4 = vld [vmem:[%s14295_s0 + $0xc0] sm:$0xff]   ;;  %vm4245_vm4 = vcmask 1045504  }
  0x3d   :  { %9503 = vmatmul.mubr.msk.bf16.gmra.mrb[24].mxu1 %vm667_vm2, %v442_v2  ;;  %v3447_v2 = vrot.slane %v3445_v47, 2  ;;  %v3465_v47 = vrot.slane %v3463_v27, 2  ;;  %v3457_v53 = vor.u32 %v3456_v39, %v3453_v37  ;;  %v523_v37 = vshrl.u32 %v11641_v4, 16 }
  0x3e   :  { %9506 = vmatprep.mubr.msk.bf16.mxu1 %vm667_vm2, %v450_v8  ;;  %v481_v8 = vrot.slane %v479_v51, 1  ;;  %v503_v51 = vshll.u32 %v10992_v32, 16  ;;  %v501_v18 = vor.u32 %v499_v60, %v497_v50 }
  0x3f   :  { %9847 = vmatmul.mubr.msk.bf16.gmra.mrb[24].mxu0 %vm667_vm2, %v3404_v22  ;;  %v3448_v22 = vor.u32 %v3447_v2, %v3444_v61  ;;  %v511_v2 = vshll.u32 %v11624_v45, 16 }
  0x40   :  { %9850 = vmatprep.mubr.msk.bf16.mxu0 %vm667_vm2, %v3413_v25  ;;  %v3460_v25 = vshrl.u32 %v11596_v5, 16  ;;  %v482_v29 = vsel %vm326_vm1, %v477_v6, %v481_v8  ;;  %v485_v41 = vor.u32 %v483_v23, %v481_v8  ;;  %v4239_v6 = vld [vmem:[%s14295_s0 + $0x8] sm:$0xc]  ;;  %v505_v9 = vrot.slane %v503_v51, 1 }
  0x41   :  { %v3449_v40 = vsel %vm3270_vm3, %v3439_v13, %v3448_v22  ;;  %v3458_v8 = vsel %vm3270_vm3, %v3448_v22, %v3457_v53  ;;  %v3474_v13 = vrot.slane %v3472_v57, 2  ;;  %v8864_v23 = vcombine.low %v4239_v6, %v11313_v14  ;;  %v11649_v22 = vld [vmem:[%s14295_s0 + $0xc8] sm:$0xff]  }
  0x42   :  { %v490_v58 = vsel %vm326_vm1, %v485_v41, %v489_v36  ;;  %v513_v27 = vrot.slane %v511_v2, 1  ;;  %v506_v31 = vsel %vm326_vm1, %v501_v18, %v505_v9  ;;  %v4247_v14 = vrot.slane %v11306_v11, 2  ;;  %v11708_v18 = vld [vmem:[%s14295_s0 + $0xe8] sm:$0xff]  }
  0x43   :  { %v527_v39 = vshll.u32 %v11649_v22, 16  ;;  %v531_v60 = vshrl.u32 %v11649_v22, 16 }
  0x45   :  { %9507 = vmatmul.mubr.msk.bf16.gmra.mrb[28].mxu1 %vm667_vm2, %v458_v42  ;;  %v3462_v42 = vrot.slane %v3460_v25, 1  ;;  %v529_v51 = vrot.slane %v527_v39, 1 }
  0x46   :  { %9510 = vmatprep.mubr.msk.bf16.mxu1 %vm667_vm2, %v466_v48  ;;  %v493_v48 = vor.u32 %v491_v30, %v489_v36  ;;  %v519_v30 = vshll.u32 %v11641_v4, 16 }
  0x47   :  { %9851 = vmatmul.mubr.msk.bf16.gmra.mrb[28].mxu0 %vm667_vm2, %v3422_v59  ;;  %v3466_v59 = vor.u32 %v3465_v47, %v3462_v42  ;;  %v11668_v42 = vld [vmem:[%s14295_s0 + $0xd0] sm:$0xff]  }
  0x48   :  { %9854 = vmatprep.mubr.msk.bf16.mxu0 %vm667_vm2, %v3431_v0  ;;  %v498_v61 = vsel %vm326_vm1, %v493_v48, %v497_v50  ;;  %v507_v0 = vshrl.u32 %v10992_v32, 16  ;;  %v4246_v32 = vrot.slane %v8864_v23, 2  ;;  %v521_v41 = vrot.slane %v519_v30, 1  ;;  %v11675_v48 = vld [vmem:[%s14296_s1 + $0x4] sm:$0x3] }
  0x49   :  { %v3467_v17 = vsel %vm3270_vm3, %v3457_v53, %v3466_v59  ;;  %v11680_v53 = vld [vmem:[%s14295_s0 + $0xd8] sm:$0xff]   ;;  %10934 = vmatprep.subr.msk.bf16.mxu1 %vm794_vm0, %v11675_v48  ;;  %v535_v57 = vshll.u32 %v11668_v42, 16  ;;  %v4253_v23 = vrot.slane %v11363_v56, 2 }
  0x4a   :  { %v509_v25 = vor.u32 %v507_v0, %v505_v9  ;;  %v4248_v11 = vsel %vm4245_vm4, %v4246_v32, %v4247_v14  ;;  %v525_v50 = vor.u32 %v523_v37, %v521_v41  ;;  %v539_v0 = vshrl.u32 %v11668_v42, 16 }
  0x4b   :  { %v543_v2 = vshll.u32 %v11680_v53, 16  ;;  %v547_v30 = vshrl.u32 %v11680_v53, 16 }
  0x4c   :  { %v514_v36 = vsel %vm326_vm1, %v509_v25, %v513_v27 }
  0x4d   :  { %9511 = vmatmul.mubr.msk.bf16.gmra.mrb[32].mxu1 %vm667_vm2, %v474_v10  ;;  %v3471_v10 = vrot.slane %v3469_v55, 1  ;;  %v4249_v55 = vrot.slane %v11332_v28, 2  ;;  %v11699_v28 = vld [vmem:[%s14295_s0 + $0xe0] sm:$0xff]  }
  0x4e   :  { %9514 = vmatprep.mubr.msk.bf16.mxu1 %vm667_vm2, %v482_v29  ;;  %v555_v32 = vshrl.u32 %v11699_v28, 16 }
  0x4f   :  { %9855 = vmatmul.mubr.msk.bf16.gmra.mrb[32].mxu0 %vm667_vm2, %v3440_v34  ;;  %v11653_v29 = vor.u32 %v3474_v13, %v3471_v10  ;;  %v515_v34 = vshrl.u32 %v11624_v45, 16  ;;  %v4250_v6 = vsel %vm4245_vm4, %v4247_v14, %v4249_v55  ;;  %v533_v10 = vor.u32 %v531_v60, %v529_v51 }
  0x50   :  { %9858 = vmatprep.mubr.msk.bf16.mxu0 %vm667_vm2, %v3449_v40  ;;  %v559_v14 = vshll.u32 %v11708_v18, 16 }
  0x51   :  { %v3476_v40 = vsel %vm3270_vm3, %v3466_v59, %v11653_v29  ;;  %v517_v47 = vor.u32 %v515_v34, %v513_v27  ;;  %v4251_v59 = vrot.slane %v11344_v38, 2  ;;  %v5425_v38 = vsel %vm794_vm0, %v11577_v52, 0  ;;  %v11723_v34 = vld [vmem:[%s14295_s0 + $0xf0] sm:$0xff]  }
  0x52   :  { %v551_v52 = vshll.u32 %v11699_v28, 16  ;;  %v4255_v27 = vrot.slane %v11375_v1, 2  ;;  %v11730_v1 = vld [vmem:[%s14295_s0 + $0xf8] sm:$0xff]   ;;  %v571_v60 = vshrl.u32 %v11723_v34, 16 }
  0x53   :  { %v4252_v9 = vsel %vm4245_vm4, %v4249_v55, %v4251_v59  ;;  %v4254_v56 = vsel %vm4245_vm4, %v4251_v59, %v4253_v23  ;;  %v11746_v59 = vld [vmem:[%s14295_s0 + $0x100] sm:$0xff]  }
  0x54   :  { %v4256_v37 = vsel %vm4245_vm4, %v4253_v23, %v4255_v27  ;;  %v11774_v23 = vld [vmem:[%s14295_s0 + $0x118] sm:$0xff]  }
  0x55   :  { %9515 = vmatmul.mubr.msk.bf16.gmra.mrb[36].mxu1 %vm667_vm2, %v490_v58  ;;  %v522_v58 = vsel %vm326_vm1, %v517_v47, %v521_v41  ;;  %v561_v41 = vrot.slane %v559_v14, 1  ;;  %v4259_v47 = vrot.slane %v11403_v35, 2 }
  0x56   :  { %9518 = vmatprep.mubr.msk.bf16.mxu1 %vm667_vm2, %v498_v61  ;;  %v530_v61 = vsel %vm326_vm1, %v525_v50, %v529_v51  ;;  %v567_v50 = vshll.u32 %v11723_v34, 16  ;;  %v575_v51 = vshll.u32 %v11730_v1, 16 }
  0x57   :  { %9859 = vmatmul.mubr.msk.bf16.gmra.mrb[36].mxu0 %vm667_vm2, %v3458_v8  ;;  %v537_v8 = vrot.slane %v535_v57, 1  ;;  %v563_v57 = vshrl.u32 %v11708_v18, 16 }
  0x58   :  { %9862 = vmatprep.mubr.msk.bf16.mxu0 %vm667_vm2, %v3467_v17  ;;  %v545_v17 = vrot.slane %v543_v2, 1  ;;  %v577_v2 = vrot.slane %v575_v51, 1  ;;  %v11800_v51 = vld [vmem:[%s14295_s0 + $0x128] sm:$0xff]  }
  0x59   :  { %v541_v13 = vor.u32 %v539_v0, %v537_v8  ;;  %v538_v25 = vsel %vm326_vm1, %v533_v10, %v537_v8  ;;  %v569_v0 = vrot.slane %v567_v50, 1  ;;  %v565_v8 = vor.u32 %v563_v57, %v561_v41  ;;  %v11795_v50 = vld [vmem:[%s14295_s0 + $0x120] sm:$0xff]  }
  0x5a   :  { %v549_v39 = vor.u32 %v547_v30, %v545_v17 }
  0x5d   :  { %9519 = vmatmul.mubr.msk.bf16.gmra.mrb[40].mxu1 %vm667_vm2, %v506_v31  ;;  %v546_v31 = vsel %vm326_vm1, %v541_v13, %v545_v17  ;;  %v579_v13 = vshrl.u32 %v11730_v1, 16  ;;  %v11769_v17 = vld [vmem:[%s14295_s0 + $0x110] sm:$0xff]  }
  0x5e   :  { %9522 = vmatprep.mubr.msk.bf16.mxu1 %vm667_vm2, %v514_v36  ;;  %v553_v36 = vrot.slane %v551_v52, 1 }
  0x5f   :  { %9863 = vmatmul.mubr.msk.bf16.gmra.mrb[40].mxu0 %vm667_vm2, %v3476_v40 }
  0x60   :  { %9908 = vmatprep.mubr.msk.bf16.mxu0 %vm667_vm2, %v4248_v11  ;;  %v557_v40 = vor.u32 %v555_v32, %v553_v36  ;;  %v4257_v11 = vrot.slane %v11390_v20, 2  ;;  %v554_v55 = vsel %vm326_vm1, %v549_v39, %v553_v36  ;;  %v11751_v20 = vld [vmem:[%s14295_s0 + $0x108] sm:$0xff]  }
  0x61   :  { %v591_v10 = vshll.u32 %v11751_v20, 16 }
  0x62   :  { %v562_v35 = vsel %vm326_vm1, %v557_v40, %v561_v41  ;;  %v4267_v40 = vrot.slane %v11456_v26, 2  ;;  %v595_v41 = vshrl.u32 %v11751_v20, 16 }
  0x63   :  { %v593_v32 = vrot.slane %v591_v10, 1  ;;  %v619_v10 = vshrl.u32 %v11795_v50, 16 }
  0x65   :  { %9523 = vmatmul.mubr.msk.bf16.gmra.mrb[44].mxu1 %vm667_vm2, %v522_v58  ;;  %v4261_v58 = vrot.slane %v11416_v46, 2  ;;  %v4258_v46 = vsel %vm4245_vm4, %v4255_v27, %v4257_v11  ;;  %v587_v27 = vshrl.u32 %v11746_v59, 16 }
  0x66   :  { %9526 = vmatprep.mubr.msk.bf16.mxu1 %vm667_vm2, %v530_v61  ;;  %v4263_v61 = vrot.slane %v11430_v62, 2  ;;  %v570_v62 = vsel %vm326_vm1, %v565_v8, %v569_v0  ;;  %v4271_v8 = vrot.slane %v11477_v49, 2  ;;  %v11832_v49 = vld [vmem:[%s14295_s0 + $0x138] sm:$0xff]  }
  0x67   :  { %9909 = vmatmul.mubr.msk.bf16.vlgmr.msra.gmra.mrb[0].mxu0 %vm667_vm2, %v4250_v6  ;;  %v4260_v6 = vsel %vm4245_vm4, %v4257_v11, %v4259_v47  ;;  %v4262_v30 = vsel %vm4245_vm4, %v4259_v47, %v4261_v58  ;;  %v603_v47 = vshrl.u32 %v11769_v17, 16 }
  0x68   :  { %9993 = vmatpush3.bf16.msra.mxu0 %v5425_v38  ;;  %9912 = vmatprep.mubr.msk.bf16.mxu0 %vm667_vm2, %v4252_v9  ;;  %v573_v38 = vor.u32 %v571_v60, %v569_v0  ;;  %v583_v9 = vshll.u32 %v11746_v59, 16  ;;  %v4264_v14 = vsel %vm4245_vm4, %v4261_v58, %v4263_v61  ;;  %v615_v0 = vshll.u32 %v11795_v50, 16 }
  0x6a   :  { %v578_v52 = vsel %vm326_vm1, %v573_v38, %v577_v2  ;;  %v611_v38 = vshrl.u32 %v11774_v23, 16 }
  0x6d   :  { %9527 = vmatmul.mubr.msk.bf16.gmra.mrb[48].mxu1 %vm667_vm2, %v538_v25  ;;  %v4265_v25 = vrot.slane %v11444_v15, 2  ;;  %v607_v15 = vshll.u32 %v11774_v23, 16 }
  0x6e   :  { %9530 = vmatprep.mubr.msk.bf16.mxu1 %vm667_vm2, %v546_v31  ;;  %v585_v31 = vrot.slane %v583_v9, 1  ;;  %v4273_v9 = vrot.slane %v11498_v12, 2 }
  0x6f   :  { %9913 = vmatmul.mubr.msk.bf16.gmra.mrb[4].mxu0 %vm667_vm2, %v4254_v56  ;;  %v581_v56 = vor.u32 %v579_v13, %v577_v2  ;;  %v4266_v26 = vsel %vm4245_vm4, %v4263_v61, %v4265_v25  ;;  %v609_v57 = vrot.slane %v607_v15, 1  ;;  %v4268_v58 = vsel %vm4245_vm4, %v4265_v25, %v4267_v40  ;;  %v11814_v61 = vld [vmem:[%s14296_s1 + $0xe] sm:$0x3] }
  0x70   :  { %9916 = vmatprep.mubr.msk.bf16.mxu0 %vm667_vm2, %v4256_v37  ;;  %v589_v36 = vor.u32 %v587_v27, %v585_v31  ;;  %v599_v37 = vshll.u32 %v11769_v17, 16  ;;  %v623_v2 = vshll.u32 %v11800_v51, 16  ;;  %10940 = vmatprep.subr.msk.bf16.mxu0 %vm794_vm0, %v11814_v61 }
  0x71   :  { %v586_v39 = vsel %vm326_vm1, %v581_v56, %v585_v31  ;;  %v613_v27 = vor.u32 %v611_v38, %v609_v57  ;;  %v4275_v31 = vrot.slane %v11505_v21, 2  ;;  %v639_v56 = vshll.u32 %v11832_v49, 16 }
  0x72   :  { %v594_v11 = vsel %vm326_vm1, %v589_v36, %v593_v32  ;;  %v625_v25 = vrot.slane %v623_v2, 1  ;;  %v4274_v21 = vsel %vm4245_vm4, %v4271_v8, %v4273_v9 }
  0x75   :  { %9531 = vmatmul.mubr.msk.bf16.gmra.mrb[52].mxu1 %vm667_vm2, %v554_v55  ;;  %v601_v55 = vrot.slane %v599_v37, 1 }
  0x76   :  { %9534 = vmatprep.mubr.msk.bf16.mxu1 %vm667_vm2, %v562_v35  ;;  %v597_v35 = vor.u32 %v595_v41, %v593_v32  ;;  %v627_v32 = vshrl.u32 %v11800_v51, 16  ;;  %v641_v41 = vrot.slane %v639_v56, 1 }
  0x77   :  { %9917 = vmatmul.mubr.msk.bf16.gmra.mrb[8].mxu0 %vm667_vm2, %v4258_v46  ;;  %v605_v60 = vor.u32 %v603_v47, %v601_v55  ;;  %v4269_v46 = vrot.slane %v11470_v43, 2  ;;  %v4276_v47 = vsel %vm4245_vm4, %v4273_v9, %v4275_v31 }
  0x78   :  { %9920 = vmatprep.mubr.msk.bf16.mxu0 %vm667_vm2, %v4260_v6  ;;  %v602_v6 = vsel %vm326_vm1, %v597_v35, %v601_v55 }
  0x79   :  { %v610_v43 = vsel %vm326_vm1, %v605_v60, %v609_v57  ;;  %v4270_v13 = vsel %vm4245_vm4, %v4267_v40, %v4269_v46  ;;  %v4272_v12 = vsel %vm4245_vm4, %v4269_v46, %v4271_v8  ;;  %v4277_v57 = vrot.slane %v11524_v44, 2 }
  0x7a   :  { %v4279_v60 = vrot.slane %v11533_v54, 2  ;;  %v643_v46 = vshrl.u32 %v11832_v49, 16 }
  0x7d   :  { %9535 = vmatmul.mubr.msk.bf16.gmra.mrb[56].mxu1 %vm667_vm2, %v570_v62  ;;  %v11827_v62 = vld [vmem:[%s14295_s0 + $0x130] sm:$0xff]  }
  0x7e   :  { %9538 = vmatprep.mubr.msk.bf16.mxu1 %vm667_vm2, %v578_v52  ;;  %v617_v52 = vrot.slane %v615_v0, 1  ;;  %v635_v15 = vshrl.u32 %v11827_v62, 16 }
  0x7f   :  { %9921 = vmatmul.mubr.msk.bf16.gmra.mrb[12].mxu0 %vm667_vm2, %v4262_v30 }
  0x80   :  { %9924 = vmatprep.mubr.msk.bf16.mxu0 %vm667_vm2, %v4264_v14  ;;  %v621_v30 = vor.u32 %v619_v10, %v617_v52  ;;  %v631_v14 = vshll.u32 %v11827_v62, 16  ;;  %v618_v36 = vsel %vm326_vm1, %v613_v27, %v617_v52 }
  0x82   :  { %v626_v37 = vsel %vm326_vm1, %v621_v30, %v625_v25  ;;  %v633_v40 = vrot.slane %v631_v14, 1 }
  0x84   :  { %v637_v55 = vor.u32 %v635_v15, %v633_v40 }
  0x85   :  { %9539 = vmatmul.mubr.msk.bf16.gmra.mrb[60].mxu1 %vm667_vm2, %v586_v39  ;;  %v11850_v39 = vld [vmem:[%s14295_s0 + $0x140] sm:$0xff]  }
  0x86   :  { %9542 = vmatprep.mubr.msk.bf16.mxu1 %vm667_vm2, %v594_v11  ;;  %v11857_v11 = vld [vmem:[%s14295_s0 + $0x148] sm:$0xff]  }
  0x87   :  { %9925 = vmatmul.mubr.msk.bf16.gmra.mrb[16].mxu0 %vm667_vm2, %v4266_v26  ;;  %v629_v26 = vor.u32 %v627_v32, %v625_v25 }
  0x88   :  { %9928 = vmatprep.mubr.msk.bf16.mxu0 %vm667_vm2, %v4268_v58  ;;  %v647_v58 = vshll.u32 %v11850_v39, 16 }
  0x89   :  { %v634_v35 = vsel %vm326_vm1, %v629_v26, %v633_v40 }
  0x8d   :  { %9543 = vmatmul.mubr.msk.bf16.gmra.mrb[64].mxu1 %vm667_vm2, %v602_v6 }
  0x8e   :  { %9546 = vmatprep.mubr.msk.bf16.mxu1 %vm667_vm2, %v610_v43 }
  0x8f   :  { %9929 = vmatmul.mubr.msk.bf16.gmra.mrb[20].mxu0 %vm667_vm2, %v4270_v13 }
  0x90   :  { %9932 = vmatprep.mubr.msk.bf16.mxu0 %vm667_vm2, %v4272_v12 }
  0x95   :  { %9547 = vmatmul.mubr.msk.bf16.gmra.mrb[68].mxu1 %vm667_vm2, %v618_v36 }
  0x96   :  { %9550 = vmatprep.mubr.msk.bf16.mxu1 %vm667_vm2, %v626_v37 }
  0x97   :  { %9933 = vmatmul.mubr.msk.bf16.gmra.mrb[24].mxu0 %vm667_vm2, %v4274_v21 }
  0x98   :  { %9936 = vmatprep.mubr.msk.bf16.mxu0 %vm667_vm2, %v4276_v47 }
  0x99   :  { %11 = vsyncpa [#allocation3], 0  ;;  %v642_v0 = vsel %vm326_vm1, %v637_v55, %v641_v41  ;;  %v651_v2 = vshrl.u32 %v11850_v39, 16  ;;  %v655_v6 = vshll.u32 %v11857_v11, 16  ;;  %v4278_v44 = vsel %vm4245_vm4, %v4275_v31, %v4277_v57  ;;  %v11015_v21 = vld [vmem:[%s14295_s0 + $0xc0] sm:$0xff]   ;;  %v11016_v47 = vld [vmem:[%s14295_s0 + $0xc8] sm:$0xff]  }
  0x9a   :  { %v649_v8 = vrot.slane %v647_v58, 1  ;;  %v4280_v38 = vsel %vm4245_vm4, %v4277_v57, %v4279_v60  ;;  %v645_v43 = vor.u32 %v643_v46, %v641_v41  ;;  %v11014_v54 = vld [vmem:[%s14295_s0 + $0x150] ss:$0 sps:$4 sm:$0x11]   ;;  %v4281_v13 = vrot.slane %v11552_v19, 2  ;;  %v11934_v58 = vld [vmem:[%s14295_s0 + $0x18] sm:$0xff]  }
  0x9b   :  { %v657_v10 = vrot.slane %v655_v6, 1  ;;  %v4283_v25 = vrot.slane %v11559_v24, 2  ;;  %v659_v12 = vshrl.u32 %v11857_v11, 16  ;;  %v663_v27 = vshll.u32 %v11014_v54, 16  ;;  %v11017_v26 = vld [vmem:[%s14295_s0 + $0xd0] sm:$0xff]   ;;  %v11945_v46 = vld [vmem:[%s14295_s0 + $0x20] sm:$0xff]  }
  0x9c   :  { %v653_v9 = vor.u32 %v651_v2, %v649_v8  ;;  %v650_v52 = vsel %vm326_vm1, %v645_v43, %v649_v8  ;;  %v4282_v31 = vsel %vm4245_vm4, %v4279_v60, %v4281_v13  ;;  %v4285_v19 = vrot.slane %v11589_v63, 2  ;;  %v11018_v60 = vld [vmem:[%s14295_s0 + $0xd8] sm:$0xff]   ;;  %v11019_v2 = vld [vmem:[%s14295_s0 + $0xe0] sm:$0xff]   ;;  %v11958_v8 = vld [vmem:[%s14295_s0 + $0x28] sm:$0xff]   ;;  %s11240_s26 = smov [#allocation2]  }
  0x9d   :  { %9551 = vmatmul.mubr.msk.bf16.gmra.mrb[72].mxu1 %vm667_vm2, %v634_v35  ;;  %v4284_v32 = vsel %vm4245_vm4, %v4281_v13, %v4283_v25  ;;  %v661_v14 = vor.u32 %v659_v12, %v657_v10  ;;  %v665_v56 = vrot.slane %v663_v27, 1  ;;  %v4287_v36 = vrot.slane %v11596_v5, 2  ;;  %v11020_v43 = vld [vmem:[%s14295_s0 + $0xe8] sm:$0xff]   ;;  %v11969_v54 = vld [vmem:[%s14295_s0 + $0x30] sm:$0xff]   ;;  %v11022_v27 = vld [vmem:[%s14295_s0 + $0xf8] sm:$0xff]   ;;  %s8553_s27 = sshll.u32 %s11240_s26, 4  ;;  %s8554_s27 = int_to_ptr.vmem [resolvable:$true] %s8553_s27 }
  0x9e   :  { %9554 = vmatprep.mubr.msk.bf16.mxu1 %vm667_vm2, %v642_v0  ;;  %v658_v30 = vsel %vm326_vm1, %v653_v9, %v657_v10  ;;  %v4286_v37 = vsel %vm4245_vm4, %v4283_v25, %v4285_v19  ;;  %v4289_v63 = vrot.slane %v11617_v33, 2  ;;  %v4291_v5 = vrot.slane %v11015_v21, 2  ;;  %v11921_v33 = vld [vmem:[%s14295_s0 + $0x10] sm:$0xff]   ;;  %v11982_v25 = vld [vmem:[%s14295_s0 + $0x38] sm:$0xff]   ;;  %s11213_s28 = scalar_lea.vmem %s8554_s27, 32  ;;  %p11218_p1 = scmp.lt.s32.totalorder %s8554_s27, %s8554_s27 }
  0x9f   :  { %9937 = vmatmul.mubr.msk.bf16.gmra.mrb[28].mxu0 %vm667_vm2, %v4278_v44  ;;  %v666_v24 = vsel %vm326_vm1, %v661_v14, %v665_v56  ;;  %v4288_v15 = vsel %vm4245_vm4, %v4285_v19, %v4287_v36  ;;  %v1842_v40 = vsel %vm794_vm0, %v11675_v48, 0  ;;  %v4293_v55 = vrot.slane %v11016_v47, 2  ;;  %v11021_v10 = vld [vmem:[%s14295_s0 + $0xf0] sm:$0xff]   ;;  %v12006_v19 = vld [vmem:[%s14295_s0 + $0x48] sm:$0xff]   ;;  %v11026_v47 = vld [vmem:[%s14295_s0 + $0x118] sm:$0xff]   ;;  %p11214_p0 = scmp.ne.s32.totalorder %s8554_s27, %s11213_s28  ;;  %p11219_p2 = scmp.lt.s32.totalorder %s11213_s28, %s11213_s28 }
  0xa0   :  { %9940 = vmatprep.mubr.msk.bf16.mxu0 %vm667_vm2, %v4280_v38  ;;  %v4290_v41 = vsel %vm4245_vm4, %v4287_v36, %v4289_v63  ;;  %v4292_v48 = vsel %vm4245_vm4, %v4289_v63, %v4291_v5  ;;  %v4295_v57 = vrot.slane %v11017_v26, 2  ;;  %v4297_v6 = vrot.slane %v11018_v60, 2  ;;  %v11024_v36 = vld [vmem:[%s14295_s0 + $0x108] sm:$0xff]   ;;  %v11025_v21 = vld [vmem:[%s14295_s0 + $0x110] sm:$0xff]  }
  0xa1   :  { %v4294_v35 = vsel %vm4245_vm4, %v4291_v5, %v4293_v55  ;;  %v4299_v44 = vrot.slane %v11019_v2, 2  ;;  %v4301_v13 = vrot.slane %v11020_v43, 2  ;;  %v4305_v14 = vrot.slane %v11022_v27, 2  ;;  %v11029_v43 = vld [vmem:[%s14295_s0 + $0x130] sm:$0xff]   ;;  %v12096_v27 = vld [vmem:[%s14295_s0 + $0x80] sm:$0xff]   ;;  %p11220_p3 = por %p11219_p2, %p11218_p1 }
  0xa2   :  { %v4296_v0 = vsel %vm4245_vm4, %v4293_v55, %v4295_v57  ;;  %v4298_v38 = vsel %vm4245_vm4, %v4295_v57, %v4297_v6  ;;  %v4309_v63 = vrot.slane %v11024_v36, 2  ;;  %v4311_v5 = vrot.slane %v11025_v21, 2  ;;  %v11027_v55 = vld [vmem:[%s14295_s0 + $0x120] sm:$0xff]   ;;  %v12120_v21 = vld [vmem:[%s14295_s0 + $0x90] sm:$0xff]  }
  0xa3   :  { %v4300_v9 = vsel %vm4245_vm4, %v4297_v6, %v4299_v44  ;;  %v4302_v12 = vsel %vm4245_vm4, %v4299_v44, %v4301_v13  ;;  %v12053_v57 = vld [vmem:[%s14296_s1 + $0x6] sm:$0x3]  ;;  %v4315_v60 = vrot.slane %v11027_v55, 2  ;;  %v11028_v6 = vld [vmem:[%s14295_s0 + $0x128] sm:$0xff]   ;;  %v12072_v44 = vld [vmem:[%s14295_s0 + $0x70] sm:$0xff]   ;;  %vm1629_vm5 = vcmask 1046528   ;;  %p11221_p4 = pnand %p11220_p3, %p11214_p0 }
  0xa4   :  { %v4312_v26 = vsel %vm4245_vm4, %v4309_v63, %v4311_v5  ;;  %v4914_v55 = vld [vmem:[%s14295_s0 + $0x14] sm:$0xf]  ;;  %vm5886_vm6 = vsmask.f32 5376  ;;  %vm6861_vm7 = vcmask 1044480   ;;  %vm8292_vm8 = vcmask 261120  }
  0xa5   :  { %9555 = vmatmul.mubr.msk.bf16.gmra.mrb[76].mxu1 %vm667_vm2, %v650_v52  ;;  %v4303_v52 = vrot.slane %v11021_v10, 2  ;;  %v4319_v10 = vrot.slane %v11029_v43, 2  ;;  %vm11239_vm9 = vmmov 0   ;;  %vm8488_vm10 = vcmask 1041409  }
  0xa6   :  { %9558 = vmatprep.mubr.msk.bf16.mxu1 %vm667_vm2, %v658_v30  ;;  %v11993_v30 = vld [vmem:[%s14295_s0 + $0x40] sm:$0xff]  }
  0xa7   :  { %9941 = vmatmul.mubr.msk.bf16.gmra.mrb[32].mxu0 %vm667_vm2, %v4282_v31  ;;  %v4304_v31 = vsel %vm4245_vm4, %v4301_v13, %v4303_v52  ;;  %v12085_v13 = vld [vmem:[%s14295_s0 + $0x78] sm:$0xff]  }
  0xa8   :  { %9944 = vmatprep.mubr.msk.bf16.mxu0 %vm667_vm2, %v4284_v32  ;;  %v11023_v32 = vld [vmem:[%s14295_s0 + $0x100] sm:$0xff]  }
  0xa9   :  { %v4307_v56 = vrot.slane %v11023_v32, 2  ;;  %v11031_v32 = vld [vmem:[%s14295_s0 + $0x140] sm:$0xff]  }
  0xad   :  { %9559 = vmatmul.mubr.msk.bf16.gmra.mrb[80].mxu1 %vm667_vm2, %v666_v24  ;;  %v4306_v24 = vsel %vm4245_vm4, %v4303_v52, %v4305_v14 }
  0xae   :  { %9564 = vmatprep.mubr.msk.bf16.mxu1 %vm667_vm2, %v11298_v7  ;;  %v11910_v7 = vld [vmem:[%s14295_s0 + $0x8] sm:$0xff]  }
  0xaf   :  { %9945 = vmatmul.mubr.msk.bf16.gmra.mrb[36].mxu0 %vm667_vm2, %v4286_v37  ;;  %v12017_v37 = vld [vmem:[%s14295_s0 + $0x50] sm:$0xff]  }
  0xb0   :  { %9948 = vmatprep.mubr.msk.bf16.mxu0 %vm667_vm2, %v4288_v15  ;;  %v4308_v15 = vsel %vm4245_vm4, %v4305_v14, %v4307_v56 }
  0xb5   :  { %9565 = vmatmul.mubr.msk.bf16.vlgmr.msra.gmra.mrb[0].mxu1 %vm667_vm2, %v11910_v7 }
  0xb6   :  { %9568 = vmatprep.mubr.msk.bf16.mxu1 %vm667_vm2, %v11921_v33  ;;  %9649 = vmatpush3.bf16.msra.mxu1 %v1842_v40  ;;  %v12030_v40 = vld [vmem:[%s14295_s0 + $0x58] sm:$0xff]  }
  0xb7   :  { %9949 = vmatmul.mubr.msk.bf16.gmra.mrb[40].mxu0 %vm667_vm2, %v4290_v41  ;;  %v4310_v41 = vsel %vm4245_vm4, %v4307_v56, %v4309_v63  ;;  %10935 = vmatprep.subr.msk.bf16.mxu1 %vm794_vm0, %v12053_v57  ;;  %v4323_v56 = vrot.slane %v11031_v32, 2 }
  0xb8   :  { %9952 = vmatprep.mubr.msk.bf16.mxu0 %vm667_vm2, %v4292_v48  ;;  %v12041_v48 = vld [vmem:[%s14295_s0 + $0x60] sm:$0xff]  }
  0xbd   :  { %9569 = vmatmul.mubr.msk.bf16.gmra.mrb[4].mxu1 %vm667_vm2, %v11934_v58 }
  0xbe   :  { %9572 = vmatprep.mubr.msk.bf16.mxu1 %vm667_vm2, %v11945_v46 }
  0xbf   :  { %9953 = vmatmul.mubr.msk.bf16.gmra.mrb[44].mxu0 %vm667_vm2, %v4294_v35  ;;  %v4313_v35 = vrot.slane %v11026_v47, 2 }
  0xc0   :  { %9956 = vmatprep.mubr.msk.bf16.mxu0 %vm667_vm2, %v4296_v0  ;;  %v12061_v0 = vld [vmem:[%s14295_s0 + $0x68] sm:$0xff]  }
  0xc1   :  { %v4314_v2 = vsel %vm4245_vm4, %v4311_v5, %v4313_v35  ;;  %v11033_v5 = vld [vmem:[%s14295_s0 + $0x150] sm:$0xff]  }
  0xc2   :  { %v4327_v47 = vrot.slane %v11033_v5, 2 }
  0xc5   :  { %9573 = vmatmul.mubr.msk.bf16.gmra.mrb[8].mxu1 %vm667_vm2, %v11958_v8 }
  0xc6   :  { %9576 = vmatprep.mubr.msk.bf16.mxu1 %vm667_vm2, %v11969_v54 }
  0xc7   :  { %9957 = vmatmul.mubr.msk.bf16.gmra.mrb[48].mxu0 %vm667_vm2, %v4298_v38  ;;  %v4316_v38 = vsel %vm4245_vm4, %v4313_v35, %v4315_v60  ;;  %v12139_v35 = vld [vmem:[%s14295_s0 + $0x98] sm:$0xff]  }
  0xc8   :  { %9960 = vmatprep.mubr.msk.bf16.mxu0 %vm667_vm2, %v4300_v9  ;;  %v4317_v9 = vrot.slane %v11028_v6, 2  ;;  %v12150_v6 = vld [vmem:[%s14295_s0 + $0xa0] sm:$0xff]  }
  0xca   :  { %v4318_v52 = vsel %vm4245_vm4, %v4315_v60, %v4317_v9 }
  0xcd   :  { %9577 = vmatmul.mubr.msk.bf16.gmra.mrb[12].mxu1 %vm667_vm2, %v11982_v25 }
  0xce   :  { %9580 = vmatprep.mubr.msk.bf16.mxu1 %vm667_vm2, %v11993_v30 }
  0xcf   :  { %9961 = vmatmul.mubr.msk.bf16.gmra.mrb[52].mxu0 %vm667_vm2, %v4302_v12  ;;  %v11030_v12 = vld [vmem:[%s14295_s0 + $0x138] sm:$0xff]  }
  0xd0   :  { %9964 = vmatprep.mubr.msk.bf16.mxu0 %vm667_vm2, %v4304_v31  ;;  %v4320_v31 = vsel %vm4245_vm4, %v4317_v9, %v4319_v10  ;;  %v4321_v14 = vrot.slane %v11030_v12, 2  ;;  %v12160_v9 = vld [vmem:[%s14295_s0 + $0x18] sm:$0xff]  }
  0xd1   :  { %v5214_v12 = vrot.slane %v12160_v9, 2 }
  0xd2   :  { %v4322_v36 = vsel %vm4245_vm4, %v4319_v10, %v4321_v14  ;;  %v4324_v63 = vsel %vm4245_vm4, %v4321_v14, %v4323_v56  ;;  %v12177_v14 = vld [vmem:[%s14295_s0 + $0x20] sm:$0xff]  }
  0xd5   :  { %9581 = vmatmul.mubr.msk.bf16.gmra.mrb[16].mxu1 %vm667_vm2, %v12006_v19 }
  0xd6   :  { %9584 = vmatprep.mubr.msk.bf16.mxu1 %vm667_vm2, %v12017_v37 }
  0xd7   :  { %9965 = vmatmul.mubr.msk.bf16.gmra.mrb[56].mxu0 %vm667_vm2, %v4306_v24  ;;  %v12109_v24 = vld [vmem:[%s14295_s0 + $0x88] sm:$0xff]  }
  0xd8   :  { %9968 = vmatprep.mubr.msk.bf16.mxu0 %vm667_vm2, %v4308_v15  ;;  %v11032_v15 = vld [vmem:[%s14295_s0 + $0x148] sm:$0xff]  }
  0xdd   :  { %9585 = vmatmul.mubr.msk.bf16.gmra.mrb[20].mxu1 %vm667_vm2, %v12030_v40 }
  0xde   :  { %9588 = vmatprep.mubr.msk.bf16.mxu1 %vm667_vm2, %v12041_v48 }
  0xdf   :  { %9969 = vmatmul.mubr.msk.bf16.gmra.mrb[60].mxu0 %vm667_vm2, %v4310_v41  ;;  %v4325_v41 = vrot.slane %v11032_v15, 2  ;;  %v12190_v15 = vld [vmem:[%s14295_s0 + $0x28] sm:$0xff]  }
  0xe0   :  { %9972 = vmatprep.mubr.msk.bf16.mxu0 %vm667_vm2, %v4312_v26  ;;  %v4913_v26 = vld [vmem:[%s14295_s0 + $0x10] sm:$0xc]  ;;  %v5218_v5 = vrot.slane %v12190_v15, 2 }
  0xe1   :  { %v4326_v60 = vsel %vm4245_vm4, %v4323_v56, %v4325_v41  ;;  %v12155_v43 = vcombine.low %v4913_v26, %v4914_v55  ;;  %v12182_v56 = vld [vmem:[%s14295_s0 + $0xb0] sm:$0xff]   ;;  %v6400_v26 = vsel %vm794_vm0, %v11814_v61, 0  ;;  %v12224_v61 = vld [vmem:[%s14295_s0 + $0x40] sm:$0xff]  }
  0xe5   :  { %9589 = vmatmul.mubr.msk.bf16.gmra.mrb[24].mxu1 %vm667_vm2, %v12061_v0 }
  0xe6   :  { %9592 = vmatprep.mubr.msk.bf16.mxu1 %vm667_vm2, %v12072_v44 }
  0xe7   :  { %9973 = vmatmul.mubr.msk.bf16.gmra.mrb[64].mxu0 %vm667_vm2, %v4314_v2  ;;  %v11034_v2 = vld [vmem:[%s14295_s0 + $0x158] ss:$0 sps:$4 sm:$0x33]  }
  0xe8   :  { %9976 = vmatprep.mubr.msk.bf16.mxu0 %vm667_vm2, %v4316_v38  ;;  %v4328_v38 = vsel %vm4245_vm4, %v4325_v41, %v4327_v47  ;;  %v4329_v10 = vrot.slane %v11034_v2, 2 }
  0xea   :  { %v4330_v32 = vsel %vm4245_vm4, %v4327_v47, %v4329_v10  ;;  %v12202_v47 = vld [vmem:[%s14295_s0 + $0x30] sm:$0xff]   ;;  %v12232_v10 = vld [vmem:[%s14295_s0 + $0x48] sm:$0xff]  }
  0xed   :  { %9593 = vmatmul.mubr.msk.bf16.gmra.mrb[28].mxu1 %vm667_vm2, %v12085_v13 }
  0xee   :  { %9596 = vmatprep.mubr.msk.bf16.mxu1 %vm667_vm2, %v12096_v27 }
  0xef   :  { %9977 = vmatmul.mubr.msk.bf16.gmra.mrb[68].mxu0 %vm667_vm2, %v4318_v52  ;;  %v5213_v52 = vrot.slane %v12155_v43, 2 }
  0xf0   :  { %9980 = vmatprep.mubr.msk.bf16.mxu0 %vm667_vm2, %v4320_v31  ;;  %v12169_v31 = vld [vmem:[%s14295_s0 + $0xa8] sm:$0xff]  }
  0xf5   :  { %9597 = vmatmul.mubr.msk.bf16.gmra.mrb[32].mxu1 %vm667_vm2, %v12109_v24 }
  0xf6   :  { %9600 = vmatprep.mubr.msk.bf16.mxu1 %vm667_vm2, %v12120_v21 }
  0xf7   :  { %9981 = vmatmul.mubr.msk.bf16.gmra.mrb[72].mxu0 %vm667_vm2, %v4322_v36  ;;  %v5215_v36 = vsel %vm4245_vm4, %v5213_v52, %v5214_v12  ;;  %v5226_v52 = vrot.slane %v12232_v10, 2 }
  0xf8   :  { %9984 = vmatprep.mubr.msk.bf16.mxu0 %vm667_vm2, %v4324_v63  ;;  %v5216_v63 = vrot.slane %v12177_v14, 2 }
  0xfa   :  { %v5217_v41 = vsel %vm4245_vm4, %v5214_v12, %v5216_v63  ;;  %v5219_v55 = vsel %vm4245_vm4, %v5216_v63, %v5218_v5  ;;  %v12244_v12 = vld [vmem:[%s14295_s0 + $0x50] sm:$0xff]  }
  0xfd   :  { %9601 = vmatmul.mubr.msk.bf16.gmra.mrb[36].mxu1 %vm667_vm2, %v12139_v35 }
  0xfe   :  { %9604 = vmatprep.mubr.msk.bf16.mxu1 %vm667_vm2, %v12150_v6 }
  0xff   :  { %9985 = vmatmul.mubr.msk.bf16.gmra.mrb[76].mxu0 %vm667_vm2, %v4326_v60  ;;  %v12212_v60 = vld [vmem:[%s14295_s0 + $0x38] sm:$0xff]  }
 0x100   :  { %9988 = vmatprep.mubr.msk.bf16.mxu0 %vm667_vm2, %v4328_v38  ;;  %v5222_v2 = vrot.slane %v12212_v60, 2 }
 0x105   :  { %9605 = vmatmul.mubr.msk.bf16.gmra.mrb[40].mxu1 %vm667_vm2, %v12169_v31 }
 0x106   :  { %9608 = vmatprep.mubr.msk.bf16.mxu1 %vm667_vm2, %v12182_v56 }
 0x107   :  { %9989 = vmatmul.mubr.msk.bf16.gmra.mrb[80].mxu0 %vm667_vm2, %v4330_v32 }
 0x108   :  { %9994 = vmatprep.mubr.msk.bf16.mxu0 %vm667_vm2, %v5215_v36  ;;  %v12252_v36 = vld [vmem:[%s14295_s0 + $0x58] sm:$0xff]  }
 0x109   :  { %v5230_v63 = vrot.slane %v12252_v36, 2 }
 0x10d   :  { %9609 = vmatmul.mubr.msk.bf16.gmra.mrb[44].mxu1 %vm667_vm2, %v11624_v45  ;;  %v5220_v45 = vrot.slane %v12202_v47, 2 }
 0x10e   :  { %9612 = vmatprep.mubr.msk.bf16.mxu1 %vm667_vm2, %v11641_v4 }
 0x10f   :  { %9995 = vmatmul.mubr.msk.bf16.vlgmr.msra.gmra.mrb[0].mxu0 %vm667_vm2, %v5217_v41  ;;  %v5221_v4 = vsel %vm4245_vm4, %v5218_v5, %v5220_v45  ;;  %v5223_v38 = vsel %vm4245_vm4, %v5220_v45, %v5222_v2  ;;  %v12264_v5 = vld [vmem:[%s14295_s0 + $0x60] sm:$0xff]   ;;  %v12284_v45 = vld [vmem:[%s14295_s0 + $0x70] sm:$0xff]  }
 0x110   :  { %10079 = vmatpush3.bf16.msra.mxu0 %v6400_v26  ;;  %9998 = vmatprep.mubr.msk.bf16.mxu0 %vm667_vm2, %v5219_v55  ;;  %v12272_v26 = vld [vmem:[%s14295_s0 + $0x68] sm:$0xff]  }
 0x111   :  { %v5234_v55 = vrot.slane %v12272_v26, 2 }
 0x115   :  { %9613 = vmatmul.mubr.msk.bf16.gmra.mrb[48].mxu1 %vm667_vm2, %v11649_v22  ;;  %v5224_v22 = vrot.slane %v12224_v61, 2 }
 0x116   :  { %9616 = vmatprep.mubr.msk.bf16.mxu1 %vm667_vm2, %v11668_v42 }
 0x117   :  { %9999 = vmatmul.mubr.msk.bf16.gmra.mrb[4].mxu0 %vm667_vm2, %v5221_v4  ;;  %v5225_v42 = vsel %vm4245_vm4, %v5222_v2, %v5224_v22  ;;  %v5227_v32 = vsel %vm4245_vm4, %v5224_v22, %v5226_v52  ;;  %v12292_v4 = vld [vmem:[%s14295_s0 + $0x78] sm:$0xff]  }
 0x118   :  { %10002 = vmatprep.mubr.msk.bf16.mxu0 %vm667_vm2, %v5223_v38  ;;  %v12300_v38 = vld [vmem:[%s14296_s1 + $0x10] sm:$0x3] }
 0x119   :  { %10941 = vmatprep.subr.msk.bf16.mxu0 %vm794_vm0, %v12300_v38 }
 0x11d   :  { %9617 = vmatmul.mubr.msk.bf16.gmra.mrb[52].mxu1 %vm667_vm2, %v11680_v53  ;;  %v5228_v53 = vrot.slane %v12244_v12, 2 }
 0x11e   :  { %9620 = vmatprep.mubr.msk.bf16.mxu1 %vm667_vm2, %v11699_v28 }
 0x11f   :  { %10003 = vmatmul.mubr.msk.bf16.gmra.mrb[8].mxu0 %vm667_vm2, %v5225_v42  ;;  %v5229_v28 = vsel %vm4245_vm4, %v5226_v52, %v5228_v53  ;;  %v5231_v41 = vsel %vm4245_vm4, %v5228_v53, %v5230_v63  ;;  %v12311_v52 = vld [vmem:[%s14295_s0 + $0x80] sm:$0xff]  }
 0x120   :  { %10006 = vmatprep.mubr.msk.bf16.mxu0 %vm667_vm2, %v5227_v32  ;;  %v12319_v32 = vld [vmem:[%s14295_s0 + $0x88] sm:$0xff]  }
 0x121   :  { %v5242_v53 = vrot.slane %v12319_v32, 2 }
 0x125   :  { %9621 = vmatmul.mubr.msk.bf16.gmra.mrb[56].mxu1 %vm667_vm2, %v11708_v18  ;;  %v5232_v18 = vrot.slane %v12264_v5, 2 }
 0x126   :  { %9624 = vmatprep.mubr.msk.bf16.mxu1 %vm667_vm2, %v11723_v34 }
 0x127   :  { %10007 = vmatmul.mubr.msk.bf16.gmra.mrb[12].mxu0 %vm667_vm2, %v5229_v28  ;;  %v5233_v34 = vsel %vm4245_vm4, %v5230_v63, %v5232_v18  ;;  %v5235_v2 = vsel %vm4245_vm4, %v5232_v18, %v5234_v55  ;;  %v12331_v63 = vld [vmem:[%s14295_s0 + $0x90] sm:$0xff]  }
 0x128   :  { %10010 = vmatprep.mubr.msk.bf16.mxu0 %vm667_vm2, %v5231_v41  ;;  %v12339_v41 = vld [vmem:[%s14295_s0 + $0x98] sm:$0xff]  }
 0x129   :  { %v5246_v18 = vrot.slane %v12339_v41, 2 }
 0x12d   :  { %9625 = vmatmul.mubr.msk.bf16.gmra.mrb[60].mxu1 %vm667_vm2, %v11730_v1  ;;  %v5236_v1 = vrot.slane %v12284_v45, 2 }
 0x12e   :  { %9628 = vmatprep.mubr.msk.bf16.mxu1 %vm667_vm2, %v11746_v59  ;;  %v5238_v59 = vrot.slane %v12292_v4, 2 }
 0x12f   :  { %10011 = vmatmul.mubr.msk.bf16.gmra.mrb[16].mxu0 %vm667_vm2, %v5233_v34  ;;  %v5237_v22 = vsel %vm4245_vm4, %v5234_v55, %v5236_v1  ;;  %v12351_v55 = vld [vmem:[%s14295_s0 + $0xa0] sm:$0xff]  }
 0x130   :  { %10014 = vmatprep.mubr.msk.bf16.mxu0 %vm667_vm2, %v5235_v2  ;;  %v5239_v42 = vsel %vm4245_vm4, %v5236_v1, %v5238_v59  ;;  %v12359_v2 = vld [vmem:[%s14295_s0 + $0xa8] sm:$0xff]   ;;  %v5248_v1 = vrot.slane %v12351_v55, 2 }
 0x135   :  { %9629 = vmatmul.mubr.msk.bf16.gmra.mrb[64].mxu1 %vm667_vm2, %v11751_v20  ;;  %v5240_v20 = vrot.slane %v12311_v52, 2 }
 0x136   :  { %9632 = vmatprep.mubr.msk.bf16.mxu1 %vm667_vm2, %v11769_v17 }
 0x137   :  { %10015 = vmatmul.mubr.msk.bf16.gmra.mrb[20].mxu0 %vm667_vm2, %v5237_v22  ;;  %v5241_v17 = vsel %vm4245_vm4, %v5238_v59, %v5240_v20  ;;  %v5243_v28 = vsel %vm4245_vm4, %v5240_v20, %v5242_v53  ;;  %v5250_v59 = vrot.slane %v12359_v2, 2  ;;  %v12377_v20 = vld [vmem:[%s14295_s0 + $0xb0] sm:$0xff]  }
 0x138   :  { %10018 = vmatprep.mubr.msk.bf16.mxu0 %vm667_vm2, %v5239_v42  ;;  %v5249_v42 = vsel %vm4245_vm4, %v5246_v18, %v5248_v1 }
 0x13d   :  { %9633 = vmatmul.mubr.msk.bf16.gmra.mrb[68].mxu1 %vm667_vm2, %v11774_v23  ;;  %v5244_v23 = vrot.slane %v12331_v63, 2 }
 0x13e   :  { %9636 = vmatprep.mubr.msk.bf16.mxu1 %vm667_vm2, %v11795_v50 }
 0x13f   :  { %10019 = vmatmul.mubr.msk.bf16.gmra.mrb[24].mxu0 %vm667_vm2, %v5241_v17  ;;  %v5245_v50 = vsel %vm4245_vm4, %v5242_v53, %v5244_v23  ;;  %v5247_v34 = vsel %vm4245_vm4, %v5244_v23, %v5246_v18  ;;  %v5251_v53 = vsel %vm4245_vm4, %v5248_v1, %v5250_v59  ;;  %v12385_v17 = vld [vmem:[%s14295_s0 + $0xb8] sm:$0xff]   ;;  %v5252_v23 = vrot.slane %v12377_v20, 2  ;;  %v12407_v1 = vld [vmem:[%s14295_s0 + $0xc8] sm:$0xff]  }
 0x140   :  { %10022 = vmatprep.mubr.msk.bf16.mxu0 %vm667_vm2, %v5243_v28  ;;  %v5254_v18 = vrot.slane %v12385_v17, 2 }
 0x145   :  { %9637 = vmatmul.mubr.msk.bf16.gmra.mrb[72].mxu1 %vm667_vm2, %v11800_v51  ;;  %v1623_v51 = vld [vmem:[%s14295_s0] sm:$0xe] }
 0x146   :  { %9640 = vmatprep.mubr.msk.bf16.mxu1 %vm667_vm2, %v11827_v62  ;;  %v11106_v62 = vld [vmem:[%s14295_s0 + $0x4] sm:$0xf] }
 0x147   :  { %10023 = vmatmul.mubr.msk.bf16.gmra.mrb[28].mxu0 %vm667_vm2, %v5245_v50  ;;  %v8690_v22 = vcombine.low %v1623_v51, %v11106_v62  ;;  %v5253_v50 = vsel %vm4245_vm4, %v5250_v59, %v5252_v23  ;;  %v1633_v51 = vrot.slane %v11921_v33, 1  ;;  %v2809_v33 = vsel %vm794_vm0, %v12053_v57, 0  ;;  %v12431_v57 = vld [vmem:[%s14295_s0 + $0xd8] sm:$0xff]  }
 0x148   :  { %10026 = vmatprep.mubr.msk.bf16.mxu0 %vm667_vm2, %v5247_v34  ;;  %v5255_v34 = vsel %vm4245_vm4, %v5252_v23, %v5254_v18  ;;  %v1639_v23 = vrot.slane %v11958_v8, 1 }
 0x149   :  { %v1630_v28 = vrot.slane %v8690_v22, 1  ;;  %v5258_v22 = vrot.slane %v12407_v1, 2 }
 0x14d   :  { %9641 = vmatmul.mubr.msk.bf16.gmra.mrb[76].mxu1 %vm667_vm2, %v11832_v49  ;;  %v1631_v49 = vrot.slane %v11910_v7, 1  ;;  %v12399_v7 = vld [vmem:[%s14295_s0 + $0xc0] sm:$0xff]  }
 0x14e   :  { %9644 = vmatprep.mubr.msk.bf16.mxu1 %vm667_vm2, %v11850_v39  ;;  %v5256_v59 = vrot.slane %v12399_v7, 2 }
 0x14f   :  { %10027 = vmatmul.mubr.msk.bf16.gmra.mrb[32].mxu0 %vm667_vm2, %v5249_v42  ;;  %v1632_v39 = vsel %vm1629_vm5, %v1630_v28, %v1631_v49  ;;  %v1634_v62 = vsel %vm1629_vm5, %v1631_v49, %v1633_v51  ;;  %v1637_v49 = vrot.slane %v11945_v46, 1 }
 0x150   :  { %10030 = vmatprep.mubr.msk.bf16.mxu0 %vm667_vm2, %v5251_v53  ;;  %v5257_v53 = vsel %vm4245_vm4, %v5254_v18, %v5256_v59  ;;  %v5259_v28 = vsel %vm4245_vm4, %v5256_v59, %v5258_v22  ;;  %v11107_v18 = vld [vmem:[%s14296_s1 + $0x8] sm:$0x3] }
 0x155   :  { %9645 = vmatmul.mubr.msk.bf16.gmra.mrb[80].mxu1 %vm667_vm2, %v11857_v11  ;;  %v1635_v11 = vrot.slane %v11934_v58, 1  ;;  %v12423_v58 = vld [vmem:[%s14295_s0 + $0xd0] sm:$0xff]  }
 0x156   :  { %9650 = vmatprep.mubr.msk.bf16.mxu1 %vm667_vm2, %v1632_v39  ;;  %v5260_v46 = vrot.slane %v12423_v58, 2 }
 0x157   :  { %10031 = vmatmul.mubr.msk.bf16.gmra.mrb[36].mxu0 %vm667_vm2, %v5253_v50  ;;  %v1636_v42 = vsel %vm1629_vm5, %v1633_v51, %v1635_v11  ;;  %v1638_v39 = vsel %vm1629_vm5, %v1635_v11, %v1637_v49  ;;  %v5262_v50 = vrot.slane %v12431_v57, 2  ;;  %v12449_v51 = vld [vmem:[%s14295_s0 + $0xe0] sm:$0xff]   ;;  %v12457_v11 = vld [vmem:[%s14295_s0 + $0xe8] sm:$0xff]  }
 0x158   :  { %10034 = vmatprep.mubr.msk.bf16.mxu0 %vm667_vm2, %v5255_v34  ;;  %v1640_v34 = vsel %vm1629_vm5, %v1637_v49, %v1639_v23  ;;  %v5261_v8 = vsel %vm4245_vm4, %v5258_v22, %v5260_v46  ;;  %v5264_v22 = vrot.slane %v12449_v51, 2 }
 0x159   :  { %v5263_v59 = vsel %vm4245_vm4, %v5260_v46, %v5262_v50  ;;  %v1647_v46 = vrot.slane %v12006_v19, 1  ;;  %v11066_v19 = vld [vmem:[%s14295_s0 + $0x100] sm:$0xff]  }
 0x15d   :  { %9651 = vmatmul.mubr.msk.bf16.vlgmr.msra.gmra.mrb[0].mxu1 %vm667_vm2, %v1634_v62  ;;  %v1641_v62 = vrot.slane %v11969_v54, 1  ;;  %v5265_v54 = vsel %vm4245_vm4, %v5262_v50, %v5264_v22 }
 0x15e   :  { %9654 = vmatprep.mubr.msk.bf16.mxu1 %vm667_vm2, %v1636_v42  ;;  %9735 = vmatpush3.bf16.msra.mxu1 %v2809_v33  ;;  %v1643_v42 = vrot.slane %v11982_v25, 1  ;;  %v12471_v25 = vld [vmem:[%s14295_s0 + $0xf0] sm:$0xff]  }
 0x15f   :  { %10937 = vmatprep.subr.msk.bf16.mxu1 %vm794_vm0, %v11107_v18  ;;  %10035 = vmatmul.mubr.msk.bf16.gmra.mrb[40].mxu0 %vm667_vm2, %v5257_v53  ;;  %v1642_v33 = vsel %vm1629_vm5, %v1639_v23, %v1641_v62  ;;  %v5266_v53 = vrot.slane %v12457_v11, 2  ;;  %v1645_v18 = vrot.slane %v11993_v30, 1  ;;  %v12479_v23 = vld [vmem:[%s14295_s0 + $0xf8] sm:$0xff]  }
 0x160   :  { %10038 = vmatprep.mubr.msk.bf16.mxu0 %vm667_vm2, %v5259_v28  ;;  %v1644_v28 = vsel %vm1629_vm5, %v1641_v62, %v1643_v42  ;;  %v1649_v62 = vrot.slane %v12017_v37, 1 }
 0x161   :  { %v5267_v49 = vsel %vm4245_vm4, %v5264_v22, %v5266_v53  ;;  %v1646_v50 = vsel %vm1629_vm5, %v1643_v42, %v1645_v18  ;;  %v11067_v42 = vld [vmem:[%s14295_s0 + $0x108] sm:$0xff]   ;;  %v1651_v22 = vrot.slane %v12030_v40, 1 }
 0x165   :  { %9655 = vmatmul.mubr.msk.bf16.gmra.mrb[4].mxu1 %vm667_vm2, %v1638_v39  ;;  %v5268_v39 = vrot.slane %v12471_v25, 2 }
 0x166   :  { %9658 = vmatprep.mubr.msk.bf16.mxu1 %vm667_vm2, %v1640_v34  ;;  %v5270_v34 = vrot.slane %v12479_v23, 2 }
 0x167   :  { %10039 = vmatmul.mubr.msk.bf16.gmra.mrb[44].mxu0 %vm667_vm2, %v5261_v8  ;;  %v1648_v8 = vsel %vm1629_vm5, %v1645_v18, %v1647_v46  ;;  %v5269_v30 = vsel %vm4245_vm4, %v5266_v53, %v5268_v39  ;;  %v1650_v53 = vsel %vm1629_vm5, %v1647_v46, %v1649_v62  ;;  %v1653_v18 = vrot.slane %v12041_v48, 1  ;;  %v11069_v46 = vld [vmem:[%s14295_s0 + $0x118] sm:$0xff]  }
 0x168   :  { %10042 = vmatprep.mubr.msk.bf16.mxu0 %vm667_vm2, %v5263_v59  ;;  %v5271_v59 = vsel %vm4245_vm4, %v5268_v39, %v5270_v34  ;;  %v1655_v39 = vrot.slane %v12061_v0, 1 }
 0x16d   :  { %9659 = vmatmul.mubr.msk.bf16.gmra.mrb[8].mxu1 %vm667_vm2, %v1642_v33  ;;  %v5272_v33 = vrot.slane %v11066_v19, 2  ;;  %v11070_v19 = vld [vmem:[%s14295_s0 + $0x120] sm:$0xff]  }
 0x16e   :  { %9662 = vmatprep.mubr.msk.bf16.mxu1 %vm667_vm2, %v1644_v28  ;;  %v5274_v28 = vrot.slane %v11067_v42, 2  ;;  %v1659_v42 = vrot.slane %v12085_v13, 1 }
 0x16f   :  { %10043 = vmatmul.mubr.msk.bf16.gmra.mrb[48].mxu0 %vm667_vm2, %v5265_v54  ;;  %v1652_v54 = vsel %vm1629_vm5, %v1649_v62, %v1651_v22  ;;  %v5273_v37 = vsel %vm4245_vm4, %v5270_v34, %v5272_v33  ;;  %v1654_v34 = vsel %vm1629_vm5, %v1651_v22, %v1653_v18  ;;  %v11071_v62 = vld [vmem:[%s14295_s0 + $0x128] sm:$0xff]   ;;  %v5280_v22 = vrot.slane %v11070_v19, 2 }
 0x170   :  { %10046 = vmatprep.mubr.msk.bf16.mxu0 %vm667_vm2, %v5267_v49  ;;  %v11068_v49 = vld [vmem:[%s14295_s0 + $0x110] sm:$0xff]   ;;  %v5275_v40 = vsel %vm4245_vm4, %v5272_v33, %v5274_v28  ;;  %v1667_v19 = vrot.slane %v12139_v35, 1  ;;  %v7747_v35 = vld [vmem:[%s14298_s3 + $0x158] sm:$0xff] }
 0x175   :  { %9663 = vmatmul.mubr.msk.bf16.gmra.mrb[12].mxu1 %vm667_vm2, %v1646_v50  ;;  %v5276_v50 = vrot.slane %v11068_v49, 2  ;;  %v11073_v49 = vld [vmem:[%s14295_s0 + $0x138] sm:$0xff]  }
 0x176   :  { %9666 = vmatprep.mubr.msk.bf16.mxu1 %vm667_vm2, %v1648_v8  ;;  %v5278_v8 = vrot.slane %v11069_v46, 2 }
 0x177   :  { %10047 = vmatmul.mubr.msk.bf16.gmra.mrb[52].mxu0 %vm667_vm2, %v5269_v30  ;;  %v1656_v30 = vsel %vm1629_vm5, %v1653_v18, %v1655_v39  ;;  %v5277_v48 = vsel %vm4245_vm4, %v5274_v28, %v5276_v50 }
 0x178   :  { %10050 = vmatprep.mubr.msk.bf16.mxu0 %vm667_vm2, %v5271_v59  ;;  %v5279_v0 = vsel %vm4245_vm4, %v5276_v50, %v5278_v8  ;;  %v1657_v59 = vrot.slane %v12072_v44, 1  ;;  %v5281_v44 = vsel %vm4245_vm4, %v5278_v8, %v5280_v22  ;;  %v11237_v50 = vmov 0  }
 0x179   :  { %10947 = vset.pattern.permute.xlu1 %v11237_v50  ;;  %10946 = vset.pattern.permute.xlu0 %v11237_v50  ;;  %v5896_v50 = vshrl.u32 %v12160_v9, 16 }
 0x17a   :  { %v1658_v33 = vsel %vm1629_vm5, %v1655_v39, %v1657_v59  ;;  %v1660_v28 = vsel %vm1629_vm5, %v1657_v59, %v1659_v42  ;;  %v5286_v39 = vrot.slane %v11073_v49, 2  ;;  %v7704_v59 = vld [vmem:[%s14298_s3] sm:$0xff]  ;;  %v7706_v49 = vld [vmem:[%s14298_s3 + $0x10] sm:$0xff] }
 0x17b   :  { %7790 = vperm.xlu0 %10946, %v7704_v59   ;;  %v5898_v59 = vrot.slane %v5896_v50, 2 }
 0x17d   :  { %9667 = vmatmul.mubr.msk.bf16.gmra.mrb[16].mxu1 %vm667_vm2, %v1650_v53  ;;  %v5282_v53 = vrot.slane %v11071_v62, 2 }
 0x17e   :  { %9670 = vmatprep.mubr.msk.bf16.mxu1 %vm667_vm2, %v1652_v54  ;;  %v11072_v54 = vld [vmem:[%s14295_s0 + $0x130] sm:$0xff]  }
 0x17f   :  { %10051 = vmatmul.mubr.msk.bf16.gmra.mrb[56].mxu0 %vm667_vm2, %v5273_v37  ;;  %v5283_v13 = vsel %vm4245_vm4, %v5280_v22, %v5282_v53  ;;  %v1661_v37 = vrot.slane %v12096_v27, 1  ;;  %v5284_v18 = vrot.slane %v11072_v54, 2  ;;  %v11077_v54 = vld [vmem:[%s14295_s0 + $0x158] sm:$0xff]  }
 0x180   :  { %10054 = vmatprep.mubr.msk.bf16.mxu0 %vm667_vm2, %v5275_v40  ;;  %v1663_v40 = vrot.slane %v12109_v24, 1  ;;  %v11074_v24 = vld [vmem:[%s14295_s0 + $0x140] sm:$0xff]  }
 0x181   :  { %v1662_v46 = vsel %vm1629_vm5, %v1659_v42, %v1661_v37  ;;  %v5285_v27 = vsel %vm4245_vm4, %v5282_v53, %v5284_v18  ;;  %v5287_v8 = vsel %vm4245_vm4, %v5284_v18, %v5286_v39  ;;  %v5288_v62 = vrot.slane %v11074_v24, 2 }
 0x183   :  { %v5289_v53 = vsel %vm4245_vm4, %v5286_v39, %v5288_v62  ;;  %v5888_v39 = vshrl.u32 %v12155_v43, 16 }
 0x185   :  { %9671 = vmatmul.mubr.msk.bf16.gmra.mrb[20].mxu1 %vm667_vm2, %v1654_v34  ;;  %v1664_v34 = vsel %vm1629_vm5, %v1661_v37, %v1663_v40  ;;  %v1671_v37 = vrot.slane %v12169_v31, 1  ;;  %v5891_v31 = vshll.u32 %v12155_v43, 16 }
 0x186   :  { %9674 = vmatprep.mubr.msk.bf16.mxu1 %vm667_vm2, %v1656_v30  ;;  %v1665_v30 = vrot.slane %v12120_v21, 1 }
 0x187   :  { %10055 = vmatmul.mubr.msk.bf16.gmra.mrb[60].mxu0 %vm667_vm2, %v5277_v48  ;;  %v11075_v48 = vld [vmem:[%s14295_s0 + $0x148] sm:$0xff]  }
 0x188   :  { %10058 = vmatprep.mubr.msk.bf16.mxu0 %vm667_vm2, %v5279_v0  ;;  %v7746_v0 = vld [vmem:[%s14298_s3 + $0x150] sm:$0xff]  ;;  %v1666_v21 = vsel %vm1629_vm5, %v1663_v40, %v1665_v30  ;;  %v5290_v42 = vrot.slane %v11075_v48, 2  ;;  %v1668_v22 = vsel %vm1629_vm5, %v1665_v30, %v1667_v19  ;;  %v1673_v48 = vrot.slane %v12182_v56, 1 }
 0x189   :  { %8000 = vperm.xlu1 %10947, %v7746_v0   ;;  %v5893_v0 = vrot.slane %v5891_v31, 3  ;;  %v7750_v56 = vld [vmem:[%s14298_s3 + $0x170] sm:$0xff]  ;;  %v11109_v31 = vld [vmem:[%s14295_s0 + $0xc0] sm:$0xff]  }
 0x18a   :  { %v1677_v50 = vrot.slane %v11109_v31, 1  ;;  %v5953_v31 = vshll.u32 %v12232_v10, 16 }
 0x18d   :  { %9675 = vmatmul.mubr.msk.bf16.gmra.mrb[24].mxu1 %vm667_vm2, %v1658_v33  ;;  %v7705_v33 = vld [vmem:[%s14298_s3 + $0x8] sm:$0xff]  ;;  %8005 = vperm.xlu1 %10947, %v7747_v35   ;;  %v7708_v35 = vld [vmem:[%s14298_s3 + $0x20] sm:$0xff] }
 0x18e   :  { %9678 = vmatprep.mubr.msk.bf16.mxu1 %vm667_vm2, %v1660_v28  ;;  %v1669_v28 = vrot.slane %v12150_v6, 1  ;;  %7795 = vperm.xlu0 %10946, %v7705_v33   ;;  %v7748_v6 = vld [vmem:[%s14298_s3 + $0x160] sm:$0xff] }
 0x18f   :  { %10059 = vmatmul.mubr.msk.bf16.gmra.mrb[64].mxu0 %vm667_vm2, %v5281_v44  ;;  %v11076_v44 = vld [vmem:[%s14295_s0 + $0x150] sm:$0xff]  }
 0x190   :  { %10062 = vmatprep.mubr.msk.bf16.mxu0 %vm667_vm2, %v5283_v13  ;;  %v5291_v13 = vsel %vm4245_vm4, %v5288_v62, %v5290_v42  ;;  %v1670_v40 = vsel %vm1629_vm5, %v1667_v19, %v1669_v28  ;;  %v5292_v18 = vrot.slane %v11076_v44, 2  ;;  %v1672_v24 = vsel %vm1629_vm5, %v1669_v28, %v1671_v37 }
 0x191   :  { %8010 = vperm.xlu1 %10947, %v7748_v6   ;;  %v5890_v19 = vrot.slane %v5888_v39, 2  ;;  %v5908_v28 = vshll.u32 %v12177_v14, 16  ;;  %v5917_v6 = vshll.u32 %v12190_v15, 16 }
 0x192   :  { %7800 = vperm.xlu0 %10946, %v7706_v49   ;;  %v5293_v30 = vsel %vm4245_vm4, %v5290_v42, %v5292_v18  ;;  %v7751_v49 = vld [vmem:[%s14298_s3 + $0x178] sm:$0xff] }
 0x193   :  { %v5894_v44 = vor.u32 %v5893_v0, %v5890_v19  ;;  %v5910_v39 = vrot.slane %v5908_v28, 3 }
 0x195   :  { %9679 = vmatmul.mubr.msk.bf16.gmra.mrb[28].mxu1 %vm667_vm2, %v1662_v46  ;;  %v5294_v46 = vrot.slane %v11077_v54, 2 }
 0x196   :  { %9682 = vmatprep.mubr.msk.bf16.mxu1 %vm667_vm2, %v1664_v34  ;;  %v5899_v34 = vshll.u32 %v12160_v9, 16  ;;  %v11078_v9 = vld [vmem:[%s14295_s0 + $0x160] ss:$0 sps:$4 sm:$0x33]  }
 0x197   :  { %10063 = vmatmul.mubr.msk.bf16.gmra.mrb[68].mxu0 %vm667_vm2, %v5285_v27  ;;  %v7749_v27 = vld [vmem:[%s14298_s3 + $0x168] sm:$0xff]  ;;  %v5295_v43 = vsel %vm4245_vm4, %v5292_v18, %v5294_v46  ;;  %v5296_v33 = vrot.slane %v11078_v9, 2  ;;  %v5926_v9 = vshll.u32 %v12202_v47, 16 }
 0x198   :  { %10066 = vmatprep.mubr.msk.bf16.mxu0 %vm667_vm2, %v5287_v8  ;;  %v7707_v8 = vld [vmem:[%s14298_s3 + $0x18] sm:$0xff]  ;;  %8015 = vperm.xlu1 %10947, %v7749_v27   ;;  %v5901_v62 = vrot.slane %v5899_v34, 3  ;;  %v5919_v27 = vrot.slane %v5917_v6, 3  ;;  %v7754_v6 = vld [vmem:[%s14298_s3 + $0x190] sm:$0xff] }
 0x199   :  { %7805 = vperm.xlu0 %10946, %v7707_v8   ;;  %v7752_v8 = vld [vmem:[%s14298_s3 + $0x180] sm:$0xff] }
 0x19a   :  { %v5902_v54 = vor.u32 %v5901_v62, %v5898_v59  ;;  %v5932_v59 = vshrl.u32 %v12212_v60, 16  ;;  %v5935_v62 = vshll.u32 %v12212_v60, 16  ;;  %v5928_v60 = vrot.slane %v5926_v9, 3  ;;  %v11114_v9 = vld [vmem:[%s14295_s0 + $0xe8] sm:$0xff]  }
 0x19c   :  { %8020 = vperm.xlu1 %10947, %v7750_v56  }
 0x19d   :  { %9683 = vmatmul.mubr.msk.bf16.gmra.mrb[32].mxu1 %vm667_vm2, %v1666_v21  ;;  %v11108_v21 = vld [vmem:[%s14295_s0 + $0xb8] sm:$0xff]   ;;  %7810 = vperm.xlu0 %10946, %v7708_v35  }
 0x19e   :  { %9686 = vmatprep.mubr.msk.bf16.mxu1 %vm667_vm2, %v1668_v22  ;;  %v1675_v42 = vrot.slane %v11108_v21, 1  ;;  %v1674_v22 = vsel %vm1629_vm5, %v1671_v37, %v1673_v48  ;;  %v7709_v37 = vld [vmem:[%s14298_s3 + $0x28] sm:$0xff]  ;;  %v7711_v35 = vld [vmem:[%s14298_s3 + $0x38] sm:$0xff] }
 0x19f   :  { %10067 = vmatmul.mubr.msk.bf16.gmra.mrb[72].mxu0 %vm667_vm2, %v5289_v53  ;;  %v5905_v53 = vshrl.u32 %v12177_v14, 16  ;;  %v5297_v14 = vsel %vm4245_vm4, %v5294_v46, %v5296_v33  ;;  %v7753_v21 = vld [vmem:[%s14298_s3 + $0x188] sm:$0xff] }
 0x1a0   :  { %10070 = vmatprep.mubr.msk.bf16.mxu0 %vm667_vm2, %v5291_v13  ;;  %v5914_v13 = vshrl.u32 %v12190_v15, 16  ;;  %8025 = vperm.xlu1 %10947, %v7751_v49   ;;  %v5903_v15 = vsel %vm5886_vm6, %v5894_v44, %v5902_v54  ;;  %v1678_v19 = vsel %vm1629_vm5, %v1675_v42, %v1677_v50  ;;  %v5934_v44 = vrot.slane %v5932_v59, 2  ;;  %v7712_v49 = vld [vmem:[%s14298_s3 + $0x40] sm:$0xff]  ;;  %v7714_v59 = vld [vmem:[%s14298_s3 + $0x50] sm:$0xff] }
 0x1a1   :  { %v5907_v18 = vrot.slane %v5905_v53, 2  ;;  %7815 = vperm.xlu0 %10946, %v7709_v37   ;;  %v11111_v53 = vld [vmem:[%s14295_s0 + $0xd0] sm:$0xff]   ;;  %v5941_v37 = vshrl.u32 %v12224_v61, 16 }
 0x1a2   :  { %v5916_v34 = vrot.slane %v5914_v13, 2  ;;  %v1681_v28 = vrot.slane %v11111_v53, 1  ;;  %v5937_v13 = vrot.slane %v5935_v62, 3  ;;  %v7715_v53 = vld [vmem:[%s14298_s3 + $0x58] sm:$0xff] }
 0x1a4   :  { %8030 = vperm.xlu1 %10947, %v7752_v8   ;;  %v5920_v0 = vor.u32 %v5919_v27, %v5916_v34  ;;  %v7755_v34 = vld [vmem:[%s14298_s3 + $0x198] sm:$0xff]  ;;  %v7713_v27 = vld [vmem:[%s14298_s3 + $0x48] sm:$0xff]  ;;  %v11113_v8 = vld [vmem:[%s14295_s0 + $0xe0] sm:$0xff]  }
 0x1a5   :  { %9687 = vmatmul.mubr.msk.bf16.gmra.mrb[36].mxu1 %vm667_vm2, %v1670_v40  ;;  %v1676_v40 = vsel %vm1629_vm5, %v1673_v48, %v1675_v42  ;;  %v5923_v48 = vshrl.u32 %v12202_v47, 16  ;;  %v7074_v42 = vsel %vm794_vm0, %v12300_v38, 0 }
 0x1a6   :  { %9690 = vmatprep.mubr.msk.bf16.mxu1 %vm667_vm2, %v1672_v24  ;;  %v11110_v24 = vld [vmem:[%s14295_s0 + $0xc8] sm:$0xff]  }
 0x1a7   :  { %10071 = vmatmul.mubr.msk.bf16.gmra.mrb[76].mxu0 %vm667_vm2, %v5293_v30  ;;  %v1679_v46 = vrot.slane %v11110_v24, 1  ;;  %v7710_v30 = vld [vmem:[%s14298_s3 + $0x30] sm:$0xff]  ;;  %v5943_v24 = vrot.slane %v5941_v37, 2 }
 0x1a8   :  { %10074 = vmatprep.mubr.msk.bf16.mxu0 %vm667_vm2, %v5295_v43  ;;  %v5911_v43 = vor.u32 %v5910_v39, %v5907_v18  ;;  %7820 = vperm.xlu0 %10946, %v7710_v30   ;;  %v5938_v39 = vor.u32 %v5937_v13, %v5934_v44  ;;  %v1685_v30 = vrot.slane %v11113_v8, 1  ;;  %v11115_v13 = vld [vmem:[%s14295_s0 + $0xf0] sm:$0xff]  }
 0x1a9   :  { %v1680_v56 = vsel %vm1629_vm5, %v1677_v50, %v1679_v46  ;;  %8035 = vperm.xlu1 %10947, %v7753_v21   ;;  %v1682_v18 = vsel %vm1629_vm5, %v1679_v46, %v1681_v28  ;;  %v5959_v21 = vshrl.u32 %v12244_v12, 16  ;;  %v7758_v37 = vld [vmem:[%s14298_s3 + $0x1b0] sm:$0xff] }
 0x1aa   :  { %v5912_v47 = vsel %vm5886_vm6, %v5902_v54, %v5911_v43  ;;  %v5921_v33 = vsel %vm5886_vm6, %v5911_v43, %v5920_v0  ;;  %v11112_v54 = vld [vmem:[%s14295_s0 + $0xd8] sm:$0xff]  }
 0x1ab   :  { %v1683_v38 = vrot.slane %v11112_v54, 1  ;;  %v1689_v54 = vrot.slane %v11115_v13, 1 }
 0x1ac   :  { %7825 = vperm.xlu0 %10946, %v7711_v35  }
 0x1ad   :  { %9691 = vmatmul.mubr.msk.bf16.gmra.mrb[40].mxu1 %vm667_vm2, %v1674_v22  ;;  %v5925_v22 = vrot.slane %v5923_v48, 2  ;;  %8040 = vperm.xlu1 %10947, %v7754_v6   ;;  %v1684_v50 = vsel %vm1629_vm5, %v1681_v28, %v1683_v38  ;;  %v5955_v48 = vrot.slane %v5953_v31, 3  ;;  %v1686_v35 = vsel %vm1629_vm5, %v1683_v38, %v1685_v30 }
 0x1ae   :  { %9694 = vmatprep.mubr.msk.bf16.mxu1 %vm667_vm2, %v1676_v40  ;;  %v5961_v28 = vrot.slane %v5959_v21, 2 }
 0x1af   :  { %10075 = vmatmul.mubr.msk.bf16.gmra.mrb[80].mxu0 %vm667_vm2, %v5297_v14  ;;  %v5929_v40 = vor.u32 %v5928_v60, %v5925_v22  ;;  %v5944_v14 = vshll.u32 %v12224_v61, 16  ;;  %v5971_v22 = vshll.u32 %v12252_v36, 16 }
 0x1b0   :  { %10080 = vmatprep.mubr.msk.bf16.mxu0 %vm667_vm2, %v5903_v15  ;;  %v5950_v15 = vshrl.u32 %v12232_v10, 16  ;;  %7830 = vperm.xlu0 %10946, %v7712_v49   ;;  %v11116_v49 = vld [vmem:[%s14295_s0 + $0xf8] sm:$0xff]  }
 0x1b1   :  { %v5930_v61 = vsel %vm5886_vm6, %v5920_v0, %v5929_v40  ;;  %v5946_v46 = vrot.slane %v5944_v14, 3  ;;  %v5939_v10 = vsel %vm5886_vm6, %v5929_v40, %v5938_v39  ;;  %8045 = vperm.xlu1 %10947, %v7755_v34   ;;  %v7756_v0 = vld [vmem:[%s14298_s3 + $0x1a0] sm:$0xff]  ;;  %v5973_v6 = vrot.slane %v5971_v22, 3 }
 0x1b2   :  { %v5952_v43 = vrot.slane %v5950_v15, 2  ;;  %v1691_v40 = vrot.slane %v11116_v49, 1  ;;  %v7716_v14 = vld [vmem:[%s14298_s3 + $0x60] sm:$0xff]  ;;  %v5980_v15 = vshll.u32 %v12264_v5, 16  ;;  %v5986_v34 = vshrl.u32 %v12272_v26, 16 }
 0x1b3   :  { %v5947_v62 = vor.u32 %v5946_v46, %v5943_v24  ;;  %v7759_v24 = vld [vmem:[%s14298_s3 + $0x1b8] sm:$0xff]  ;;  %v7717_v46 = vld [vmem:[%s14298_s3 + $0x68] sm:$0xff]  ;;  %v6004_v22 = vshrl.u32 %v12292_v4, 16 }
 0x1b4   :  { %7835 = vperm.xlu0 %10946, %v7713_v27   ;;  %v5989_v27 = vshll.u32 %v12272_v26, 16  ;;  %v5982_v8 = vrot.slane %v5980_v15, 3 }
 0x1b5   :  { %9695 = vmatmul.mubr.msk.bf16.gmra.mrb[44].mxu1 %vm667_vm2, %v1678_v19  ;;  %v1687_v19 = vrot.slane %v11114_v9, 1  ;;  %8050 = vperm.xlu1 %10947, %v7756_v0  }
 0x1b6   :  { %9698 = vmatprep.mubr.msk.bf16.mxu1 %vm667_vm2, %v1680_v56  ;;  %v5962_v56 = vshll.u32 %v12244_v12, 16  ;;  %v5948_v12 = vsel %vm5886_vm6, %v5938_v39, %v5947_v62  ;;  %v5977_v39 = vshrl.u32 %v12264_v5, 16  ;;  %v5991_v9 = vrot.slane %v5989_v27, 3 }
 0x1b7   :  { %10081 = vmatmul.mubr.msk.bf16.vlgmr.msra.gmra.mrb[0].mxu0 %vm667_vm2, %v5912_v47  ;;  %v5956_v47 = vor.u32 %v5955_v48, %v5952_v43  ;;  %v1688_v60 = vsel %vm1629_vm5, %v1685_v30, %v1687_v19  ;;  %v1690_v31 = vsel %vm1629_vm5, %v1687_v19, %v1689_v54  ;;  %v11117_v30 = vld [vmem:[%s14295_s0 + $0x100] sm:$0xff]   ;;  %v5988_v48 = vrot.slane %v5986_v34, 2  ;;  %v11118_v19 = vld [vmem:[%s14295_s0 + $0x108] sm:$0xff]  }
 0x1b8   :  { %10165 = vmatpush3.bf16.msra.mxu0 %v7074_v42  ;;  %10084 = vmatprep.mubr.msk.bf16.mxu0 %vm667_vm2, %v5921_v33  ;;  %v5968_v42 = vshrl.u32 %v12252_v36, 16  ;;  %v7757_v33 = vld [vmem:[%s14298_s3 + $0x1a8] sm:$0xff]  ;;  %v5964_v44 = vrot.slane %v5962_v56, 3  ;;  %v1693_v43 = vrot.slane %v11117_v30, 1  ;;  %v1695_v0 = vrot.slane %v11118_v19, 1  ;;  %v7722_v19 = vld [vmem:[%s14298_s3 + $0x90] sm:$0xff] }
 0x1b9   :  { %7840 = vperm.xlu0 %10946, %v7714_v59   ;;  %v5957_v36 = vsel %vm5886_vm6, %v5947_v62, %v5956_v47  ;;  %8055 = vperm.xlu1 %10947, %v7757_v33   ;;  %v7760_v59 = vld [vmem:[%s14298_s3 + $0x1c0] sm:$0xff]  ;;  %v7718_v62 = vld [vmem:[%s14298_s3 + $0x70] sm:$0xff]  ;;  %v5995_v56 = vshrl.u32 %v12284_v45, 16  ;;  %v6025_v34 = vshll.u32 %v12319_v32, 16 }
 0x1ba   :  { %v5970_v38 = vrot.slane %v5968_v42, 2  ;;  %v5992_v42 = vor.u32 %v5991_v9, %v5988_v48  ;;  %v1696_v33 = vsel %vm1629_vm5, %v1693_v43, %v1695_v0  ;;  %v7764_v9 = vld [vmem:[%s14298_s3 + $0x1e0] sm:$0xff] }
 0x1bb   :  { %v6027_v30 = vrot.slane %v6025_v34, 3 }
 0x1bd   :  { %9699 = vmatmul.mubr.msk.bf16.gmra.mrb[48].mxu1 %vm667_vm2, %v1682_v18  ;;  %7845 = vperm.xlu0 %10946, %v7715_v53   ;;  %v5965_v18 = vor.u32 %v5964_v44, %v5961_v28  ;;  %v7761_v53 = vld [vmem:[%s14298_s3 + $0x1c8] sm:$0xff]  ;;  %v5997_v28 = vrot.slane %v5995_v56, 2 }
 0x1be   :  { %9702 = vmatprep.mubr.msk.bf16.mxu1 %vm667_vm2, %v1684_v50  ;;  %v5974_v50 = vor.u32 %v5973_v6, %v5970_v38  ;;  %8060 = vperm.xlu1 %10947, %v7758_v37   ;;  %v11120_v6 = vld [vmem:[%s14295_s0 + $0x118] sm:$0xff]   ;;  %v7720_v37 = vld [vmem:[%s14298_s3 + $0x80] sm:$0xff] }
 0x1bf   :  { %10085 = vmatmul.mubr.msk.bf16.gmra.mrb[4].mxu0 %vm667_vm2, %v5930_v61  ;;  %v1692_v61 = vsel %vm1629_vm5, %v1689_v54, %v1691_v40  ;;  %v5966_v5 = vsel %vm5886_vm6, %v5956_v47, %v5965_v18  ;;  %v1694_v47 = vsel %vm1629_vm5, %v1691_v40, %v1693_v43  ;;  %v6006_v54 = vrot.slane %v6004_v22, 2  ;;  %v7762_v40 = vld [vmem:[%s14298_s3 + $0x1d0] sm:$0xff]  ;;  %v11122_v43 = vld [vmem:[%s14295_s0 + $0x128] sm:$0xff]  }
 0x1c0   :  { %10088 = vmatprep.mubr.msk.bf16.mxu0 %vm667_vm2, %v5939_v10  ;;  %v5979_v10 = vrot.slane %v5977_v39, 2  ;;  %v5975_v26 = vsel %vm5886_vm6, %v5965_v18, %v5974_v50  ;;  %v1699_v49 = vrot.slane %v11120_v6, 1  ;;  %v6013_v18 = vshrl.u32 %v12311_v52, 16  ;;  %v7765_v22 = vld [vmem:[%s14298_s3 + $0x1e8] sm:$0xff] }
 0x1c1   :  { %7850 = vperm.xlu0 %10946, %v7716_v14   ;;  %v6016_v39 = vshll.u32 %v12311_v52, 16  ;;  %v1703_v48 = vrot.slane %v11122_v43, 1  ;;  %v6049_v6 = vshrl.u32 %v12351_v55, 16 }
 0x1c2   :  { %8065 = vperm.xlu1 %10947, %v7759_v24   ;;  %v5983_v21 = vor.u32 %v5982_v8, %v5979_v10  ;;  %v7721_v24 = vld [vmem:[%s14298_s3 + $0x88] sm:$0xff]  ;;  %v11121_v10 = vld [vmem:[%s14295_s0 + $0x120] sm:$0xff]  }
 0x1c3   :  { %v1701_v8 = vrot.slane %v11121_v10, 1  ;;  %v7726_v10 = vld [vmem:[%s14298_s3 + $0xb0] sm:$0xff] }
 0x1c5   :  { %9703 = vmatmul.mubr.msk.bf16.gmra.mrb[52].mxu1 %vm667_vm2, %v1686_v35  ;;  %7855 = vperm.xlu0 %10946, %v7717_v46   ;;  %v5998_v35 = vshll.u32 %v12284_v45, 16  ;;  %v5984_v45 = vsel %vm5886_vm6, %v5974_v50, %v5983_v21  ;;  %v6022_v50 = vshrl.u32 %v12319_v32, 16  ;;  %v6015_v46 = vrot.slane %v6013_v18, 2 }
 0x1c6   :  { %9706 = vmatprep.mubr.msk.bf16.mxu1 %vm667_vm2, %v1688_v60  ;;  %v6007_v60 = vshll.u32 %v12292_v4, 16  ;;  %8070 = vperm.xlu1 %10947, %v7760_v59   ;;  %v5993_v4 = vsel %vm5886_vm6, %v5983_v21, %v5992_v42  ;;  %v6031_v59 = vshrl.u32 %v12331_v63, 16  ;;  %v1702_v21 = vsel %vm1629_vm5, %v1699_v49, %v1701_v8 }
 0x1c7   :  { %10089 = vmatmul.mubr.msk.bf16.gmra.mrb[8].mxu0 %vm667_vm2, %v5948_v12  ;;  %v7719_v12 = vld [vmem:[%s14298_s3 + $0x78] sm:$0xff]  ;;  %v6000_v44 = vrot.slane %v5998_v35, 3  ;;  %v6040_v35 = vshrl.u32 %v12339_v41, 16  ;;  %v6061_v18 = vshll.u32 %v12359_v2, 16 }
 0x1c8   :  { %10092 = vmatprep.mubr.msk.bf16.mxu0 %vm667_vm2, %v5957_v36  ;;  %v11119_v36 = vld [vmem:[%s14295_s0 + $0x110] sm:$0xff]   ;;  %v6009_v38 = vrot.slane %v6007_v60, 3  ;;  %v7723_v60 = vld [vmem:[%s14298_s3 + $0x98] sm:$0xff] }
 0x1c9   :  { %7860 = vperm.xlu0 %10946, %v7718_v62   ;;  %v1697_v13 = vrot.slane %v11119_v36, 1  ;;  %v6001_v14 = vor.u32 %v6000_v44, %v5997_v28  ;;  %v6034_v62 = vshll.u32 %v12331_v63, 16  ;;  %v6042_v28 = vrot.slane %v6040_v35, 2  ;;  %v11127_v35 = vld [vmem:[%s14295_s0 + $0x150] ss:$0 sps:$4 sm:$0x11]  }
 0x1ca   :  { %8075 = vperm.xlu1 %10947, %v7761_v53  }
 0x1cb   :  { %v1698_v15 = vsel %vm1629_vm5, %v1695_v0, %v1697_v13  ;;  %v1700_v27 = vsel %vm1629_vm5, %v1697_v13, %v1699_v49  ;;  %v6002_v52 = vsel %vm5886_vm6, %v5992_v42, %v6001_v14  ;;  %v1704_v42 = vsel %vm1629_vm5, %v1701_v8, %v1703_v48  ;;  %v7766_v13 = vld [vmem:[%s14298_s3 + $0x1f0] sm:$0xff] }
 0x1cc   :  { %v6036_v53 = vrot.slane %v6034_v62, 3  ;;  %v6052_v49 = vshll.u32 %v12351_v55, 16  ;;  %v7727_v62 = vld [vmem:[%s14298_s3 + $0xb8] sm:$0xff] }
 0x1cd   :  { %9707 = vmatmul.mubr.msk.bf16.gmra.mrb[56].mxu1 %vm667_vm2, %v1690_v31  ;;  %7865 = vperm.xlu0 %10946, %v7719_v12   ;;  %v6010_v31 = vor.u32 %v6009_v38, %v6006_v54  ;;  %v11123_v12 = vld [vmem:[%s14295_s0 + $0x130] sm:$0xff]   ;;  %v7724_v54 = vld [vmem:[%s14298_s3 + $0xa0] sm:$0xff] }
 0x1ce   :  { %9710 = vmatprep.mubr.msk.bf16.mxu1 %vm667_vm2, %v1692_v61  ;;  %8080 = vperm.xlu1 %10947, %v7762_v40   ;;  %v7763_v61 = vld [vmem:[%s14298_s3 + $0x1d8] sm:$0xff]  ;;  %v6054_v34 = vrot.slane %v6052_v49, 3 }
 0x1cf   :  { %10093 = vmatmul.mubr.msk.bf16.gmra.mrb[12].mxu0 %vm667_vm2, %v5966_v5  ;;  %v6018_v5 = vrot.slane %v6016_v39, 3  ;;  %v6011_v32 = vsel %vm5886_vm6, %v6001_v14, %v6010_v31  ;;  %v6058_v14 = vshrl.u32 %v12359_v2, 16 }
 0x1d0   :  { %10096 = vmatprep.mubr.msk.bf16.mxu0 %vm667_vm2, %v5975_v26  ;;  %v6024_v26 = vrot.slane %v6022_v50, 2  ;;  %v6051_v50 = vrot.slane %v6049_v6, 2 }
 0x1d1   :  { %7870 = vperm.xlu0 %10946, %v7720_v37   ;;  %v6019_v0 = vor.u32 %v6018_v5, %v6015_v46  ;;  %v11126_v46 = vld [vmem:[%s14295_s0 + $0x148] sm:$0xff]  }
 0x1d2   :  { %8085 = vperm.xlu1 %10947, %v7763_v61   ;;  %v6028_v56 = vor.u32 %v6027_v30, %v6024_v26  ;;  %v1711_v5 = vrot.slane %v11126_v46, 1  ;;  %v6055_v8 = vor.u32 %v6054_v34, %v6051_v50  ;;  %v6067_v26 = vshrl.u32 %v12377_v20, 16 }
 0x1d3   :  { %v6020_v63 = vsel %vm5886_vm6, %v6010_v31, %v6019_v0  ;;  %v7725_v31 = vld [vmem:[%s14298_s3 + $0xa8] sm:$0xff]  ;;  %v6070_v30 = vshll.u32 %v12377_v20, 16  ;;  %v6103_v34 = vshrl.u32 %v12423_v58, 16 }
 0x1d5   :  { %9711 = vmatmul.mubr.msk.bf16.gmra.mrb[60].mxu1 %vm667_vm2, %v1694_v47  ;;  %7875 = vperm.xlu0 %10946, %v7721_v24   ;;  %v6043_v47 = vshll.u32 %v12339_v41, 16  ;;  %v6029_v41 = vsel %vm5886_vm6, %v6019_v0, %v6028_v56  ;;  %v6060_v24 = vrot.slane %v6058_v14, 2 }
 0x1d6   :  { %9714 = vmatprep.mubr.msk.bf16.mxu1 %vm667_vm2, %v1696_v33  ;;  %8090 = vperm.xlu1 %10947, %v7764_v9   ;;  %v6033_v33 = vrot.slane %v6031_v59, 2  ;;  %v6076_v9 = vshrl.u32 %v12385_v17, 16  ;;  %v7769_v59 = vld [vmem:[%s14298_s3 + $0x208] sm:$0xff] }
 0x1d7   :  { %10097 = vmatmul.mubr.msk.bf16.gmra.mrb[16].mxu0 %vm667_vm2, %v5984_v45  ;;  %v1705_v45 = vrot.slane %v11123_v12, 1  ;;  %v6045_v44 = vrot.slane %v6043_v47, 3  ;;  %v1713_v47 = vrot.slane %v11127_v35, 1  ;;  %v6133_v35 = vshll.u32 %v12457_v11, 16 }
 0x1d8   :  { %10100 = vmatprep.mubr.msk.bf16.mxu0 %vm667_vm2, %v5993_v4  ;;  %v11124_v4 = vld [vmem:[%s14295_s0 + $0x138] sm:$0xff]   ;;  %v6037_v38 = vor.u32 %v6036_v53, %v6033_v33  ;;  %v7770_v53 = vld [vmem:[%s14298_s3 + $0x210] sm:$0xff] }
 0x1d9   :  { %7880 = vperm.xlu0 %10946, %v7722_v19   ;;  %v1707_v36 = vrot.slane %v11124_v4, 1  ;;  %v1706_v40 = vsel %vm1629_vm5, %v1703_v48, %v1705_v45  ;;  %v6046_v37 = vor.u32 %v6045_v44, %v6042_v28  ;;  %v6079_v19 = vshll.u32 %v12385_v17, 16 }
 0x1da   :  { %8095 = vperm.xlu1 %10947, %v7765_v22   ;;  %v6038_v55 = vsel %vm5886_vm6, %v6028_v56, %v6037_v38  ;;  %v6072_v56 = vrot.slane %v6070_v30, 3  ;;  %v1714_v28 = vsel %vm1629_vm5, %v1711_v5, %v1713_v47  ;;  %v6094_v4 = vshrl.u32 %v12407_v1, 16 }
 0x1db   :  { %v1708_v39 = vsel %vm1629_vm5, %v1705_v45, %v1707_v36  ;;  %v6047_v2 = vsel %vm5886_vm6, %v6037_v38, %v6046_v37  ;;  %v6056_v20 = vsel %vm5886_vm6, %v6046_v37, %v6055_v8  ;;  %v6081_v22 = vrot.slane %v6079_v19, 3  ;;  %v7729_v38 = vld [vmem:[%s14298_s3 + $0xc8] sm:$0xff] }
 0x1dc   :  { %v6088_v45 = vshll.u32 %v12399_v7, 16  ;;  %v6096_v14 = vrot.slane %v6094_v4, 2 }
 0x1dd   :  { %9715 = vmatmul.mubr.msk.bf16.gmra.mrb[64].mxu1 %vm667_vm2, %v1698_v15  ;;  %7885 = vperm.xlu0 %10946, %v7723_v60   ;;  %v7767_v15 = vld [vmem:[%s14298_s3 + $0x1f8] sm:$0xff]  ;;  %v2597_v60 = vrot.slane %v11316_v16, 1  ;;  %v6085_v16 = vshrl.u32 %v12399_v7, 16 }
 0x1de   :  { %9718 = vmatprep.mubr.msk.bf16.mxu1 %vm667_vm2, %v1700_v27  ;;  %8100 = vperm.xlu1 %10947, %v7766_v13   ;;  %v11125_v27 = vld [vmem:[%s14295_s0 + $0x140] sm:$0xff]   ;;  %v6090_v49 = vrot.slane %v6088_v45, 3 }
 0x1df   :  { %10101 = vmatmul.mubr.msk.bf16.gmra.mrb[20].mxu0 %vm667_vm2, %v6002_v52  ;;  %v1709_v61 = vrot.slane %v11125_v27, 1  ;;  %v6063_v52 = vrot.slane %v6061_v18, 3  ;;  %v6087_v6 = vrot.slane %v6085_v16, 2  ;;  %v11134_v16 = vld [vmem:[%s14295_s0 + $0x40] sm:$0xff]  }
 0x1e0   :  { %10104 = vmatprep.mubr.msk.bf16.mxu0 %vm667_vm2, %v6011_v32  ;;  %v7768_v32 = vld [vmem:[%s14298_s3 + $0x200] sm:$0xff]  ;;  %v2610_v45 = vrot.slane %v11134_v16, 1 }
 0x1e1   :  { %7890 = vperm.xlu0 %10946, %v7724_v54   ;;  %v1710_v43 = vsel %vm1629_vm5, %v1707_v36, %v1709_v61  ;;  %v6064_v48 = vor.u32 %v6063_v52, %v6060_v24  ;;  %v1712_v0 = vsel %vm1629_vm5, %v1709_v61, %v1711_v5  ;;  %v6097_v36 = vshll.u32 %v12407_v1, 16  ;;  %v7771_v54 = vld [vmem:[%s14298_s3 + $0x218] sm:$0xff]  ;;  %v7773_v5 = vld [vmem:[%s14298_s3 + $0x228] sm:$0xff] }
 0x1e2   :  { %8105 = vperm.xlu1 %10947, %v7767_v15   ;;  %v6091_v50 = vor.u32 %v6090_v49, %v6087_v6  ;;  %v6112_v24 = vshrl.u32 %v12431_v57, 16  ;;  %v6115_v52 = vshll.u32 %v12431_v57, 16  ;;  %v6151_v6 = vshll.u32 %v12479_v23, 16 }
 0x1e3   :  { %v6065_v17 = vsel %vm5886_vm6, %v6055_v8, %v6064_v48  ;;  %v6099_v18 = vrot.slane %v6097_v36, 3  ;;  %v6139_v36 = vshrl.u32 %v12471_v25, 16 }
 0x1e5   :  { %9719 = vmatmul.mubr.msk.bf16.gmra.mrb[68].mxu1 %vm667_vm2, %v1702_v21  ;;  %7895 = vperm.xlu0 %10946, %v7725_v31   ;;  %v6069_v21 = vrot.slane %v6067_v26, 2  ;;  %v7772_v31 = vld [vmem:[%s14298_s3 + $0x220] sm:$0xff]  ;;  %v6100_v61 = vor.u32 %v6099_v18, %v6096_v14  ;;  %v11131_v26 = vld [vmem:[%s14295_s0 + $0x28] sm:$0xff]  }
 0x1e6   :  { %9722 = vmatprep.mubr.msk.bf16.mxu1 %vm667_vm2, %v1704_v42  ;;  %8110 = vperm.xlu1 %10947, %v7768_v32   ;;  %v6078_v42 = vrot.slane %v6076_v9, 2  ;;  %v7731_v32 = vld [vmem:[%s14298_s3 + $0xd8] sm:$0xff]  ;;  %v2604_v30 = vrot.slane %v11131_v26, 1  ;;  %v11132_v9 = vld [vmem:[%s14295_s0 + $0x30] sm:$0xff]   ;;  %v11135_v18 = vld [vmem:[%s14295_s0 + $0x48] sm:$0xff]  }
 0x1e7   :  { %10105 = vmatmul.mubr.msk.bf16.gmra.mrb[24].mxu0 %vm667_vm2, %v6020_v63  ;;  %v11128_v63 = vld [vmem:[%s14295_s0 + $0x10] sm:$0xff]   ;;  %v6073_v12 = vor.u32 %v6072_v56, %v6069_v21  ;;  %v6101_v57 = vsel %vm5886_vm6, %v6091_v50, %v6100_v61  ;;  %v2606_v19 = vrot.slane %v11132_v9, 1  ;;  %v7737_v26 = vld [vmem:[%s14298_s3 + $0x108] sm:$0xff] }
 0x1e8   :  { %10108 = vmatprep.mubr.msk.bf16.mxu0 %vm667_vm2, %v6029_v41  ;;  %v2598_v33 = vrot.slane %v11128_v63, 1  ;;  %v7728_v41 = vld [vmem:[%s14298_s3 + $0xc0] sm:$0xff]  ;;  %v6082_v44 = vor.u32 %v6081_v22, %v6078_v42  ;;  %v7775_v42 = vld [vmem:[%s14298_s3 + $0x238] sm:$0xff]  ;;  %v7733_v22 = vld [vmem:[%s14298_s3 + $0xe8] sm:$0xff] }
 0x1e9   :  { %7900 = vperm.xlu0 %10946, %v7726_v10   ;;  %v6074_v7 = vsel %vm5886_vm6, %v6064_v48, %v6073_v12  ;;  %v6105_v10 = vrot.slane %v6103_v34, 2  ;;  %v6117_v48 = vrot.slane %v6115_v52, 3  ;;  %v2607_v47 = vsel %vm1629_vm5, %v2604_v30, %v2606_v19  ;;  %v7778_v34 = vld [vmem:[%s14298_s3 + $0x250] sm:$0xff] }
 0x1ea   :  { %8115 = vperm.xlu1 %10947, %v7769_v59   ;;  %v2599_v13 = vsel %vm1629_vm5, %v2597_v60, %v2598_v33  ;;  %v6083_v1 = vsel %vm5886_vm6, %v6073_v12, %v6082_v44  ;;  %v7732_v59 = vld [vmem:[%s14298_s3 + $0xe0] sm:$0xff]  ;;  %v6135_v12 = vrot.slane %v6133_v35, 3  ;;  %v13098_v35 = vld [vmem:[%s14295_s0 + $0x110] sm:$0xff]  }
 0x1ed   :  { %9723 = vmatmul.mubr.msk.bf16.gmra.mrb[72].mxu1 %vm667_vm2, %v1706_v40  ;;  %7905 = vperm.xlu0 %10946, %v7727_v62   ;;  %v11129_v40 = vld [vmem:[%s14295_s0 + $0x18] sm:$0xff]   ;;  %v6121_v62 = vshrl.u32 %v12449_v51, 16 }
 0x1ee   :  { %9726 = vmatprep.mubr.msk.bf16.mxu1 %vm667_vm2, %v1708_v39  ;;  %8120 = vperm.xlu1 %10947, %v7770_v53   ;;  %v2600_v37 = vrot.slane %v11129_v40, 1  ;;  %v11130_v39 = vld [vmem:[%s14295_s0 + $0x20] sm:$0xff]   ;;  %v7735_v40 = vld [vmem:[%s14298_s3 + $0xf8] sm:$0xff] }
 0x1ef   :  { %10109 = vmatmul.mubr.msk.bf16.gmra.mrb[28].mxu0 %vm667_vm2, %v6038_v55  ;;  %v2602_v15 = vrot.slane %v11130_v39, 1  ;;  %v7730_v55 = vld [vmem:[%s14298_s3 + $0xd0] sm:$0xff]  ;;  %v6123_v60 = vrot.slane %v6121_v62, 2  ;;  %v2612_v39 = vrot.slane %v11135_v18, 1  ;;  %v11140_v62 = vld [vmem:[%s14295_s0 + $0x60] sm:$0xff]  }
 0x1f0   :  { %10112 = vmatprep.mubr.msk.bf16.mxu0 %vm667_vm2, %v6047_v2  ;;  %v6106_v2 = vshll.u32 %v12423_v58, 16  ;;  %v2601_v27 = vsel %vm1629_vm5, %v2598_v33, %v2600_v37  ;;  %v6092_v58 = vsel %vm5886_vm6, %v6082_v44, %v6091_v50  ;;  %v11133_v33 = vld [vmem:[%s14295_s0 + $0x38] sm:$0xff]   ;;  %v7734_v44 = vld [vmem:[%s14298_s3 + $0xf0] sm:$0xff] }
 0x1f1   :  { %7910 = vperm.xlu0 %10946, %v7728_v41   ;;  %v2603_v46 = vsel %vm1629_vm5, %v2600_v37, %v2602_v15  ;;  %v2605_v21 = vsel %vm1629_vm5, %v2602_v15, %v2604_v30  ;;  %v2608_v53 = vrot.slane %v11133_v33, 1  ;;  %v6141_v37 = vrot.slane %v6139_v36, 2 }
 0x1f2   :  { %8125 = vperm.xlu1 %10947, %v7771_v54   ;;  %v6108_v8 = vrot.slane %v6106_v2, 3  ;;  %v7736_v2 = vld [vmem:[%s14298_s3 + $0x100] sm:$0xff] }
 0x1f3   :  { %v2609_v54 = vsel %vm1629_vm5, %v2606_v19, %v2608_v53  ;;  %v2611_v49 = vsel %vm1629_vm5, %v2608_v53, %v2610_v45  ;;  %v11139_v19 = vld [vmem:[%s14295_s0 + $0x58] sm:$0xff]   ;;  %v7781_v53 = vld [vmem:[%s14298_s3 + $0x268] sm:$0xff] }
 0x1f5   :  { %9727 = vmatmul.mubr.msk.bf16.gmra.mrb[76].mxu1 %vm667_vm2, %v1710_v43  ;;  %7915 = vperm.xlu0 %10946, %v7729_v38   ;;  %v6114_v43 = vrot.slane %v6112_v24, 2 }
 0x1f6   :  { %9730 = vmatprep.mubr.msk.bf16.mxu1 %vm667_vm2, %v1712_v0  ;;  %8130 = vperm.xlu1 %10947, %v7772_v31   ;;  %v7774_v0 = vld [vmem:[%s14298_s3 + $0x230] sm:$0xff]  ;;  %v6153_v31 = vrot.slane %v6151_v6, 3  ;;  %v7740_v6 = vld [vmem:[%s14298_s3 + $0x120] sm:$0xff] }
 0x1f7   :  { %10113 = vmatmul.mubr.msk.bf16.gmra.mrb[32].mxu0 %vm667_vm2, %v6056_v20  ;;  %v6124_v20 = vshll.u32 %v12449_v51, 16  ;;  %v6118_v56 = vor.u32 %v6117_v48, %v6114_v43 }
 0x1f8   :  { %10116 = vmatprep.mubr.msk.bf16.mxu0 %vm667_vm2, %v6065_v17  ;;  %v6130_v17 = vshrl.u32 %v12457_v11, 16 }
 0x1f9   :  { %7920 = vperm.xlu0 %10946, %v7730_v55   ;;  %v6126_v63 = vrot.slane %v6124_v20, 3  ;;  %v11136_v55 = vld [vmem:[%s14295_s0 + $0x50] sm:$0xff]   ;;  %v2618_v20 = vrot.slane %v11140_v62, 1 }
 0x1fa   :  { %8135 = vperm.xlu1 %10947, %v7773_v5   ;;  %v6132_v41 = vrot.slane %v6130_v17, 2  ;;  %v2614_v50 = vrot.slane %v11136_v55, 1  ;;  %v7741_v55 = vld [vmem:[%s14298_s3 + $0x128] sm:$0xff] }
 0x1fb   :  { %v6127_v4 = vor.u32 %v6126_v63, %v6123_v60  ;;  %v13106_v60 = vld [vmem:[%s14295_s0 + $0x118] sm:$0xff]  }
 0x1fc   :  { %v6136_v38 = vor.u32 %v6135_v12, %v6132_v41  ;;  %v6184_v63 = vshrl.u32 %v13106_v60, 16  ;;  %v7739_v41 = vld [vmem:[%s14298_s3 + $0x118] sm:$0xff] }
 0x1fd   :  { %9731 = vmatmul.mubr.msk.bf16.gmra.mrb[80].mxu1 %vm667_vm2, %v1714_v28  ;;  %7925 = vperm.xlu0 %10946, %v7731_v32   ;;  %v7776_v28 = vld [vmem:[%s14298_s3 + $0x240] sm:$0xff]  ;;  %v13066_v32 = vld [vmem:[%s14295_s0 + $0x108] sm:$0xff]  }
 0x1fe   :  { %9736 = vmatprep.mubr.msk.bf16.mxu1 %vm667_vm2, %v2599_v13  ;;  %8140 = vperm.xlu1 %10947, %v7774_v0   ;;  %v6142_v13 = vshll.u32 %v12471_v25, 16  ;;  %v6128_v25 = vsel %vm5886_vm6, %v6118_v56, %v6127_v4  ;;  %v2616_v0 = vrot.slane %v11139_v19, 1  ;;  %v6186_v36 = vrot.slane %v6184_v63, 2 }
 0x1ff   :  { %10117 = vmatmul.mubr.msk.bf16.gmra.mrb[36].mxu0 %vm667_vm2, %v6074_v7  ;;  %v6148_v7 = vshrl.u32 %v12479_v23, 16  ;;  %v6137_v23 = vsel %vm5886_vm6, %v6127_v4, %v6136_v38 }
 0x200   :  { %10120 = vmatprep.mubr.msk.bf16.mxu0 %vm667_vm2, %v6083_v1  ;;  %v7777_v1 = vld [vmem:[%s14298_s3 + $0x248] sm:$0xff]  ;;  %v6144_v14 = vrot.slane %v6142_v13, 3  ;;  %v2619_v33 = vsel %vm1629_vm5, %v2616_v0, %v2618_v20 }
 0x201   :  { %7930 = vperm.xlu0 %10946, %v7732_v59   ;;  %v6150_v15 = vrot.slane %v6148_v7, 2  ;;  %v7782_v7 = vld [vmem:[%s14298_s3 + $0x270] sm:$0xff] }
 0x202   :  { %8145 = vperm.xlu1 %10947, %v7775_v42   ;;  %v6178_v42 = vshll.u32 %v13098_v35, 16 }
 0x203   :  { %v6154_v5 = vor.u32 %v6153_v31, %v6150_v15  ;;  %v7783_v31 = vld [vmem:[%s14298_s3 + $0x278] sm:$0xff] }
 0x205   :  { %9737 = vmatmul.mubr.msk.bf16.vlgmr.msra.gmra.mrb[0].mxu1 %vm667_vm2, %v2601_v27  ;;  %7935 = vperm.xlu0 %10946, %v7733_v22   ;;  %v6145_v27 = vor.u32 %v6144_v14, %v6141_v37  ;;  %v2617_v22 = vsel %vm1629_vm5, %v2614_v50, %v2616_v0  ;;  %v13186_v0 = vld [vmem:[%s14295_s0 + $0x138] sm:$0xff]  }
 0x206   :  { %9740 = vmatprep.mubr.msk.bf16.mxu1 %vm667_vm2, %v2603_v46  ;;  %10259 = vmatpush3.bf16.msra.mxu1 %v11288_v3  ;;  %v6109_v3 = vor.u32 %v6108_v8, %v6105_v10  ;;  %v2613_v46 = vsel %vm1629_vm5, %v2610_v45, %v2612_v39  ;;  %v6169_v10 = vshll.u32 %v13066_v32, 16  ;;  %v2615_v8 = vsel %vm1629_vm5, %v2612_v39, %v2614_v50 }
 0x207   :  { %10121 = vmatmul.mubr.msk.bf16.gmra.mrb[40].mxu0 %vm667_vm2, %v6092_v58  ;;  %8150 = vperm.xlu1 %10947, %v7776_v28   ;;  %v6166_v58 = vshrl.u32 %v13066_v32, 16  ;;  %v6146_v30 = vsel %vm5886_vm6, %v6136_v38, %v6145_v27  ;;  %v6155_v9 = vsel %vm5886_vm6, %v6145_v27, %v6154_v5  ;;  %v6180_v45 = vrot.slane %v6178_v42, 3 }
 0x208   :  { %10124 = vmatprep.mubr.msk.bf16.mxu0 %vm667_vm2, %v6101_v57  ;;  %v6110_v51 = vsel %vm5886_vm6, %v6100_v61, %v6109_v3  ;;  %v6119_v11 = vsel %vm5886_vm6, %v6109_v3, %v6118_v56  ;;  %v13058_v61 = vld [vmem:[%s14295_s0 + $0x100] sm:$0xff]   ;;  %v7779_v57 = vld [vmem:[%s14298_s3 + $0x258] sm:$0xff]  ;;  %v6171_v3 = vrot.slane %v6169_v10, 3  ;;  %v7738_v56 = vld [vmem:[%s14298_s3 + $0x110] sm:$0xff] }
 0x209   :  { %7940 = vperm.xlu0 %10946, %v7734_v44   ;;  %v6157_v24 = vshrl.u32 %v13058_v61, 16  ;;  %v6160_v52 = vshll.u32 %v13058_v61, 16  ;;  %v6168_v59 = vrot.slane %v6166_v58, 2  ;;  %v11143_v44 = vld [vmem:[%s14295_s0 + $0x68] sm:$0xff]   ;;  %v11148_v58 = vld [vmem:[%s14295_s0 + $0x80] sm:$0xff]  }
 0x20a   :  { %v2620_v4 = vrot.slane %v11143_v44, 1  ;;  %v2626_v10 = vrot.slane %v11148_v58, 1 }
 0x20b   :  { %8155 = vperm.xlu1 %10947, %v7777_v1   ;;  %v6159_v43 = vrot.slane %v6157_v24, 2  ;;  %v6162_v48 = vrot.slane %v6160_v52, 3  ;;  %v13138_v1 = vld [vmem:[%s14295_s0 + $0x120] sm:$0xff]   ;;  %v11147_v24 = vld [vmem:[%s14295_s0 + $0x78] sm:$0xff]  }
 0x20c   :  { %v2621_v37 = vsel %vm1629_vm5, %v2618_v20, %v2620_v4  ;;  %v2624_v52 = vrot.slane %v11147_v24, 1  ;;  %v7785_v20 = vld [vmem:[%s14298_s3 + $0x288] sm:$0xff] }
 0x20d   :  { %9741 = vmatmul.mubr.msk.bf16.gmra.mrb[4].mxu1 %vm667_vm2, %v2605_v21  ;;  %7945 = vperm.xlu0 %10946, %v7735_v40   ;;  %v7780_v21 = vld [vmem:[%s14298_s3 + $0x260] sm:$0xff]  ;;  %v6163_v17 = vor.u32 %v6162_v48, %v6159_v43  ;;  %v6193_v40 = vshrl.u32 %v13138_v1, 16 }
 0x20e   :  { %9744 = vmatprep.mubr.msk.bf16.mxu1 %vm667_vm2, %v2607_v47  ;;  %v6175_v47 = vshrl.u32 %v13098_v35, 16  ;;  %v2627_v62 = vsel %vm1629_vm5, %v2624_v52, %v2626_v10 }
 0x20f   :  { %10125 = vmatmul.mubr.msk.bf16.gmra.mrb[44].mxu0 %vm667_vm2, %v6110_v51  ;;  %8160 = vperm.xlu1 %10947, %v7778_v34   ;;  %v6172_v51 = vor.u32 %v6171_v3, %v6168_v59  ;;  %v6164_v12 = vsel %vm5886_vm6, %v6154_v5, %v6163_v17  ;;  %v6195_v34 = vrot.slane %v6193_v40, 2  ;;  %v6220_v59 = vshrl.u32 %v13186_v0, 16 }
 0x210   :  { %10128 = vmatprep.mubr.msk.bf16.mxu0 %vm667_vm2, %v6119_v11  ;;  %v6187_v11 = vshll.u32 %v13106_v60, 16  ;;  %v6177_v16 = vrot.slane %v6175_v47, 2  ;;  %v6223_v3 = vshll.u32 %v13186_v0, 16 }
 0x211   :  { %7950 = vperm.xlu0 %10946, %v7736_v2   ;;  %v6173_v28 = vsel %vm5886_vm6, %v6163_v17, %v6172_v51  ;;  %v6222_v63 = vrot.slane %v6220_v59, 2 }
 0x212   :  { %v6189_v13 = vrot.slane %v6187_v11, 3  ;;  %v6225_v11 = vrot.slane %v6223_v3, 3 }
 0x213   :  { %8165 = vperm.xlu1 %10947, %v7779_v57   ;;  %v7742_v57 = vld [vmem:[%s14298_s3 + $0x130] sm:$0xff] }
 0x214   :  { %v6190_v14 = vor.u32 %v6189_v13, %v6186_v36  ;;  %v6226_v36 = vor.u32 %v6225_v11, %v6222_v63  ;;  %v13226_v13 = vld [vmem:[%s14295_s0 + $0x148] sm:$0xff]   ;;  %v6855_v63 = vld [vmem:[%s14295_s0 + $0x10] sm:$0x8] }
 0x215   :  { %9745 = vmatmul.mubr.msk.bf16.gmra.mrb[8].mxu1 %vm667_vm2, %v2609_v54  ;;  %7955 = vperm.xlu0 %10946, %v7737_v26   ;;  %v11144_v54 = vld [vmem:[%s14295_s0 + $0x70] sm:$0xff]  }
 0x216   :  { %9748 = vmatprep.mubr.msk.bf16.mxu1 %vm667_vm2, %v2611_v49  ;;  %v2622_v38 = vrot.slane %v11144_v54, 1  ;;  %v6181_v49 = vor.u32 %v6180_v45, %v6177_v16  ;;  %v13218_v45 = vld [vmem:[%s14295_s0 + $0x140] sm:$0xff]   ;;  %v6238_v54 = vshrl.u32 %v13226_v13, 16 }
 0x217   :  { %10129 = vmatmul.mubr.msk.bf16.gmra.mrb[48].mxu0 %vm667_vm2, %v6128_v25  ;;  %8170 = vperm.xlu1 %10947, %v7780_v21   ;;  %v6196_v25 = vshll.u32 %v13138_v1, 16  ;;  %v7743_v21 = vld [vmem:[%s14298_s3 + $0x138] sm:$0xff]  ;;  %v6232_v44 = vshll.u32 %v13218_v45, 16 }
 0x218   :  { %10132 = vmatprep.mubr.msk.bf16.mxu0 %vm667_vm2, %v6137_v23  ;;  %v13146_v23 = vld [vmem:[%s14295_s0 + $0x128] sm:$0xff]   ;;  %v2623_v15 = vsel %vm1629_vm5, %v2620_v4, %v2622_v38  ;;  %v6182_v50 = vsel %vm5886_vm6, %v6172_v51, %v6181_v49  ;;  %v6191_v27 = vsel %vm5886_vm6, %v6181_v49, %v6190_v14 }
 0x219   :  { %7960 = vperm.xlu0 %10946, %v7738_v56   ;;  %v6202_v18 = vshrl.u32 %v13146_v23, 16  ;;  %v6205_v39 = vshll.u32 %v13146_v23, 16  ;;  %v6198_v2 = vrot.slane %v6196_v25, 3  ;;  %v7745_v49 = vld [vmem:[%s14298_s3 + $0x148] sm:$0xff] }
 0x21b   :  { %8175 = vperm.xlu1 %10947, %v7781_v53   ;;  %v6207_v5 = vrot.slane %v6205_v39, 3  ;;  %v6199_v26 = vor.u32 %v6198_v2, %v6195_v34  ;;  %v13252_v2 = vld [vmem:[%s14295_s0 + $0x150] sm:$0xff]  }
 0x21c   :  { %v6250_v24 = vshll.u32 %v13252_v2, 16 }
 0x21d   :  { %9749 = vmatmul.mubr.msk.bf16.gmra.mrb[12].mxu1 %vm667_vm2, %v2613_v46  ;;  %7965 = vperm.xlu0 %10946, %v7739_v41   ;;  %v6204_v46 = vrot.slane %v6202_v18, 2  ;;  %v6200_v56 = vsel %vm5886_vm6, %v6190_v14, %v6199_v26  ;;  %v7786_v41 = vld [vmem:[%s14298_s3 + $0x290] sm:$0xff]  ;;  %v11155_v18 = vld [vmem:[%s14295_s0 + $0x98] sm:$0xff]  }
 0x21e   :  { %9752 = vmatprep.mubr.msk.bf16.mxu1 %vm667_vm2, %v2615_v8  ;;  %v7784_v8 = vld [vmem:[%s14298_s3 + $0x280] sm:$0xff]  ;;  %v2632_v39 = vrot.slane %v11155_v18, 1 }
 0x21f   :  { %10133 = vmatmul.mubr.msk.bf16.gmra.mrb[52].mxu0 %vm667_vm2, %v6146_v30  ;;  %8180 = vperm.xlu1 %10947, %v7782_v7   ;;  %v13178_v30 = vld [vmem:[%s14295_s0 + $0x130] sm:$0xff]   ;;  %v6208_v19 = vor.u32 %v6207_v5, %v6204_v46  ;;  %v13260_v5 = vld [vmem:[%s14295_s0 + $0x158] sm:$0xff]  }
 0x220   :  { %10136 = vmatprep.mubr.msk.bf16.mxu0 %vm667_vm2, %v6155_v9  ;;  %v6211_v43 = vshrl.u32 %v13178_v30, 16  ;;  %v6214_v48 = vshll.u32 %v13178_v30, 16  ;;  %v2625_v9 = vsel %vm1629_vm5, %v2622_v38, %v2624_v52  ;;  %v6241_v38 = vshll.u32 %v13226_v13, 16 }
 0x221   :  { %7970 = vperm.xlu0 %10946, %v7740_v6   ;;  %v6209_v42 = vsel %vm5886_vm6, %v6199_v26, %v6208_v19  ;;  %v7787_v6 = vld [vmem:[%s14298_s3 + $0x298] sm:$0xff]  ;;  %v6256_v58 = vshrl.u32 %v13260_v5, 16 }
 0x222   :  { %v6213_v17 = vrot.slane %v6211_v43, 2  ;;  %v6216_v47 = vrot.slane %v6214_v48, 3  ;;  %v6252_v43 = vrot.slane %v6250_v24, 3  ;;  %v13270_v48 = vld [vmem:[%s14295_s0 + $0x160] ss:$0 sps:$4 sm:$0x77]  }
 0x223   :  { %8185 = vperm.xlu1 %10947, %v7783_v31   ;;  %v6243_v31 = vrot.slane %v6241_v38, 3  ;;  %v6258_v3 = vrot.slane %v6256_v58, 2  ;;  %v13345_v58 = vld [vmem:[%s14295_s0 + $0xd8] sm:$0xff]  }
 0x224   :  { %v6217_v16 = vor.u32 %v6216_v47, %v6213_v17  ;;  %v6265_v17 = vshrl.u32 %v13270_v48, 16  ;;  %v6268_v47 = vshll.u32 %v13270_v48, 16 }
 0x225   :  { %9753 = vmatmul.mubr.msk.bf16.gmra.mrb[16].mxu1 %vm667_vm2, %v2617_v22  ;;  %7975 = vperm.xlu0 %10946, %v7741_v55   ;;  %v11151_v22 = vld [vmem:[%s14295_s0 + $0x88] sm:$0xff]   ;;  %v11156_v55 = vld [vmem:[%s14295_s0 + $0xa0] sm:$0xff]  }
 0x226   :  { %9756 = vmatprep.mubr.msk.bf16.mxu1 %vm667_vm2, %v2619_v33  ;;  %v2628_v51 = vrot.slane %v11151_v22, 1  ;;  %v11152_v33 = vld [vmem:[%s14295_s0 + $0x90] sm:$0xff]   ;;  %v6218_v40 = vsel %vm5886_vm6, %v6208_v19, %v6217_v16  ;;  %v6227_v14 = vsel %vm5886_vm6, %v6217_v16, %v6226_v36  ;;  %v11159_v19 = vld [vmem:[%s14295_s0 + $0xa8] sm:$0xff]  }
 0x227   :  { %10137 = vmatmul.mubr.msk.bf16.gmra.mrb[56].mxu0 %vm667_vm2, %v6164_v12  ;;  %8190 = vperm.xlu1 %10947, %v7784_v8   ;;  %v2630_v53 = vrot.slane %v11152_v33, 1  ;;  %v7744_v12 = vld [vmem:[%s14298_s3 + $0x140] sm:$0xff]  ;;  %v2636_v59 = vrot.slane %v11159_v19, 1  ;;  %v6267_v33 = vrot.slane %v6265_v17, 2  ;;  %v11172_v19 = vld [vmem:[%s14295_s0 + $0x38] sm:$0xff]   ;;  %v13377_v17 = vld [vmem:[%s14295_s0 + $0xf0] sm:$0xff]  }
 0x228   :  { %10140 = vmatprep.mubr.msk.bf16.mxu0 %vm667_vm2, %v6173_v28  ;;  %v6229_v28 = vshrl.u32 %v13218_v45, 16  ;;  %v2629_v4 = vsel %vm1629_vm5, %v2626_v10, %v2628_v51  ;;  %v6259_v10 = vshll.u32 %v13260_v5, 16 }
 0x229   :  { %7980 = vperm.xlu0 %10946, %v7742_v57   ;;  %v2631_v7 = vsel %vm1629_vm5, %v2628_v51, %v2630_v53  ;;  %v2633_v52 = vsel %vm1629_vm5, %v2630_v53, %v2632_v39  ;;  %v6270_v53 = vrot.slane %v6268_v47, 3  ;;  %v2654_v47 = vrot.slane %v13377_v17, 1 }
 0x22a   :  { %v6231_v25 = vrot.slane %v6229_v28, 2  ;;  %v11162_v28 = vld [vmem:[%s14295_s0 + $0x14] sm:$0xf] }
 0x22b   :  { %8195 = vperm.xlu1 %10947, %v7785_v20   ;;  %v11160_v20 = vld [vmem:[%s14295_s0 + $0xb0] sm:$0xff]  }
 0x22d   :  { %9757 = vmatmul.mubr.msk.bf16.gmra.mrb[20].mxu1 %vm667_vm2, %v2621_v37  ;;  %7985 = vperm.xlu0 %10946, %v7743_v21   ;;  %v6234_v37 = vrot.slane %v6232_v44, 3  ;;  %v2638_v21 = vrot.slane %v11160_v20, 1  ;;  %v9038_v44 = vcombine.low %v6855_v63, %v11162_v28  ;;  %v11176_v63 = vld [vmem:[%s14295_s0 + $0x48] sm:$0xff]   ;;  %v13403_v28 = vld [vmem:[%s14295_s0 + $0x100] sm:$0xff]  }
 0x22e   :  { %9760 = vmatprep.mubr.msk.bf16.mxu1 %vm667_vm2, %v2623_v15  ;;  %v6240_v15 = vrot.slane %v6238_v54, 2  ;;  %v6271_v54 = vor.u32 %v6270_v53, %v6267_v33 }
 0x22f   :  { %10141 = vmatmul.mubr.msk.bf16.gmra.mrb[60].mxu0 %vm667_vm2, %v6182_v50  ;;  %8200 = vperm.xlu1 %10947, %v7786_v41   ;;  %v2634_v50 = vrot.slane %v11156_v55, 1  ;;  %v6235_v34 = vor.u32 %v6234_v37, %v6231_v25  ;;  %v2639_v51 = vsel %vm1629_vm5, %v2636_v59, %v2638_v21 }
 0x230   :  { %10144 = vmatprep.mubr.msk.bf16.mxu0 %vm667_vm2, %v6191_v27  ;;  %v6247_v27 = vshrl.u32 %v13252_v2, 16  ;;  %v6244_v46 = vor.u32 %v6243_v31, %v6240_v15  ;;  %v11167_v31 = vld [vmem:[%s14295_s0 + $0x20] sm:$0xff]  }
 0x231   :  { %7990 = vperm.xlu0 %10946, %v7744_v12   ;;  %v2635_v8 = vsel %vm1629_vm5, %v2632_v39, %v2634_v50  ;;  %v6236_v57 = vsel %vm5886_vm6, %v6226_v36, %v6235_v34  ;;  %v11161_v12 = vld [vmem:[%s14295_s0 + $0xb8] sm:$0xff]   ;;  %v13325_v39 = vld [vmem:[%s14295_s0 + $0xd0] sm:$0xff]   ;;  %v6865_v55 = vrot.slane %v11167_v31, 3 }
 0x232   :  { %v6249_v26 = vrot.slane %v6247_v27, 2  ;;  %v2640_v16 = vrot.slane %v11161_v12, 1  ;;  %v2646_v15 = vrot.slane %v13325_v39, 1  ;;  %v13397_v12 = vld [vmem:[%s14295_s0 + $0xf8] sm:$0xff]  }
 0x233   :  { %8205 = vperm.xlu1 %10947, %v7787_v6   ;;  %v11164_v6 = vld [vmem:[%s14295_s0 + $0x18] sm:$0xff]  }
 0x234   :  { %v2641_v38 = vsel %vm1629_vm5, %v2638_v21, %v2640_v16  ;;  %v13371_v21 = vld [vmem:[%s14295_s0 + $0xe8] sm:$0xff]  }
 0x235   :  { %9761 = vmatmul.mubr.msk.bf16.gmra.mrb[24].mxu1 %vm667_vm2, %v2625_v9  ;;  %7995 = vperm.xlu0 %10946, %v7745_v49   ;;  %v6245_v9 = vsel %vm5886_vm6, %v6235_v34, %v6244_v46  ;;  %v6863_v49 = vrot.slane %v11164_v6, 3  ;;  %v11168_v34 = vld [vmem:[%s14295_s0 + $0x28] sm:$0xff]  }
 0x236   :  { %9764 = vmatprep.mubr.msk.bf16.mxu1 %vm667_vm2, %v2627_v62  ;;  %v6261_v62 = vrot.slane %v6259_v10, 3  ;;  %v6867_v27 = vrot.slane %v11168_v34, 3  ;;  %v2648_v10 = vrot.slane %v13345_v58, 1 }
 0x237   :  { %10145 = vmatmul.mubr.msk.bf16.gmra.mrb[64].mxu0 %vm667_vm2, %v6200_v56  ;;  %v6253_v56 = vor.u32 %v6252_v43, %v6249_v26  ;;  %v11171_v26 = vld [vmem:[%s14295_s0 + $0x30] sm:$0xff]  }
 0x238   :  { %10148 = vmatprep.mubr.msk.bf16.mxu0 %vm667_vm2, %v6209_v42  ;;  %v2637_v42 = vsel %vm1629_vm5, %v2634_v50, %v2636_v59  ;;  %v6262_v22 = vor.u32 %v6261_v62, %v6258_v3  ;;  %v6869_v43 = vrot.slane %v11171_v26, 3  ;;  %v6871_v59 = vrot.slane %v11172_v19, 3  ;;  %v11187_v19 = vld [vmem:[%s14295_s0 + $0x70] sm:$0xff]  }
 0x239   :  { %v6254_v11 = vsel %vm5886_vm6, %v6244_v46, %v6253_v56  ;;  %v6868_v46 = vsel %vm6861_vm7, %v6865_v55, %v6867_v27 }
 0x23a   :  { %v6263_v41 = vsel %vm5886_vm6, %v6253_v56, %v6262_v22  ;;  %v6272_v25 = vsel %vm5886_vm6, %v6262_v22, %v6271_v54  ;;  %v6870_v62 = vsel %vm6861_vm7, %v6867_v27, %v6869_v43  ;;  %v6872_v20 = vsel %vm6861_vm7, %v6869_v43, %v6871_v59  ;;  %v11184_v27 = vld [vmem:[%s14295_s0 + $0x68] sm:$0xff]   ;;  %v13455_v43 = vld [vmem:[%s14295_s0 + $0x120] sm:$0xff]  }
 0x23b   :  { %v2652_v56 = vrot.slane %v13371_v21, 1 }
 0x23d   :  { %9765 = vmatmul.mubr.msk.bf16.gmra.mrb[28].mxu1 %vm667_vm2, %v2629_v4  ;;  %v13302_v4 = vld [vmem:[%s14295_s0 + $0xc0] sm:$0xff]   ;;  %v2655_v33 = vsel %vm1629_vm5, %v2652_v56, %v2654_v47 }
 0x23e   :  { %9768 = vmatprep.mubr.msk.bf16.mxu1 %vm667_vm2, %v2631_v7  ;;  %v2642_v36 = vrot.slane %v13302_v4, 1  ;;  %v6862_v7 = vrot.slane %v9038_v44, 3  ;;  %v2658_v44 = vrot.slane %v13403_v28, 1 }
 0x23f   :  { %10149 = vmatmul.mubr.msk.bf16.gmra.mrb[68].mxu0 %vm667_vm2, %v6218_v40 }
 0x240   :  { %10152 = vmatprep.mubr.msk.bf16.mxu0 %vm667_vm2, %v6227_v14  ;;  %v2643_v40 = vsel %vm1629_vm5, %v2640_v16, %v2642_v36  ;;  %v6864_v37 = vsel %vm6861_vm7, %v6862_v7, %v6863_v49  ;;  %v13319_v14 = vld [vmem:[%s14295_s0 + $0xc8] sm:$0xff]   ;;  %v2656_v16 = vrot.slane %v13397_v12, 1  ;;  %v11180_v7 = vld [vmem:[%s14295_s0 + $0x58] sm:$0xff]  }
 0x241   :  { %v2644_v18 = vrot.slane %v13319_v14, 1  ;;  %v6879_v6 = vrot.slane %v11180_v7, 3  ;;  %v13501_v7 = vld [vmem:[%s14295_s0 + $0x138] sm:$0xff]  }
 0x243   :  { %v2645_v50 = vsel %vm1629_vm5, %v2642_v36, %v2644_v18  ;;  %v2647_v24 = vsel %vm1629_vm5, %v2644_v18, %v2646_v15  ;;  %v11179_v36 = vld [vmem:[%s14295_s0 + $0x50] sm:$0xff]  }
 0x244   :  { %v6877_v54 = vrot.slane %v11179_v36, 3 }
 0x245   :  { %9769 = vmatmul.mubr.msk.bf16.gmra.mrb[32].mxu1 %vm667_vm2, %v2633_v52  ;;  %v6866_v52 = vsel %vm6861_vm7, %v6863_v49, %v6865_v55  ;;  %v2659_v49 = vsel %vm1629_vm5, %v2656_v16, %v2658_v44  ;;  %v11183_v55 = vld [vmem:[%s14295_s0 + $0x60] sm:$0xff]  }
 0x246   :  { %9772 = vmatprep.mubr.msk.bf16.mxu1 %vm667_vm2, %v2635_v8  ;;  %v13351_v8 = vld [vmem:[%s14295_s0 + $0xe0] sm:$0xff]  }
 0x247   :  { %10153 = vmatmul.mubr.msk.bf16.gmra.mrb[72].mxu0 %vm667_vm2, %v6236_v57  ;;  %v2650_v57 = vrot.slane %v13351_v8, 1 }
 0x248   :  { %10156 = vmatprep.mubr.msk.bf16.mxu0 %vm667_vm2, %v6245_v9  ;;  %v2649_v9 = vsel %vm1629_vm5, %v2646_v15, %v2648_v10  ;;  %v13429_v15 = vld [vmem:[%s14295_s0 + $0x110] sm:$0xff]  }
 0x249   :  { %v2651_v3 = vsel %vm1629_vm5, %v2648_v10, %v2650_v57  ;;  %v2662_v31 = vrot.slane %v13429_v15, 1 }
 0x24d   :  { %9773 = vmatmul.mubr.msk.bf16.gmra.mrb[36].mxu1 %vm667_vm2, %v2637_v42  ;;  %v11175_v42 = vld [vmem:[%s14295_s0 + $0x40] sm:$0xff]  }
 0x24e   :  { %9776 = vmatprep.mubr.msk.bf16.mxu1 %vm667_vm2, %v2639_v51  ;;  %v6873_v22 = vrot.slane %v11175_v42, 3  ;;  %v2653_v51 = vsel %vm1629_vm5, %v2650_v57, %v2652_v56  ;;  %v13449_v57 = vld [vmem:[%s14295_s0 + $0x118] sm:$0xff]  }
 0x24f   :  { %10157 = vmatmul.mubr.msk.bf16.gmra.mrb[76].mxu0 %vm667_vm2, %v6254_v11  ;;  %v6875_v11 = vrot.slane %v11176_v63, 3  ;;  %v2664_v26 = vrot.slane %v13449_v57, 1  ;;  %v13481_v63 = vld [vmem:[%s14295_s0 + $0x130] sm:$0xff]  }
 0x250   :  { %10160 = vmatprep.mubr.msk.bf16.mxu0 %vm667_vm2, %v6263_v41  ;;  %v6874_v53 = vsel %vm6861_vm7, %v6871_v59, %v6873_v22  ;;  %v6885_v59 = vrot.slane %v11187_v19, 3  ;;  %v3478_v19 = vshrl.u32 %v13302_v4, 16 }
 0x251   :  { %v6876_v41 = vsel %vm6861_vm7, %v6873_v22, %v6875_v11  ;;  %v13475_v22 = vld [vmem:[%s14295_s0 + $0x128] sm:$0xff]  }
 0x255   :  { %9777 = vmatmul.mubr.msk.bf16.gmra.mrb[40].mxu1 %vm667_vm2, %v2641_v38  ;;  %v2657_v38 = vsel %vm1629_vm5, %v2654_v47, %v2656_v16  ;;  %v11192_v16 = vld [vmem:[%s14295_s0 + $0x88] sm:$0xff]  }
 0x256   :  { %9780 = vmatprep.mubr.msk.bf16.mxu1 %vm667_vm2, %v2643_v40  ;;  %v6878_v40 = vsel %vm6861_vm7, %v6875_v11, %v6877_v54  ;;  %v2670_v11 = vrot.slane %v13481_v63, 1 }
 0x257   :  { %10161 = vmatmul.mubr.msk.bf16.gmra.mrb[80].mxu0 %vm667_vm2, %v6272_v25  ;;  %v6880_v25 = vsel %vm6861_vm7, %v6877_v54, %v6879_v6 }
 0x258   :  { %10166 = vmatprep.mubr.msk.bf16.mxu0 %vm667_vm2, %v6864_v37  ;;  %v13423_v37 = vld [vmem:[%s14295_s0 + $0x108] sm:$0xff]  }
 0x259   :  { %v2660_v18 = vrot.slane %v13423_v37, 1 }
 0x25b   :  { %v2661_v34 = vsel %vm1629_vm5, %v2658_v44, %v2660_v18  ;;  %v6891_v44 = vrot.slane %v11192_v16, 3 }
 0x25d   :  { %9781 = vmatmul.mubr.msk.bf16.gmra.mrb[44].mxu1 %vm667_vm2, %v2645_v50  ;;  %v6881_v50 = vrot.slane %v11183_v55, 3  ;;  %v11196_v55 = vld [vmem:[%s14295_s0 + $0x98] sm:$0xff]  }
 0x25e   :  { %9784 = vmatprep.mubr.msk.bf16.mxu1 %vm667_vm2, %v2647_v24  ;;  %v6883_v24 = vrot.slane %v11184_v27, 3 }
 0x25f   :  { %10167 = vmatmul.mubr.msk.bf16.vlgmr.msra.gmra.mrb[0].mxu0 %vm667_vm2, %v6866_v52  ;;  %v2663_v52 = vsel %vm1629_vm5, %v2660_v18, %v2662_v31 }
 0x260   :  { %10170 = vmatprep.mubr.msk.bf16.mxu0 %vm667_vm2, %v6868_v46  ;;  %v6882_v46 = vsel %vm6861_vm7, %v6879_v6, %v6881_v50  ;;  %v6884_v10 = vsel %vm6861_vm7, %v6881_v50, %v6883_v24  ;;  %v6886_v47 = vsel %vm6861_vm7, %v6883_v24, %v6885_v59  ;;  %v2672_v6 = vrot.slane %v13501_v7, 1  ;;  %v13522_v24 = vpop.permute.xlu0 %7790 }
 0x261   :  { %v6895_v50 = vrot.slane %v11196_v55, 3 }
 0x265   :  { %9785 = vmatmul.mubr.msk.bf16.gmra.mrb[48].mxu1 %vm667_vm2, %v2649_v9  ;;  %v2666_v9 = vrot.slane %v13455_v43, 1 }
 0x266   :  { %9788 = vmatprep.mubr.msk.bf16.mxu1 %vm667_vm2, %v2651_v3  ;;  %v2665_v3 = vsel %vm1629_vm5, %v2662_v31, %v2664_v26  ;;  %v2673_v31 = vsel %vm1629_vm5, %v2670_v11, %v2672_v6 }
 0x267   :  { %10171 = vmatmul.mubr.msk.bf16.gmra.mrb[4].mxu0 %vm667_vm2, %v6870_v62  ;;  %v11188_v62 = vld [vmem:[%s14295_s0 + $0x78] sm:$0xff]   ;;  %v2667_v56 = vsel %vm1629_vm5, %v2664_v26, %v2666_v9  ;;  %v13535_v26 = vld [vmem:[%s14295_s0 + $0x150] sm:$0xff]  }
 0x268   :  { %10174 = vmatprep.mubr.msk.bf16.mxu0 %vm667_vm2, %v6872_v20  ;;  %v6887_v20 = vrot.slane %v11188_v62, 3 }
 0x26a   :  { %v6888_v42 = vsel %vm6861_vm7, %v6885_v59, %v6887_v20  ;;  %v3481_v59 = vshll.u32 %v13302_v4, 16  ;;  %v11081_v4 = vld [vmem:[%s14295_s0 + $0x158] ss:$0 sps:$4 sm:$0x11]  }
 0x26b   :  { %v2680_v16 = vrot.slane %v11081_v4, 1 }
 0x26d   :  { %9789 = vmatmul.mubr.msk.bf16.gmra.mrb[52].mxu1 %vm667_vm2, %v2653_v51  ;;  %v2668_v51 = vrot.slane %v13475_v22, 1 }
 0x26e   :  { %9792 = vmatprep.mubr.msk.bf16.mxu1 %vm667_vm2, %v2655_v33  ;;  %v11191_v33 = vld [vmem:[%s14295_s0 + $0x80] sm:$0xff]  }
 0x26f   :  { %10175 = vmatmul.mubr.msk.bf16.gmra.mrb[8].mxu0 %vm667_vm2, %v6874_v53  ;;  %v6889_v53 = vrot.slane %v11191_v33, 3  ;;  %v2671_v36 = vsel %vm1629_vm5, %v2668_v51, %v2670_v11  ;;  %v3483_v11 = vrot.slane %v3481_v59, 2  ;;  %v13553_v33 = vpop.permute.xlu0 %7795  ;;  %v3505_v59 = vshrl.u32 %v13345_v58, 16 }
 0x270   :  { %10178 = vmatprep.mubr.msk.bf16.mxu0 %vm667_vm2, %v6876_v41  ;;  %v2669_v41 = vsel %vm1629_vm5, %v2666_v9, %v2668_v51  ;;  %v2678_v9 = vrot.slane %v13535_v26, 1  ;;  %v3480_v51 = vrot.slane %v3478_v19, 1 }
 0x271   :  { %v6890_v54 = vsel %vm6861_vm7, %v6887_v20, %v6889_v53 }
 0x275   :  { %9793 = vmatmul.mubr.msk.bf16.gmra.mrb[56].mxu1 %vm667_vm2, %v2657_v38  ;;  %v6892_v38 = vsel %vm6861_vm7, %v6889_v53, %v6891_v44 }
 0x276   :  { %9796 = vmatprep.mubr.msk.bf16.mxu1 %vm667_vm2, %v2659_v49  ;;  %v13507_v49 = vld [vmem:[%s14295_s0 + $0x140] sm:$0xff]  }
 0x277   :  { %10179 = vmatmul.mubr.msk.bf16.gmra.mrb[12].mxu0 %vm667_vm2, %v6878_v40  ;;  %v2674_v40 = vrot.slane %v13507_v49, 1 }
 0x278   :  { %10182 = vmatprep.mubr.msk.bf16.mxu0 %vm667_vm2, %v6880_v25  ;;  %v11195_v25 = vld [vmem:[%s14295_s0 + $0x90] sm:$0xff]  }
 0x279   :  { %v6893_v18 = vrot.slane %v11195_v25, 3 }
 0x27b   :  { %v6894_v27 = vsel %vm6861_vm7, %v6891_v44, %v6893_v18  ;;  %v3487_v44 = vshrl.u32 %v13319_v14, 16 }
 0x27d   :  { %9797 = vmatmul.mubr.msk.bf16.gmra.mrb[60].mxu1 %vm667_vm2, %v2661_v34  ;;  %v2675_v34 = vsel %vm1629_vm5, %v2672_v6, %v2674_v40  ;;  %v3499_v6 = vshll.u32 %v13325_v39, 16 }
 0x27e   :  { %9800 = vmatprep.mubr.msk.bf16.mxu1 %vm667_vm2, %v2663_v52  ;;  %v6896_v52 = vsel %vm6861_vm7, %v6893_v18, %v6895_v50  ;;  %v13568_v18 = vpop.permute.xlu0 %7800 }
 0x27f   :  { %10183 = vmatmul.mubr.msk.bf16.gmra.mrb[16].mxu0 %vm667_vm2, %v6882_v46  ;;  %v13529_v46 = vld [vmem:[%s14295_s0 + $0x148] sm:$0xff]  }
 0x280   :  { %10186 = vmatprep.mubr.msk.bf16.mxu0 %vm667_vm2, %v6884_v10  ;;  %v2676_v10 = vrot.slane %v13529_v46, 1 }
 0x282   :  { %v2677_v20 = vsel %vm1629_vm5, %v2674_v40, %v2676_v10  ;;  %v11201_v40 = vld [vmem:[%s14295_s0 + $0xb0] sm:$0xff]  }
 0x283   :  { %v6901_v25 = vrot.slane %v11201_v40, 3  ;;  %v3526_v40 = vshll.u32 %v13371_v21, 16 }
 0x285   :  { %9801 = vmatmul.mubr.msk.bf16.gmra.mrb[64].mxu1 %vm667_vm2, %v2665_v3  ;;  %v11199_v3 = vld [vmem:[%s14295_s0 + $0xa0] sm:$0xff]  }
 0x286   :  { %9804 = vmatprep.mubr.msk.bf16.mxu1 %vm667_vm2, %v2667_v56  ;;  %v6897_v62 = vrot.slane %v11199_v3, 3  ;;  %v11200_v56 = vld [vmem:[%s14295_s0 + $0xa8] sm:$0xff]   ;;  %v3508_v3 = vshll.u32 %v13345_v58, 16 }
 0x287   :  { %10187 = vmatmul.mubr.msk.bf16.gmra.mrb[20].mxu0 %vm667_vm2, %v6886_v47  ;;  %v6899_v47 = vrot.slane %v11200_v56, 3  ;;  %v13584_v56 = vpop.permute.xlu0 %7805  ;;  %v11204_v58 = vld [vmem:[%s14295_s0 + $0xc8] sm:$0xff]  }
 0x288   :  { %10190 = vmatprep.mubr.msk.bf16.mxu0 %vm667_vm2, %v6888_v42  ;;  %v2679_v42 = vsel %vm1629_vm5, %v2676_v10, %v2678_v9  ;;  %v6898_v53 = vsel %vm6861_vm7, %v6895_v50, %v6897_v62  ;;  %v3489_v50 = vrot.slane %v3487_v44, 1 }
 0x289   :  { %v6902_v10 = vsel %vm6861_vm7, %v6899_v47, %v6901_v25 }
 0x28d   :  { %9805 = vmatmul.mubr.msk.bf16.gmra.mrb[68].mxu1 %vm667_vm2, %v2669_v41  ;;  %v6900_v41 = vsel %vm6861_vm7, %v6897_v62, %v6899_v47  ;;  %v11203_v47 = vld [vmem:[%s14295_s0 + $0xc0] sm:$0xff]  }
 0x28e   :  { %9808 = vmatprep.mubr.msk.bf16.mxu1 %vm667_vm2, %v2671_v36  ;;  %v3490_v36 = vshll.u32 %v13319_v14, 16  ;;  %v11202_v14 = vld [vmem:[%s14295_s0 + $0xb8] sm:$0xff]   ;;  %v6905_v4 = vrot.slane %v11203_v47, 3 }
 0x28f   :  { %10191 = vmatmul.mubr.msk.bf16.gmra.mrb[24].mxu0 %vm667_vm2, %v6890_v54  ;;  %v3484_v54 = vor.u32 %v3483_v11, %v3480_v51  ;;  %v6903_v55 = vrot.slane %v11202_v14, 3  ;;  %v6907_v51 = vrot.slane %v11204_v58, 3  ;;  %v3507_v11 = vrot.slane %v3505_v59, 1  ;;  %v11207_v58 = vld [vmem:[%s14295_s0 + $0xe0] sm:$0xff]  }
 0x290   :  { %10194 = vmatprep.mubr.msk.bf16.mxu0 %vm667_vm2, %v6892_v38  ;;  %v3496_v38 = vshrl.u32 %v13325_v39, 16  ;;  %v3492_v39 = vrot.slane %v3490_v36, 2  ;;  %v13598_v36 = vpop.permute.xlu0 %7810  ;;  %v3535_v14 = vshll.u32 %v13377_v17, 16 }
 0x291   :  { %v6906_v44 = vsel %vm6861_vm7, %v6903_v55, %v6905_v4 }
 0x292   :  { %v3493_v19 = vor.u32 %v3492_v39, %v3489_v50 }
 0x295   :  { %9809 = vmatmul.mubr.msk.bf16.gmra.mrb[72].mxu1 %vm667_vm2, %v2673_v31  ;;  %v2681_v31 = vsel %vm1629_vm5, %v2678_v9, %v2680_v16  ;;  %v6904_v9 = vsel %vm6861_vm7, %v6901_v25, %v6903_v55  ;;  %v11205_v55 = vld [vmem:[%s14295_s0 + $0xd0] sm:$0xff]  }
 0x296   :  { %9812 = vmatprep.mubr.msk.bf16.mxu1 %vm667_vm2, %v2675_v34  ;;  %v3485_v34 = vsel %vm3270_vm3, %v11653_v29, %v3484_v54  ;;  %v3517_v29 = vshll.u32 %v13351_v8, 16  ;;  %v6909_v50 = vrot.slane %v11205_v55, 3  ;;  %v3568_v55 = vshrl.u32 %v13429_v15, 16 }
 0x297   :  { %10195 = vmatmul.mubr.msk.bf16.gmra.mrb[28].mxu0 %vm667_vm2, %v6894_v27  ;;  %v3498_v27 = vrot.slane %v3496_v38, 1 }
 0x298   :  { %10198 = vmatprep.mubr.msk.bf16.mxu0 %vm667_vm2, %v6896_v52  ;;  %v3501_v52 = vrot.slane %v3499_v6, 2  ;;  %v3519_v16 = vrot.slane %v3517_v29, 2  ;;  %v3523_v6 = vshrl.u32 %v13371_v21, 16  ;;  %v11206_v21 = vld [vmem:[%s14295_s0 + $0xd8] sm:$0xff]   ;;  %v6910_v59 = vsel %vm6861_vm7, %v6907_v51, %v6909_v50 }
 0x299   :  { %v3544_v29 = vshll.u32 %v13397_v12, 16 }
 0x29a   :  { %v3502_v62 = vor.u32 %v3501_v52, %v3498_v27  ;;  %v3525_v27 = vrot.slane %v3523_v6, 1  ;;  %v3528_v52 = vrot.slane %v3526_v40, 2 }
 0x29d   :  { %9813 = vmatmul.mubr.msk.bf16.gmra.mrb[76].mxu1 %vm667_vm2, %v2677_v20  ;;  %v3514_v20 = vshrl.u32 %v13351_v8, 16  ;;  %v3510_v8 = vrot.slane %v3508_v3, 2 }
 0x29e   :  { %9816 = vmatprep.mubr.msk.bf16.mxu1 %vm667_vm2, %v2679_v42  ;;  %v3494_v42 = vsel %vm3270_vm3, %v3484_v54, %v3493_v19  ;;  %v6908_v54 = vsel %vm6861_vm7, %v6905_v4, %v6907_v51  ;;  %v3550_v4 = vshrl.u32 %v13403_v28, 16  ;;  %v6913_v51 = vrot.slane %v11207_v58, 3 }
 0x29f   :  { %10199 = vmatmul.mubr.msk.bf16.gmra.mrb[32].mxu0 %vm667_vm2, %v6898_v53  ;;  %v3503_v53 = vsel %vm3270_vm3, %v3493_v19, %v3502_v62  ;;  %v3511_v38 = vor.u32 %v3510_v8, %v3507_v11  ;;  %v13616_v19 = vpop.permute.xlu0 %7815  ;;  %v3586_v58 = vshrl.u32 %v13455_v43, 16 }
 0x2a0   :  { %10202 = vmatprep.mubr.msk.bf16.mxu0 %vm667_vm2, %v6900_v41  ;;  %v3516_v41 = vrot.slane %v3514_v20, 1  ;;  %v3541_v20 = vshrl.u32 %v13397_v12, 16  ;;  %v11208_v12 = vld [vmem:[%s14295_s0 + $0xe8] sm:$0xff]  }
 0x2a1   :  { %v3512_v39 = vsel %vm3270_vm3, %v3502_v62, %v3511_v38  ;;  %v3529_v62 = vor.u32 %v3528_v52, %v3525_v27 }
 0x2a2   :  { %v3520_v25 = vor.u32 %v3519_v16, %v3516_v41  ;;  %v3543_v41 = vrot.slane %v3541_v20, 1 }
 0x2a3   :  { %v13631_v11 = vpop.permute.xlu0 %7820 }
 0x2a4   :  { %v3530_v8 = vsel %vm3270_vm3, %v3520_v25, %v3529_v62 }
 0x2a5   :  { %9817 = vmatmul.mubr.msk.bf16.gmra.mrb[80].mxu1 %vm667_vm2, %v2681_v31  ;;  %v3532_v31 = vshrl.u32 %v13377_v17, 16  ;;  %v3521_v17 = vsel %vm3270_vm3, %v3511_v38, %v3520_v25  ;;  %v3559_v25 = vshrl.u32 %v13423_v37, 16 }
 0x2a6   :  { %9866 = vmatprep.mubr.msk.bf16.mxu1 %vm667_vm2, %v3485_v34  ;;  %v6911_v34 = vrot.slane %v11206_v21, 3  ;;  %v11209_v21 = vld [vmem:[%s14295_s0 + $0xf0] sm:$0xff]  }
 0x2a7   :  { %10203 = vmatmul.mubr.msk.bf16.gmra.mrb[36].mxu0 %vm667_vm2, %v6902_v10  ;;  %v3534_v10 = vrot.slane %v3532_v31, 1  ;;  %v3562_v31 = vshll.u32 %v13423_v37, 16  ;;  %v11210_v37 = vld [vmem:[%s14295_s0 + $0xf8] sm:$0xff]  }
 0x2a8   :  { %10206 = vmatprep.mubr.msk.bf16.mxu0 %vm667_vm2, %v6904_v9  ;;  %v3537_v9 = vrot.slane %v3535_v14, 2  ;;  %v6912_v3 = vsel %vm6861_vm7, %v6909_v50, %v6911_v34  ;;  %v6914_v38 = vsel %vm6861_vm7, %v6911_v34, %v6913_v51  ;;  %v3571_v50 = vshll.u32 %v13429_v15, 16 }
 0x2a9   :  { %v6917_v34 = vrot.slane %v11209_v21, 3  ;;  %v6919_v52 = vrot.slane %v11210_v37, 3  ;;  %v3564_v15 = vrot.slane %v3562_v31, 2  ;;  %v3607_v31 = vshll.u32 %v13481_v63, 16 }
 0x2aa   :  { %v3538_v47 = vor.u32 %v3537_v9, %v3534_v10  ;;  %v3570_v9 = vrot.slane %v3568_v55, 1  ;;  %v6927_v21 = vrot.slane %v13106_v60, 3 }
 0x2ab   :  { %v6920_v20 = vsel %vm6861_vm7, %v6917_v34, %v6919_v52 }
 0x2ac   :  { %v3539_v16 = vsel %vm3270_vm3, %v3529_v62, %v3538_v47 }
 0x2ad   :  { %9867 = vmatmul.mubr.msk.bf16.vlgmr.msra.gmra.mrb[44].mxu1 %vm667_vm2, %v3494_v42  ;;  %v3553_v42 = vshll.u32 %v13403_v28, 16  ;;  %v3546_v28 = vrot.slane %v3544_v29, 2 }
 0x2ae   :  { %9870 = vmatprep.mubr.msk.bf16.mxu1 %vm667_vm2, %v3503_v53  ;;  %v6915_v53 = vrot.slane %v11208_v12, 3 }
 0x2af   :  { %10207 = vmatmul.mubr.msk.bf16.gmra.mrb[40].mxu0 %vm667_vm2, %v6906_v44  ;;  %v3552_v44 = vrot.slane %v3550_v4, 1  ;;  %v3547_v40 = vor.u32 %v3546_v28, %v3543_v41  ;;  %v3580_v4 = vshll.u32 %v13449_v57, 16 }
 0x2b0   :  { %10210 = vmatprep.mubr.msk.bf16.mxu0 %vm667_vm2, %v6908_v54  ;;  %v3555_v54 = vrot.slane %v3553_v42, 2  ;;  %v6916_v6 = vsel %vm6861_vm7, %v6913_v51, %v6915_v53  ;;  %v3589_v51 = vshll.u32 %v13455_v43, 16 }
 0x2b1   :  { %v3548_v27 = vsel %vm3270_vm3, %v3538_v47, %v3547_v40  ;;  %v3577_v47 = vshrl.u32 %v13449_v57, 16  ;;  %v3582_v28 = vrot.slane %v3580_v4, 2  ;;  %v3588_v57 = vrot.slane %v3586_v58, 1 }
 0x2b2   :  { %v3556_v14 = vor.u32 %v3555_v54, %v3552_v44  ;;  %v3591_v44 = vrot.slane %v3589_v51, 2 }
 0x2b3   :  { %v3579_v41 = vrot.slane %v3577_v47, 1  ;;  %v6929_v47 = vrot.slane %v13138_v1, 3 }
 0x2b4   :  { %v3557_v10 = vsel %vm3270_vm3, %v3547_v40, %v3556_v14  ;;  %v3592_v40 = vor.u32 %v3591_v44, %v3588_v57  ;;  %v3634_v57 = vshll.u32 %v13529_v46, 16 }
 0x2b5   :  { %9871 = vmatmul.mubr.msk.bf16.gmra.mrb[48].mxu1 %vm667_vm2, %v3512_v39  ;;  %v13646_v39 = vpop.permute.xlu0 %7825 }
 0x2b6   :  { %9874 = vmatprep.mubr.msk.bf16.mxu1 %vm667_vm2, %v3521_v17  ;;  %v3561_v17 = vrot.slane %v3559_v25, 1  ;;  %v3604_v25 = vshrl.u32 %v13481_v63, 16 }
 0x2b7   :  { %10211 = vmatmul.mubr.msk.bf16.gmra.mrb[44].mxu0 %vm667_vm2, %v6910_v59  ;;  %v3573_v59 = vrot.slane %v3571_v50, 2 }
 0x2b8   :  { %10214 = vmatprep.mubr.msk.bf16.mxu0 %vm667_vm2, %v6912_v3  ;;  %v6918_v3 = vsel %vm6861_vm7, %v6915_v53, %v6917_v34  ;;  %v3565_v29 = vor.u32 %v3564_v15, %v3561_v17  ;;  %v6923_v53 = vrot.slane %v13066_v32, 3  ;;  %v3598_v32 = vshll.u32 %v13475_v22, 16 }
 0x2b9   :  { %v13660_v62 = vpop.permute.xlu0 %7830  ;;  %v3574_v42 = vor.u32 %v3573_v59, %v3570_v9  ;;  %v3606_v37 = vrot.slane %v3604_v25, 1  ;;  %v3613_v15 = vshrl.u32 %v13501_v7, 16  ;;  %v3622_v9 = vshrl.u32 %v13507_v49, 16 }
 0x2ba   :  { %v3566_v12 = vsel %vm3270_vm3, %v3556_v14, %v3565_v29  ;;  %v6925_v14 = vrot.slane %v13098_v35, 3  ;;  %v3625_v59 = vshll.u32 %v13507_v49, 16 }
 0x2bb   :  { %v3615_v58 = vrot.slane %v3613_v15, 1 }
 0x2bc   :  { %v6926_v63 = vsel %vm6861_vm7, %v6923_v53, %v6925_v14  ;;  %v6928_v35 = vsel %vm6861_vm7, %v6925_v14, %v6927_v21  ;;  %v3636_v14 = vrot.slane %v3634_v57, 2 }
 0x2bd   :  { %9875 = vmatmul.mubr.msk.bf16.gmra.mrb[52].mxu1 %vm667_vm2, %v3530_v8  ;;  %v6921_v8 = vrot.slane %v13058_v61, 3  ;;  %v13674_v54 = vpop.permute.xlu0 %7835 }
 0x2be   :  { %9878 = vmatprep.mubr.msk.bf16.mxu1 %vm667_vm2, %v3539_v16  ;;  %v3575_v16 = vsel %vm3270_vm3, %v3565_v29, %v3574_v42 }
 0x2bf   :  { %10215 = vmatmul.mubr.msk.bf16.gmra.mrb[48].mxu0 %vm667_vm2, %v6914_v38  ;;  %v6922_v43 = vsel %vm6861_vm7, %v6919_v52, %v6921_v8  ;;  %v6924_v61 = vsel %vm6861_vm7, %v6921_v8, %v6923_v53  ;;  %v3583_v38 = vor.u32 %v3582_v28, %v3579_v41  ;;  %v3609_v52 = vrot.slane %v3607_v31, 2 }
 0x2c0   :  { %10218 = vmatprep.mubr.msk.bf16.mxu0 %vm667_vm2, %v6916_v6  ;;  %v3595_v6 = vshrl.u32 %v13475_v22, 16  ;;  %v3627_v53 = vrot.slane %v3625_v59, 2  ;;  %v6930_v41 = vsel %vm6861_vm7, %v6927_v21, %v6929_v47 }
 0x2c1   :  { %v13687_v55 = vpop.permute.xlu0 %7840  ;;  %v3584_v50 = vsel %vm3270_vm3, %v3574_v42, %v3583_v38  ;;  %v3593_v22 = vsel %vm3270_vm3, %v3583_v38, %v3592_v40  ;;  %v3610_v60 = vor.u32 %v3609_v52, %v3606_v37  ;;  %v6931_v42 = vrot.slane %v13146_v23, 3 }
 0x2c2   :  { %v3597_v34 = vrot.slane %v3595_v6, 1  ;;  %v3631_v23 = vshrl.u32 %v13529_v46, 16  ;;  %v6935_v46 = vrot.slane %v13186_v0, 3  ;;  %v11211_v0 = vld [vmem:[%s14295_s0 + $0x158] ss:$0 sps:$4 sm:$0x33]  }
 0x2c3   :  { %v6932_v1 = vsel %vm6861_vm7, %v6929_v47, %v6931_v42  ;;  %v3649_v52 = vshrl.u32 %v11211_v0, 16 }
 0x2c4   :  { %v3633_v31 = vrot.slane %v3631_v23, 1  ;;  %v6941_v23 = vrot.slane %v13252_v2, 3 }
 0x2c5   :  { %9879 = vmatmul.mubr.msk.bf16.gmra.mrb[56].mxu1 %vm667_vm2, %v3548_v27  ;;  %v3600_v27 = vrot.slane %v3598_v32, 2  ;;  %v6933_v32 = vrot.slane %v13178_v30, 3 }
 0x2c6   :  { %9882 = vmatprep.mubr.msk.bf16.mxu1 %vm667_vm2, %v3557_v10  ;;  %v3616_v10 = vshll.u32 %v13501_v7, 16  ;;  %v3637_v37 = vor.u32 %v3636_v14, %v3633_v31 }
 0x2c7   :  { %10219 = vmatmul.mubr.msk.bf16.gmra.mrb[52].mxu0 %vm667_vm2, %v6918_v3  ;;  %v3601_v17 = vor.u32 %v3600_v27, %v3597_v34  ;;  %v13700_v3 = vpop.permute.xlu0 %7845  ;;  %v6934_v30 = vsel %vm6861_vm7, %v6931_v42, %v6933_v32  ;;  %v3651_v42 = vrot.slane %v3649_v52, 1 }
 0x2c8   :  { %10222 = vmatprep.mubr.msk.bf16.mxu0 %vm667_vm2, %v6920_v20  ;;  %v3618_v49 = vrot.slane %v3616_v10, 2 }
 0x2c9   :  { %v3602_v7 = vsel %vm3270_vm3, %v3592_v40, %v3601_v17  ;;  %v3611_v8 = vsel %vm3270_vm3, %v3601_v17, %v3610_v60  ;;  %v13749_v17 = vpop.permute.xlu1 %8000 }
 0x2ca   :  { %14303 = vst [vmem:[#allocation5_spill] sm:$0xff] %v13749_v17 }
 0x2cb   :  { %v13718_v28 = vpop.permute.xlu0 %7850 }
 0x2cd   :  { %9883 = vmatmul.mubr.msk.bf16.gmra.mrb[60].mxu1 %vm667_vm2, %v3566_v12  ;;  %v3624_v12 = vrot.slane %v3622_v9, 1 }
 0x2ce   :  { %9886 = vmatprep.mubr.msk.bf16.mxu1 %vm667_vm2, %v3575_v16  ;;  %v3619_v16 = vor.u32 %v3618_v49, %v3615_v58 }
 0x2cf   :  { %10223 = vmatmul.mubr.msk.bf16.gmra.mrb[56].mxu0 %vm667_vm2, %v6922_v43  ;;  %v3628_v44 = vor.u32 %v3627_v53, %v3624_v12  ;;  %v3640_v43 = vshrl.u32 %v13535_v26, 16  ;;  %v13740_v27 = vpop.permute.xlu0 %7855  ;;  %v13769_v53 = vpop.permute.xlu1 %8005 }
 0x2d0   :  { %10226 = vmatprep.mubr.msk.bf16.mxu0 %vm667_vm2, %v6924_v61  ;;  %v3643_v61 = vshll.u32 %v13535_v26, 16  ;;  %v3620_v25 = vsel %vm3270_vm3, %v3610_v60, %v3619_v16  ;;  %v6937_v60 = vrot.slane %v13218_v45, 3  ;;  %14304 = vst [vmem:[#allocation6_spill] sm:$0xff] %v13769_v53 }
 0x2d1   :  { %v3629_v26 = vsel %vm3270_vm3, %v3619_v16, %v3628_v44  ;;  %v3642_v21 = vrot.slane %v3640_v43, 1  ;;  %v3638_v47 = vsel %vm3270_vm3, %v3628_v44, %v3637_v37  ;;  %v6943_v43 = vrot.slane %v13260_v5, 3 }
 0x2d2   :  { %v3645_v34 = vrot.slane %v3643_v61, 2  ;;  %v6938_v12 = vsel %vm6861_vm7, %v6935_v46, %v6937_v60  ;;  %v6945_v5 = vrot.slane %v13270_v48, 3 }
 0x2d3   :  { %v13758_v9 = vpop.permute.xlu0 %7860  ;;  %v6944_v31 = vsel %vm6861_vm7, %v6941_v23, %v6943_v43 }
 0x2d5   :  { %9887 = vmatmul.mubr.msk.bf16.gmra.mrb[64].mxu1 %vm667_vm2, %v3584_v50 }
 0x2d6   :  { %9890 = vmatprep.mubr.msk.bf16.mxu1 %vm667_vm2, %v3593_v22  ;;  %v6936_v22 = vsel %vm6861_vm7, %v6933_v32, %v6935_v46  ;;  %v13788_v32 = vpop.permute.xlu1 %8010 }
 0x2d7   :  { %10227 = vmatmul.mubr.msk.bf16.gmra.mrb[60].mxu0 %vm667_vm2, %v6926_v63  ;;  %v3652_v63 = vshll.u32 %v11211_v0, 16  ;;  %14305 = vst [vmem:[#allocation7_spill] sm:$0xff] %v13788_v32 }
 0x2d8   :  { %v13703_v20 = vpop.f32.mrb[0].mxu1  ;;  %10230 = vmatprep.mubr.msk.bf16.mxu0 %vm667_vm2, %v6928_v35  ;;  %v3646_v35 = vor.u32 %v3645_v34, %v3642_v21 }
 0x2d9   :  { %v13705_v29 = vpop.f32.mrb[1].mxu1  ;;  %v3654_v58 = vrot.slane %v3652_v63, 2 }
 0x2da   :  { %v13709_v4 = vpop.f32.mrb[2].mxu1 }
 0x2db   :  { %v13713_v51 = vpop.f32.mrb[3].mxu1 }
 0x2dd   :  { %9891 = vmatmul.mubr.msk.bf16.gmra.mrb[68].mxu1 %vm667_vm2, %v3602_v7  ;;  %v6939_v7 = vrot.slane %v13226_v13, 3 }
 0x2de   :  { %9894 = vmatprep.mubr.msk.bf16.mxu1 %vm667_vm2, %v3611_v8  ;;  %v3647_v8 = vsel %vm3270_vm3, %v3637_v37, %v3646_v35 }
 0x2df   :  { %10231 = vmatmul.mubr.msk.bf16.gmra.mrb[64].mxu0 %vm667_vm2, %v6930_v41  ;;  %v6940_v45 = vsel %vm6861_vm7, %v6937_v60, %v6939_v7  ;;  %v3655_v41 = vor.u32 %v3654_v58, %v3651_v42 }
 0x2e0   :  { %v13727_v38 = vpop.f32.mrb[4].mxu1  ;;  %10234 = vmatprep.mubr.msk.bf16.mxu0 %vm667_vm2, %v6932_v1  ;;  %v13773_v1 = vpop.permute.xlu0 %7865 }
 0x2e1   :  { %v13729_v6 = vpop.f32.mrb[5].mxu1  ;;  %v3656_v44 = vsel %vm3270_vm3, %v3646_v35, %v3655_v41 }
 0x2e2   :  { %v13733_v40 = vpop.f32.mrb[6].mxu1 }
 0x2e3   :  { %v13737_v50 = vpop.f32.mrb[7].mxu1 }
 0x2e4   :  { %v13792_v46 = vpop.permute.xlu0 %7870 }
 0x2e5   :  { %9895 = vmatmul.mubr.msk.bf16.gmra.mrb[72].mxu1 %vm667_vm2, %v3620_v25  ;;  %v6942_v25 = vsel %vm6861_vm7, %v6939_v7, %v6941_v23 }
 0x2e6   :  { %9898 = vmatprep.mubr.msk.bf16.mxu1 %vm667_vm2, %v3629_v26  ;;  %v13802_v26 = vpop.permute.xlu1 %8015 }
 0x2e7   :  { %10235 = vmatmul.mubr.msk.bf16.gmra.mrb[68].mxu0 %vm667_vm2, %v6934_v30  ;;  %14306 = vst [vmem:[#allocation8_spill] sm:$0xff] %v13802_v26 }
 0x2e8   :  { %v13752_v15 = vpop.f32.mrb[8].mxu1  ;;  %10238 = vmatprep.mubr.msk.bf16.mxu0 %vm667_vm2, %v6936_v22  ;;  %v13808_v30 = vpop.permute.xlu0 %7875  ;;  %v6946_v22 = vsel %vm6861_vm7, %v6943_v43, %v6945_v5 }
 0x2e9   :  { %v13754_v10 = vpop.f32.mrb[9].mxu1 }
 0x2ea   :  { %v13760_v59 = vpop.f32.mrb[10].mxu1  ;;  %v13811_v37 = vpop.permute.xlu1 %8020 }
 0x2eb   :  { %v13764_v49 = vpop.f32.mrb[11].mxu1  ;;  %14307 = vst [vmem:[#allocation9_spill] sm:$0xff] %v13811_v37 }
 0x2ec   :  { %v13818_v63 = vpop.permute.xlu0 %7880 }
 0x2ed   :  { %9899 = vmatmul.mubr.msk.bf16.gmra.mrb[76].mxu1 %vm667_vm2, %v3638_v47 }
 0x2ee   :  { %9902 = vmatprep.mubr.msk.bf16.mxu1 %vm667_vm2, %v3647_v8  ;;  %v13824_v60 = vpop.permute.xlu1 %8025 }
 0x2ef   :  { %10239 = vmatmul.mubr.msk.bf16.gmra.mrb[72].mxu0 %vm667_vm2, %v6938_v12  ;;  %14308 = vst [vmem:[#allocation10_spill] sm:$0xff] %v13824_v60 }
 0x2f0   :  { %v13776_v13 = vpop.f32.mrb[12].mxu1  ;;  %10242 = vmatprep.mubr.msk.bf16.mxu0 %vm667_vm2, %v6940_v45  ;;  %v13826_v47 = vpop.permute.xlu0 %7885 }
 0x2f1   :  { %v13778_v16 = vpop.f32.mrb[13].mxu1 }
 0x2f2   :  { %v13782_v57 = vpop.f32.mrb[14].mxu1  ;;  %v13836_v12 = vpop.permute.xlu1 %8030 }
 0x2f3   :  { %v13786_v61 = vpop.f32.mrb[15].mxu1  ;;  %14312 = vst [vmem:[#allocation14_spill] sm:$0xff] %v13836_v12 }
 0x2f4   :  { %v13838_v45 = vpop.permute.xlu0 %7890 }
 0x2f5   :  { %9903 = vmatmul.mubr.msk.bf16.gmra.mrb[80].mxu1 %vm667_vm2, %v3656_v44 }
 0x2f6   :  { %v13844_v44 = vpop.permute.xlu1 %8035 }
 0x2f7   :  { %10243 = vmatmul.mubr.msk.bf16.gmra.mrb[76].mxu0 %vm667_vm2, %v6942_v25  ;;  %14315 = vst [vmem:[#allocation17_spill] sm:$0xff] %v13844_v44 }
 0x2f8   :  { %v13796_v2 = vpop.f32.mrb[16].mxu1  ;;  %10246 = vmatprep.mubr.msk.bf16.mxu0 %vm667_vm2, %v6944_v31  ;;  %v13850_v31 = vpop.permute.xlu0 %7895 }
 0x2f9   :  { %v13798_v14 = vpop.f32.mrb[17].mxu1 }
 0x2fa   :  { %v13804_v21 = vpop.f32.mrb[18].mxu1  ;;  %v13852_v5 = vpop.permute.xlu1 %8040 }
 0x2fb   :  { %v13806_v34 = vpop.f32.mrb[19].mxu1  ;;  %14318 = vst [vmem:[#allocation20_spill] sm:$0xff] %v13852_v5 }
 0x2fc   :  { %v13858_v12 = vpop.permute.xlu0 %7900 }
 0x2fe   :  { %v13864_v32 = vpop.permute.xlu1 %8045 }
 0x2ff   :  { %10247 = vmatmul.mubr.msk.bf16.gmra.mrb[80].mxu0 %vm667_vm2, %v6946_v22  ;;  %14323 = vst [vmem:[#allocation25_spill] sm:$0xff] %v13864_v32 }
 0x300   :  { %v13814_v0 = vpop.f32.mrb[20].mxu1  ;;  %v13866_v44 = vpop.permute.xlu0 %7905 }
 0x301   :  { %v13816_v52 = vpop.f32.mrb[21].mxu1  ;;  %14324 = vst [vmem:[#allocation26_spill] sm:$0xff] %v13866_v44 }
 0x302   :  { %v13820_v48 = vpop.f32.mrb[22].mxu1 }
 0x303   :  { %v13822_v35 = vpop.f32.mrb[23].mxu1 }
 0x308   :  { %v13828_v7 = vpop.f32.mrb[24].mxu1 }
 0x309   :  { %v13830_v42 = vpop.f32.mrb[25].mxu1 }
 0x30a   :  { %14309 = vst [vmem:[#allocation11_spill] sm:$0xff] %v13830_v42  ;;  %v13832_v58 = vpop.f32.mrb[26].mxu1 }
 0x30b   :  { %14310 = vst [vmem:[#allocation12_spill] sm:$0xff] %v13832_v58  ;;  %v13834_v8 = vpop.f32.mrb[27].mxu1 }
 0x30c   :  { %14311 = vst [vmem:[#allocation13_spill] sm:$0xff] %v13834_v8 }
 0x310   :  { %v13840_v41 = vpop.f32.mrb[28].mxu1 }
 0x311   :  { %14313 = vst [vmem:[#allocation15_spill] sm:$0xff] %v13840_v41  ;;  %v13842_v23 = vpop.f32.mrb[29].mxu1 }
 0x312   :  { %14314 = vst [vmem:[#allocation16_spill] sm:$0xff] %v13842_v23  ;;  %v13846_v43 = vpop.f32.mrb[30].mxu1 }
 0x313   :  { %14316 = vst [vmem:[#allocation18_spill] sm:$0xff] %v13846_v43  ;;  %v13848_v25 = vpop.f32.mrb[31].mxu1 }
 0x314   :  { %14317 = vst [vmem:[#allocation19_spill] sm:$0xff] %v13848_v25 }
 0x318   :  { %v13854_v22 = vpop.f32.mrb[32].mxu1 }
 0x319   :  { %14319 = vst [vmem:[#allocation21_spill] sm:$0xff] %v13854_v22  ;;  %v13856_v60 = vpop.f32.mrb[33].mxu1  ;;  %v13876_v22 = vpop.permute.xlu1 %8050 }
 0x31a   :  { %14320 = vst [vmem:[#allocation22_spill] sm:$0xff] %v13856_v60  ;;  %v13860_v26 = vpop.f32.mrb[34].mxu1  ;;  %14329 = vst [vmem:[#allocation31_spill] sm:$0xff] %v13876_v22  ;;  %v13878_v60 = vpop.permute.xlu0 %7910  ;;  %v11082_v22 = vld [vmem:[%s14299_s4] sm:$0xff]  }
 0x31b   :  { %14321 = vst [vmem:[#allocation23_spill] sm:$0xff] %v13860_v26  ;;  %v13862_v37 = vpop.f32.mrb[35].mxu1  ;;  %14330 = vst [vmem:[#allocation32_spill] sm:$0xff] %v13878_v60 }
 0x31c   :  { %14322 = vst [vmem:[#allocation24_spill] sm:$0xff] %v13862_v37 }
 0x31d   :  { %v13884_v37 = vpop.permute.xlu1 %8055 }
 0x31e   :  { %14333 = vst [vmem:[#allocation35_spill] sm:$0xff] %v13884_v37  ;;  %v14302_v37 = vmov 0.0  }
 0x31f   :  { %10250 = vmatprep.subr.bf16.mxu1 %v14302_v37 }
 0x320   :  { %v13868_v53 = vpop.f32.mrb[36].mxu1  ;;  %10251 = vmatpush3.bf16.msra.mxu1 %v11082_v22 }
 0x321   :  { %14325 = vst [vmem:[#allocation27_spill] sm:$0xff] %v13868_v53  ;;  %v13870_v17 = vpop.f32.mrb[37].mxu1  ;;  %v13890_v53 = vpop.permute.xlu0 %7915  ;;  %10252 = vmatprep.subr.bf16.mxu1 %v14302_v37 }
 0x322   :  { %14326 = vst [vmem:[#allocation28_spill] sm:$0xff] %v13870_v17  ;;  %v13872_v25 = vpop.f32.mrb[38].mxu1  ;;  %14336 = vst [vmem:[#allocation38_spill] sm:$0xff] %v13890_v53  ;;  %v13892_v17 = vpop.permute.xlu1 %8060 }
 0x323   :  { %14327 = vst [vmem:[#allocation29_spill] sm:$0xff] %v13872_v25  ;;  %v13874_v5 = vpop.f32.mrb[39].mxu1  ;;  %14337 = vst [vmem:[#allocation39_spill] sm:$0xff] %v13892_v17 }
 0x324   :  { %14328 = vst [vmem:[#allocation30_spill] sm:$0xff] %v13874_v5 }
 0x325   :  { %v13894_v25 = vpop.permute.xlu0 %7920 }
 0x326   :  { %14338 = vst [vmem:[#allocation40_spill] sm:$0xff] %v13894_v25  ;;  %v13908_v53 = vpop.permute.xlu1 %8065 }
 0x327   :  { %14339 = vst [vmem:[#allocation41_spill] sm:$0xff] %v13908_v53 }
 0x328   :  { %v13880_v43 = vpop.f32.mrb[40].mxu1 }
 0x329   :  { %14331 = vst [vmem:[#allocation33_spill] sm:$0xff] %v13880_v43  ;;  %v13882_v26 = vpop.f32.mrb[41].mxu1  ;;  %v13914_v58 = vpop.permute.xlu0 %7925 }
 0x32a   :  { %14332 = vst [vmem:[#allocation34_spill] sm:$0xff] %v13882_v26  ;;  %v13886_v32 = vpop.f32.mrb[42].mxu1  ;;  %v13902_v26 = vld [vmem:[%s14297_s2] ss:$0 sm:$0xff]  ;;  %v13919_v42 = vpop.permute.xlu1 %8070 }
 0x32b   :  { %14334 = vst [vmem:[#allocation36_spill] sm:$0xff] %v13886_v32  ;;  %v13888_v23 = vpop.f32.mrb[43].mxu1 }
 0x32c   :  { %14335 = vst [vmem:[#allocation37_spill] sm:$0xff] %v13888_v23 }
 0x332   :  { %v10168_v5 = vpop.f32.mrb[0].mxu0 }
 0x333   :  { %v10260_v23 = vadd.f32 %v10168_v5, %v13703_v20  ;;  %v7110_v32 = vpop.f32.mrb[1].mxu0 }
 0x334   :  { %v10261_v17 = vadd.f32 %v7110_v32, %v13705_v29  ;;  %v10169_v43 = vpop.f32.mrb[2].mxu0 }
 0x335   :  { %v7538_v25 = vadd.f32 %v10260_v23, %v13902_v26  ;;  %v10262_v41 = vadd.f32 %v10169_v43, %v13709_v4  ;;  %v7113_v60 = vpop.f32.mrb[3].mxu0  ;;  %v13925_v43 = vpop.permute.xlu0 %7930 }
 0x336   :  { %v7536_v8 = vadd.f32 %v10261_v17, %v13902_v26  ;;  %v10263_v44 = vadd.f32 %v7113_v60, %v13713_v51 }
 0x337   :  { %v7539_v20 = vadd.f32 %v10262_v41, %v13902_v26  ;;  %v7622_v5 = vmax.f32 %v7538_v25, 0.0 }
 0x338   :  { %v7620_v29 = vmax.f32 %v7536_v8, 0.0  ;;  %v7537_v32 = vadd.f32 %v10263_v44, %v13902_v26 }
 0x339   :  { %v7623_v22 = vmax.f32 %v7539_v20, 0.0  ;;  %v8210_v51 = vmul.f32 %v13568_v18, %v7622_v5 }
 0x33a   :  { %v8208_v37 = vmul.f32 %v13522_v24, %v7620_v29  ;;  %v7621_v53 = vmax.f32 %v7537_v32, 0.0  ;;  %v10172_v23 = vpop.f32.mrb[4].mxu0 }
 0x33b   :  { %v10264_v4 = vadd.f32 %v10172_v23, %v13727_v38  ;;  %v7126_v17 = vpop.f32.mrb[5].mxu0  ;;  %v8211_v44 = vmul.f32 %v13584_v56, %v7623_v22  ;;  %v8296_v5 = vsel %vm8292_vm8, %v8210_v51, 0.0  ;;  %v13937_v23 = vpop.permute.xlu1 %8075 }
 0x33c   :  { %v8209_v60 = vmul.f32 %v13553_v33, %v7621_v53  ;;  %v10265_v41 = vadd.f32 %v7126_v17, %v13729_v6  ;;  %v10173_v8 = vpop.f32.mrb[6].mxu0  ;;  %v8293_v29 = vsel %vm8292_vm8, %v8208_v37, 0.0 }
 0x33d   :  { %v7542_v24 = vadd.f32 %v10264_v4, %v13902_v26  ;;  %v10266_v25 = vadd.f32 %v10173_v8, %v13733_v40  ;;  %v7129_v20 = vpop.f32.mrb[7].mxu0  ;;  %v8298_v37 = vsel %vm8292_vm8, %v8211_v44, 0.0 }
 0x33e   :  { %v8294_v38 = vsel %vm8292_vm8, %v8209_v60, 0.0  ;;  %v7540_v18 = vadd.f32 %v10265_v41, %v13902_v26  ;;  %v10267_v33 = vadd.f32 %v7129_v20, %v13737_v50  ;;  %v13941_v50 = vpop.permute.xlu0 %7935 }
 0x33f   :  { %v8295_v53 = vadd.f32 %v8294_v38, %v8293_v29  ;;  %v7543_v6 = vadd.f32 %v10266_v25, %v13902_v26  ;;  %v7626_v32 = vmax.f32 %v7542_v24, 0.0 }
 0x340   :  { %v7624_v56 = vmax.f32 %v7540_v18, 0.0  ;;  %v7541_v22 = vadd.f32 %v10267_v33, %v13902_v26 }
 0x341   :  { %v8297_v40 = vadd.f32 %v8296_v5, %v8295_v53  ;;  %v7627_v17 = vmax.f32 %v7543_v6, 0.0  ;;  %v8214_v24 = vmul.f32 %v13631_v11, %v7626_v32  ;;  %v13954_v32 = vpop.permute.xlu1 %8080 }
 0x342   :  { %v8212_v4 = vmul.f32 %v13598_v36, %v7624_v56  ;;  %v7625_v60 = vmax.f32 %v7541_v22, 0.0  ;;  %v10176_v41 = vpop.f32.mrb[8].mxu0 }
 0x343   :  { %v8299_v8 = vadd.f32 %v8298_v37, %v8297_v40  ;;  %v10268_v25 = vadd.f32 %v10176_v41, %v13752_v15  ;;  %v7142_v51 = vpop.f32.mrb[9].mxu0  ;;  %v8215_v6 = vmul.f32 %v13646_v39, %v7627_v17  ;;  %v8304_v56 = vsel %vm8292_vm8, %v8214_v24, 0.0  ;;  %v13959_v37 = vpop.permute.xlu0 %7940 }
 0x344   :  { %v8300_v20 = vsel %vm8292_vm8, %v8212_v4, 0.0  ;;  %v8213_v29 = vmul.f32 %v13616_v19, %v7625_v60  ;;  %v10269_v38 = vadd.f32 %v7142_v51, %v13754_v10  ;;  %v10177_v44 = vpop.f32.mrb[10].mxu0 }
 0x345   :  { %v8301_v18 = vadd.f32 %v8300_v20, %v8299_v8  ;;  %v7546_v36 = vadd.f32 %v10268_v25, %v13902_v26  ;;  %v10270_v33 = vadd.f32 %v10177_v44, %v13760_v59  ;;  %v7145_v53 = vpop.f32.mrb[11].mxu0  ;;  %v8306_v4 = vsel %vm8292_vm8, %v8215_v6, 0.0 }
 0x346   :  { %v8302_v15 = vsel %vm8292_vm8, %v8213_v29, 0.0  ;;  %v7544_v5 = vadd.f32 %v10269_v38, %v13902_v26  ;;  %v10271_v11 = vadd.f32 %v7145_v53, %v13764_v49 }
 0x347   :  { %v8303_v19 = vadd.f32 %v8302_v15, %v8301_v18  ;;  %v7547_v10 = vadd.f32 %v10270_v33, %v13902_v26  ;;  %v7630_v22 = vmax.f32 %v7546_v36, 0.0  ;;  %v13968_v18 = vpop.permute.xlu1 %8085 }
 0x348   :  { %v7628_v40 = vmax.f32 %v7544_v5, 0.0  ;;  %v7545_v59 = vadd.f32 %v10271_v11, %v13902_v26 }
 0x349   :  { %v8305_v39 = vadd.f32 %v8304_v56, %v8303_v19  ;;  %v7631_v60 = vmax.f32 %v7547_v10, 0.0  ;;  %v8218_v24 = vmul.f32 %v13687_v55, %v7630_v22 }
 0x34a   :  { %v8216_v17 = vmul.f32 %v13660_v62, %v7628_v40  ;;  %v7629_v49 = vmax.f32 %v7545_v59, 0.0  ;;  %v10180_v41 = vpop.f32.mrb[12].mxu0 }
 0x34b   :  { %v8307_v8 = vadd.f32 %v8306_v4, %v8305_v39  ;;  %v10272_v25 = vadd.f32 %v10180_v41, %v13776_v13  ;;  %v7158_v51 = vpop.f32.mrb[13].mxu0  ;;  %v8219_v13 = vmul.f32 %v13700_v3, %v7631_v60  ;;  %v8312_v11 = vsel %vm8292_vm8, %v8218_v24, 0.0 }
 0x34c   :  { %v8308_v20 = vsel %vm8292_vm8, %v8216_v17, 0.0  ;;  %v8217_v29 = vmul.f32 %v13674_v54, %v7629_v49  ;;  %v10273_v38 = vadd.f32 %v7158_v51, %v13778_v16  ;;  %v10181_v44 = vpop.f32.mrb[14].mxu0  ;;  %v13976_v54 = vpop.permute.xlu0 %7945 }
 0x34d   :  { %v8309_v36 = vadd.f32 %v8308_v20, %v8307_v8  ;;  %v7550_v62 = vadd.f32 %v10272_v25, %v13902_v26  ;;  %v10274_v33 = vadd.f32 %v10181_v44, %v13782_v57  ;;  %v7161_v53 = vpop.f32.mrb[15].mxu0  ;;  %v8314_v3 = vsel %vm8292_vm8, %v8219_v13, 0.0 }
 0x34e   :  { %v8310_v6 = vsel %vm8292_vm8, %v8217_v29, 0.0  ;;  %v7548_v55 = vadd.f32 %v10273_v38, %v13902_v26  ;;  %v10275_v15 = vadd.f32 %v7161_v53, %v13786_v61  ;;  %v13983_v61 = vpop.permute.xlu1 %8090 }
 0x34f   :  { %v8311_v16 = vadd.f32 %v8310_v6, %v8309_v36  ;;  %v7551_v5 = vadd.f32 %v10274_v33, %v13902_v26  ;;  %v7634_v19 = vmax.f32 %v7550_v62, 0.0 }
 0x350   :  { %v7632_v10 = vmax.f32 %v7548_v55, 0.0  ;;  %v7549_v57 = vadd.f32 %v10275_v15, %v13902_v26  ;;  %v13990_v24 = vpop.permute.xlu0 %7950 }
 0x351   :  { %v8313_v56 = vadd.f32 %v8312_v11, %v8311_v16  ;;  %v7635_v40 = vmax.f32 %v7551_v5, 0.0  ;;  %v8222_v49 = vmul.f32 %v13758_v9, %v7634_v19 }
 0x352   :  { %v8220_v22 = vmul.f32 %v13718_v28, %v7632_v10  ;;  %v7633_v59 = vmax.f32 %v7549_v57, 0.0  ;;  %v10184_v39 = vpop.f32.mrb[16].mxu0  ;;  %v14001_v6 = vpop.permute.xlu1 %8095 }
 0x353   :  { %v8315_v4 = vadd.f32 %v8314_v3, %v8313_v56  ;;  %v10276_v17 = vadd.f32 %v10184_v39, %v13796_v2  ;;  %v7174_v60 = vpop.f32.mrb[17].mxu0  ;;  %v8223_v2 = vmul.f32 %v13773_v1, %v7635_v40  ;;  %v8320_v62 = vsel %vm8292_vm8, %v8222_v49, 0.0  ;;  %v11083_v1 = vld [vmem:[%s14299_s4 + $0x8] sm:$0xff]  }
 0x354   :  { %v8316_v41 = vsel %vm8292_vm8, %v8220_v22, 0.0  ;;  %v8221_v8 = vmul.f32 %v13740_v27, %v7633_v59  ;;  %v10277_v25 = vadd.f32 %v7174_v60, %v13798_v14  ;;  %v10185_v51 = vpop.f32.mrb[18].mxu0  ;;  %v14008_v11 = vpop.permute.xlu0 %7955  ;;  %10253 = vmatpush3.bf16.msra.mxu1 %v11083_v1 }
 0x355   :  { %v8317_v28 = vadd.f32 %v8316_v41, %v8315_v4  ;;  %v7554_v20 = vadd.f32 %v10276_v17, %v13902_v26  ;;  %v10278_v29 = vadd.f32 %v10185_v51, %v13804_v21  ;;  %v7177_v38 = vpop.f32.mrb[19].mxu0  ;;  %v8322_v55 = vsel %vm8292_vm8, %v8223_v2, 0.0 }
 0x356   :  { %v8318_v44 = vsel %vm8292_vm8, %v8221_v8, 0.0  ;;  %v7552_v9 = vadd.f32 %v10277_v25, %v13902_v26  ;;  %v10279_v36 = vadd.f32 %v7177_v38, %v13806_v34  ;;  %v14021_v41 = vpop.permute.xlu1 %8100 }
 0x357   :  { %v8319_v27 = vadd.f32 %v8318_v44, %v8317_v28  ;;  %v7555_v14 = vadd.f32 %v10278_v29, %v13902_v26  ;;  %v7638_v33 = vmax.f32 %v7554_v20, 0.0 }
 0x358   :  { %v7636_v53 = vmax.f32 %v7552_v9, 0.0  ;;  %v7553_v13 = vadd.f32 %v10279_v36, %v13902_v26  ;;  %v14026_v28 = vpop.permute.xlu0 %7960 }
 0x359   :  { %v8321_v21 = vadd.f32 %v8320_v62, %v8319_v27  ;;  %v7639_v15 = vmax.f32 %v7555_v14, 0.0  ;;  %v8226_v56 = vmul.f32 %v13818_v63, %v7638_v33  ;;  %v14340_v33 = vld [vmem:[#allocation11_spill] sm:$0xff] }
 0x35a   :  { %v8224_v34 = vmul.f32 %v13792_v46, %v7636_v53  ;;  %v7637_v16 = vmax.f32 %v7553_v13, 0.0  ;;  %v10188_v5 = vpop.f32.mrb[20].mxu0 }
 0x35b   :  { %v8323_v19 = vadd.f32 %v8322_v55, %v8321_v21  ;;  %v10280_v10 = vadd.f32 %v10188_v5, %v13814_v0  ;;  %v7190_v57 = vpop.f32.mrb[21].mxu0  ;;  %v8227_v60 = vmul.f32 %v13826_v47, %v7639_v15  ;;  %v8328_v8 = vsel %vm8292_vm8, %v8226_v56, 0.0  ;;  %v14035_v21 = vpop.permute.xlu1 %8105  ;;  %v14341_v55 = vld [vmem:[#allocation12_spill] sm:$0xff] }
 0x35c   :  { %v8324_v3 = vsel %vm8292_vm8, %v8224_v34, 0.0  ;;  %v8225_v22 = vmul.f32 %v13808_v30, %v7637_v16  ;;  %v10281_v40 = vadd.f32 %v7190_v57, %v13816_v52  ;;  %v10189_v59 = vpop.f32.mrb[22].mxu0  ;;  %v14342_v16 = vld [vmem:[#allocation26_spill] sm:$0xff] }
 0x35d   :  { %v8325_v46 = vadd.f32 %v8324_v3, %v8323_v19  ;;  %v7558_v39 = vadd.f32 %v10280_v10, %v13902_v26  ;;  %v10282_v4 = vadd.f32 %v10189_v59, %v13820_v48  ;;  %v7193_v17 = vpop.f32.mrb[23].mxu0  ;;  %v8330_v20 = vsel %vm8292_vm8, %v8227_v60, 0.0  ;;  %v14343_v19 = vld [vmem:[#allocation13_spill] sm:$0xff] }
 0x35e   :  { %v8326_v0 = vsel %vm8292_vm8, %v8225_v22, 0.0  ;;  %v7556_v49 = vadd.f32 %v10281_v40, %v13902_v26  ;;  %v10283_v63 = vadd.f32 %v7193_v17, %v13822_v35 }
 0x35f   :  { %v8327_v30 = vadd.f32 %v8326_v0, %v8325_v46  ;;  %v7559_v52 = vadd.f32 %v10282_v4, %v13902_v26  ;;  %v7642_v25 = vmax.f32 %v7558_v39, 0.0  ;;  %v14344_v4 = vld [vmem:[#allocation32_spill] sm:$0xff] }
 0x360   :  { %v7640_v51 = vmax.f32 %v7556_v49, 0.0  ;;  %v7557_v48 = vadd.f32 %v10283_v63, %v13902_v26  ;;  %v14050_v63 = vpop.permute.xlu1 %8110 }
 0x361   :  { %v8329_v47 = vadd.f32 %v8328_v8, %v8327_v30  ;;  %v7643_v38 = vmax.f32 %v7559_v52, 0.0  ;;  %v8230_v27 = vmul.f32 %v13858_v12, %v7642_v25  ;;  %v14345_v52 = vld [vmem:[#allocation15_spill] sm:$0xff] }
 0x362   :  { %v8228_v29 = vmul.f32 %v13838_v45, %v7640_v51  ;;  %v7641_v35 = vmax.f32 %v7557_v48, 0.0  ;;  %v10192_v2 = vpop.f32.mrb[24].mxu0  ;;  %v14346_v51 = vld [vmem:[#allocation40_spill] sm:$0xff] }
 0x363   :  { %v8331_v44 = vadd.f32 %v8330_v20, %v8329_v47  ;;  %v10284_v9 = vadd.f32 %v10192_v2, %v13828_v7  ;;  %v7206_v36 = vpop.f32.mrb[25].mxu0  ;;  %v8231_v7 = vmul.f32 %v14342_v16, %v7643_v38  ;;  %v8336_v3 = vsel %vm8292_vm8, %v8230_v27, 0.0  ;;  %v14347_v20 = vld [vmem:[#allocation38_spill] sm:$0xff]  ;;  %v14348_v38 = vld [vmem:[#allocation16_spill] sm:$0xff] }
 0x364   :  { %v8332_v14 = vsel %vm8292_vm8, %v8228_v29, 0.0  ;;  %v8229_v62 = vmul.f32 %v13850_v31, %v7641_v35  ;;  %v10285_v53 = vadd.f32 %v7206_v36, %v14340_v33  ;;  %v10193_v13 = vpop.f32.mrb[26].mxu0  ;;  %v14043_v31 = vpop.permute.xlu0 %7965  ;;  %v14349_v27 = vld [vmem:[#allocation18_spill] sm:$0xff] }
 0x365   :  { %v8333_v1 = vadd.f32 %v8332_v14, %v8331_v44  ;;  %v7562_v45 = vadd.f32 %v10284_v9, %v13902_v26  ;;  %v10286_v34 = vadd.f32 %v10193_v13, %v14341_v55  ;;  %v7209_v15 = vpop.f32.mrb[27].mxu0  ;;  %v8338_v39 = vsel %vm8292_vm8, %v8231_v7, 0.0 }
 0x366   :  { %v8334_v5 = vsel %vm8292_vm8, %v8229_v62, 0.0  ;;  %v7560_v12 = vadd.f32 %v10285_v53, %v13902_v26  ;;  %v10287_v10 = vadd.f32 %v7209_v15, %v14343_v19 }
 0x367   :  { %v8335_v57 = vadd.f32 %v8334_v5, %v8333_v1  ;;  %v7563_v56 = vadd.f32 %v10286_v34, %v13902_v26  ;;  %v7646_v22 = vmax.f32 %v7562_v45, 0.0  ;;  %v14350_v1 = vld [vmem:[#allocation19_spill] sm:$0xff] }
 0x368   :  { %v7644_v40 = vmax.f32 %v7560_v12, 0.0  ;;  %v7561_v59 = vadd.f32 %v10287_v10, %v13902_v26  ;;  %v14057_v44 = vpop.permute.xlu0 %7970  ;;  %v14068_v12 = vpop.permute.xlu1 %8115 }
 0x369   :  { %v8337_v46 = vadd.f32 %v8336_v3, %v8335_v57  ;;  %v7647_v60 = vmax.f32 %v7563_v56, 0.0  ;;  %v8234_v48 = vmul.f32 %v14346_v51, %v7646_v22 }
 0x36a   :  { %v8232_v17 = vmul.f32 %v14344_v4, %v7644_v40  ;;  %v7645_v0 = vmax.f32 %v7561_v59, 0.0  ;;  %v10196_v49 = vpop.f32.mrb[28].mxu0 }
 0x36b   :  { %v8339_v30 = vadd.f32 %v8338_v39, %v8337_v46  ;;  %v10288_v8 = vadd.f32 %v10196_v49, %v14345_v52  ;;  %v7222_v25 = vpop.f32.mrb[29].mxu0  ;;  %v8235_v33 = vmul.f32 %v13914_v58, %v7647_v60  ;;  %v8344_v16 = vsel %vm8292_vm8, %v8234_v48, 0.0  ;;  %v14351_v46 = vld [vmem:[#allocation21_spill] sm:$0xff] }
 0x36c   :  { %v8340_v47 = vsel %vm8292_vm8, %v8232_v17, 0.0  ;;  %v8233_v29 = vmul.f32 %v14347_v20, %v7645_v0  ;;  %v10289_v35 = vadd.f32 %v7222_v25, %v14348_v38  ;;  %v10197_v2 = vpop.f32.mrb[30].mxu0  ;;  %v14072_v22 = vpop.permute.xlu0 %7975  ;;  %v14352_v0 = vld [vmem:[#allocation22_spill] sm:$0xff]  ;;  %v14354_v48 = vmov 0.0  }
 0x36d   :  { %v8341_v9 = vadd.f32 %v8340_v47, %v8339_v30  ;;  %v7566_v36 = vadd.f32 %v10288_v8, %v13902_v26  ;;  %v10290_v14 = vadd.f32 %v10197_v2, %v14349_v27  ;;  %v7225_v62 = vpop.f32.mrb[31].mxu0  ;;  %v8346_v58 = vsel %vm8292_vm8, %v8235_v33, 0.0  ;;  %v14353_v8 = vld [vmem:[#allocation23_spill] sm:$0xff]  ;;  %10254 = vmatprep.mubr.msk.bf16.mxu1 %vm11239_vm9, %v14354_v48  ;;  %v14086_v38 = vpop.permute.xlu1 %8120 }
 0x36e   :  { %v8342_v53 = vsel %vm8292_vm8, %v8233_v29, 0.0  ;;  %v7564_v13 = vadd.f32 %v10289_v35, %v13902_v26  ;;  %v10291_v45 = vadd.f32 %v7225_v62, %v14350_v1  ;;  %v14355_v29 = vld [vmem:[#allocation24_spill] sm:$0xff] }
 0x36f   :  { %v8343_v55 = vadd.f32 %v8342_v53, %v8341_v9  ;;  %v7650_v34 = vmax.f32 %v7566_v36, 0.0  ;;  %v7567_v15 = vadd.f32 %v10290_v14, %v13902_v26 }
 0x370   :  { %v7648_v7 = vmax.f32 %v7564_v13, 0.0  ;;  %v7565_v5 = vadd.f32 %v10291_v45, %v13902_v26  ;;  %v7981_v62 = vpop.permute.xlu0 %7980 }
 0x371   :  { %v8345_v19 = vadd.f32 %v8344_v16, %v8343_v55  ;;  %v7651_v57 = vmax.f32 %v7567_v15, 0.0  ;;  %v8238_v40 = vmul.f32 %v13959_v37, %v7650_v34  ;;  %v14356_v34 = vld [vmem:[#allocation27_spill] sm:$0xff] }
 0x372   :  { %v8236_v10 = vmul.f32 %v13925_v43, %v7648_v7  ;;  %v7649_v56 = vmax.f32 %v7565_v5, 0.0  ;;  %v10200_v3 = vpop.f32.mrb[32].mxu0 }
 0x373   :  { %v8347_v59 = vadd.f32 %v8346_v58, %v8345_v19  ;;  %v10292_v39 = vadd.f32 %v10200_v3, %v14351_v46  ;;  %v7238_v4 = vpop.f32.mrb[33].mxu0  ;;  %v8239_v37 = vmul.f32 %v13976_v54, %v7651_v57  ;;  %v8352_v9 = vsel %vm8292_vm8, %v8238_v40, 0.0  ;;  %v14357_v58 = vld [vmem:[#allocation28_spill] sm:$0xff]  ;;  %v14358_v40 = vld [vmem:[#allocation29_spill] sm:$0xff] }
 0x374   :  { %v8348_v17 = vsel %vm8292_vm8, %v8236_v10, 0.0  ;;  %v8237_v60 = vmul.f32 %v13941_v50, %v7649_v56  ;;  %v10293_v49 = vadd.f32 %v7238_v4, %v14352_v0  ;;  %v10201_v30 = vpop.f32.mrb[34].mxu0  ;;  %v14098_v56 = vpop.permute.xlu1 %8125 }
 0x375   :  { %v8349_v52 = vadd.f32 %v8348_v17, %v8347_v59  ;;  %v7570_v43 = vadd.f32 %v10292_v39, %v13902_v26  ;;  %v10294_v25 = vadd.f32 %v10201_v30, %v14353_v8  ;;  %v7241_v51 = vpop.f32.mrb[35].mxu0  ;;  %v8354_v54 = vsel %vm8292_vm8, %v8239_v37, 0.0  ;;  %v14359_v17 = vld [vmem:[#allocation30_spill] sm:$0xff] }
 0x376   :  { %v8350_v47 = vsel %vm8292_vm8, %v8237_v60, 0.0  ;;  %v7568_v20 = vadd.f32 %v10293_v49, %v13902_v26  ;;  %v10295_v50 = vadd.f32 %v7241_v51, %v14355_v29 }
 0x377   :  { %v8351_v35 = vadd.f32 %v8350_v47, %v8349_v52  ;;  %v7571_v2 = vadd.f32 %v10294_v25, %v13902_v26  ;;  %v7654_v36 = vmax.f32 %v7570_v43, 0.0 }
 0x378   :  { %v7652_v27 = vmax.f32 %v7568_v20, 0.0  ;;  %v7569_v14 = vadd.f32 %v10295_v50, %v13902_v26 }
 0x379   :  { %v8353_v33 = vadd.f32 %v8352_v9, %v8351_v35  ;;  %v7655_v13 = vmax.f32 %v7571_v2, 0.0  ;;  %v8242_v7 = vmul.f32 %v14026_v28, %v7654_v36  ;;  %v14111_v2 = vpop.permute.xlu1 %8130  ;;  %v14360_v36 = vld [vmem:[#allocation33_spill] sm:$0xff] }
 0x37a   :  { %v8240_v53 = vmul.f32 %v13990_v24, %v7652_v27  ;;  %v7653_v1 = vmax.f32 %v7569_v14, 0.0  ;;  %v10204_v45 = vpop.f32.mrb[36].mxu0 }
 0x37b   :  { %v8355_v55 = vadd.f32 %v8354_v54, %v8353_v33  ;;  %v10296_v15 = vadd.f32 %v10204_v45, %v14356_v34  ;;  %v7254_v16 = vpop.f32.mrb[37].mxu0  ;;  %v8243_v39 = vmul.f32 %v14043_v31, %v7655_v13  ;;  %v8360_v52 = vsel %vm8292_vm8, %v8242_v7, 0.0  ;;  %v14361_v13 = vld [vmem:[#allocation34_spill] sm:$0xff] }
 0x37c   :  { %v8356_v5 = vsel %vm8292_vm8, %v8240_v53, 0.0  ;;  %v8241_v19 = vmul.f32 %v14008_v11, %v7653_v1  ;;  %v10297_v10 = vadd.f32 %v7254_v16, %v14357_v58  ;;  %v10205_v57 = vpop.f32.mrb[38].mxu0  ;;  %v7986_v11 = vpop.permute.xlu0 %7985 }
 0x37d   :  { %v8357_v3 = vadd.f32 %v8356_v5, %v8355_v55  ;;  %v7574_v24 = vadd.f32 %v10296_v15, %v13902_v26  ;;  %v10298_v59 = vadd.f32 %v10205_v57, %v14358_v40  ;;  %v7257_v46 = vpop.f32.mrb[39].mxu0  ;;  %v8362_v37 = vsel %vm8292_vm8, %v8243_v39, 0.0  ;;  %v14362_v15 = vld [vmem:[#allocation36_spill] sm:$0xff] }
 0x37e   :  { %v8358_v4 = vsel %vm8292_vm8, %v8241_v19, 0.0  ;;  %v7572_v28 = vadd.f32 %v10297_v10, %v13902_v26  ;;  %v10299_v60 = vadd.f32 %v7257_v46, %v14359_v17  ;;  %v14364_v17 = vld [vmem:[#allocation5_spill] sm:$0xff] }
 0x37f   :  { %v8359_v0 = vadd.f32 %v8358_v4, %v8357_v3  ;;  %v7575_v49 = vadd.f32 %v10298_v59, %v13902_v26  ;;  %v7658_v43 = vmax.f32 %v7574_v24, 0.0  ;;  %v14125_v4 = vpop.permute.xlu1 %8135 }
 0x380   :  { %v9868_v30 = vpop.f32.mrb[44].mxu1  ;;  %v7656_v8 = vmax.f32 %v7572_v28, 0.0  ;;  %v7573_v25 = vadd.f32 %v10299_v60, %v13902_v26  ;;  %v7991_v55 = vpop.permute.xlu0 %7990 }
 0x381   :  { %v3996_v51 = vpop.f32.mrb[45].mxu1  ;;  %v8361_v48 = vadd.f32 %v8360_v52, %v8359_v0  ;;  %v7659_v20 = vmax.f32 %v7575_v49, 0.0  ;;  %v8246_v33 = vmul.f32 %v7981_v62, %v7658_v43  ;;  %v14363_v62 = vld [vmem:[#allocation37_spill] sm:$0xff] }
 0x382   :  { %v9869_v31 = vpop.f32.mrb[46].mxu1  ;;  %v8244_v47 = vmul.f32 %v14057_v44, %v7656_v8  ;;  %v7657_v29 = vmax.f32 %v7573_v25, 0.0  ;;  %v10208_v50 = vpop.f32.mrb[40].mxu0 }
 0x383   :  { %v3999_v35 = vpop.f32.mrb[47].mxu1  ;;  %v8363_v9 = vadd.f32 %v8362_v37, %v8361_v48  ;;  %v10300_v27 = vadd.f32 %v10208_v50, %v14360_v36  ;;  %v7270_v14 = vpop.f32.mrb[41].mxu0  ;;  %v8247_v5 = vmul.f32 %v7986_v11, %v7659_v20  ;;  %v8368_v40 = vsel %vm8292_vm8, %v8246_v33, 0.0 }
 0x384   :  { %v8364_v54 = vsel %vm8292_vm8, %v8244_v47, 0.0  ;;  %v8245_v53 = vmul.f32 %v14072_v22, %v7657_v29  ;;  %v10301_v1 = vadd.f32 %v7270_v14, %v14361_v13  ;;  %v10209_v45 = vpop.f32.mrb[42].mxu0  ;;  %v7996_v48 = vpop.permute.xlu0 %7995  ;;  %v14365_v47 = vld [vmem:[#allocation6_spill] sm:$0xff] }
 0x385   :  { %v8365_v44 = vadd.f32 %v8364_v54, %v8363_v9  ;;  %v7578_v34 = vadd.f32 %v10300_v27, %v13902_v26  ;;  %v10302_v16 = vadd.f32 %v10209_v45, %v14362_v15  ;;  %v7273_v7 = vpop.f32.mrb[43].mxu0  ;;  %v8370_v49 = vsel %vm8292_vm8, %v8247_v5, 0.0  ;;  %v14136_v15 = vpop.permute.xlu1 %8140 }
 0x386   :  { %v8366_v19 = vsel %vm8292_vm8, %v8245_v53, 0.0  ;;  %v7576_v58 = vadd.f32 %v10301_v1, %v13902_v26  ;;  %v10303_v10 = vadd.f32 %v7273_v7, %v14363_v62 }
 0x387   :  { %v8367_v57 = vadd.f32 %v8366_v19, %v8365_v44  ;;  %v7662_v3 = vmax.f32 %v7578_v34, 0.0  ;;  %v7579_v22 = vadd.f32 %v10302_v16, %v13902_v26 }
 0x388   :  { %v9872_v24 = vpop.f32.mrb[48].mxu1  ;;  %v7660_v59 = vmax.f32 %v7576_v58, 0.0  ;;  %v7577_v46 = vadd.f32 %v10303_v10, %v13902_v26 }
 0x389   :  { %v4012_v39 = vpop.f32.mrb[49].mxu1  ;;  %v8369_v28 = vadd.f32 %v8368_v40, %v8367_v57  ;;  %v8250_v60 = vmul.f32 %v14364_v17, %v7662_v3  ;;  %v7663_v11 = vmax.f32 %v7579_v22, 0.0  ;;  %v14366_v57 = vld [vmem:[#allocation7_spill] sm:$0xff] }
 0x38a   :  { %v9873_v0 = vpop.f32.mrb[50].mxu1  ;;  %v8248_v52 = vmul.f32 %v7991_v55, %v7660_v59  ;;  %v7661_v43 = vmax.f32 %v7577_v46, 0.0  ;;  %v10212_v8 = vpop.f32.mrb[44].mxu0 }
 0x38b   :  { %v4015_v25 = vpop.f32.mrb[51].mxu1  ;;  %v8371_v37 = vadd.f32 %v8370_v49, %v8369_v28  ;;  %v8251_v20 = vmul.f32 %v14365_v47, %v7663_v11  ;;  %v10304_v29 = vadd.f32 %v10212_v8, %v9868_v30  ;;  %v7286_v50 = vpop.f32.mrb[45].mxu0  ;;  %v8382_v9 = vsel %vm8292_vm8, %v8250_v60, 0.0  ;;  %v14367_v28 = vld [vmem:[#allocation9_spill] sm:$0xff]  ;;  %v14368_v11 = vld [vmem:[#allocation8_spill] sm:$0xff] }
 0x38c   :  { %v8372_v36 = vsel %vm8292_vm8, %v8248_v52, 0.0  ;;  %v8249_v27 = vmul.f32 %v7996_v48, %v7661_v43  ;;  %v10305_v14 = vadd.f32 %v7286_v50, %v3996_v51  ;;  %v10213_v33 = vpop.f32.mrb[46].mxu0  ;;  %v14146_v8 = vpop.permute.xlu1 %8145 }
 0x38d   :  { %v8373_v54 = vadd.f32 %v8372_v36, %v8371_v37  ;;  %v8383_v53 = vsel %vm8292_vm8, %v8251_v20, 0.0  ;;  %v7582_v13 = vadd.f32 %v10304_v29, %v13902_v26  ;;  %v10306_v1 = vadd.f32 %v10213_v33, %v9869_v31  ;;  %v7289_v45 = vpop.f32.mrb[47].mxu0  ;;  %v14369_v37 = vld [vmem:[#allocation10_spill] sm:$0xff] }
 0x38e   :  { %v8384_v55 = vadd.f32 %v8383_v53, %v8382_v9  ;;  %v8374_v44 = vsel %vm8292_vm8, %v8249_v27, 0.0  ;;  %v7580_v30 = vadd.f32 %v10305_v14, %v13902_v26  ;;  %v10307_v34 = vadd.f32 %v7289_v45, %v3999_v35 }
 0x38f   :  { %v14138_v16 = vadd.f32 %v8374_v44, %v8373_v54  ;;  %v7583_v51 = vadd.f32 %v10306_v1, %v13902_v26  ;;  %v7666_v5 = vmax.f32 %v7582_v13, 0.0 }
 0x390   :  { %v9876_v7 = vpop.f32.mrb[52].mxu1  ;;  %v7664_v19 = vmax.f32 %v7580_v30, 0.0  ;;  %v7581_v58 = vadd.f32 %v10307_v34, %v13902_v26 }
 0x391   :  { %v4028_v62 = vpop.f32.mrb[53].mxu1  ;;  %v7667_v31 = vmax.f32 %v7583_v51, 0.0  ;;  %v8254_v17 = vmul.f32 %v14367_v28, %v7666_v5  ;;  %v14371_v51 = vld [vmem:[#allocation14_spill] sm:$0xff]  ;;  %v14373_v28 = vld [vmem:[#allocation17_spill] sm:$0xff] }
 0x392   :  { %v9877_v10 = vpop.f32.mrb[54].mxu1  ;;  %v8252_v3 = vmul.f32 %v14366_v57, %v7664_v19  ;;  %v7665_v22 = vmax.f32 %v7581_v58, 0.0  ;;  %v10216_v40 = vpop.f32.mrb[48].mxu0 }
 0x393   :  { %v4031_v59 = vpop.f32.mrb[55].mxu1  ;;  %v10308_v35 = vadd.f32 %v10216_v40, %v9872_v24  ;;  %v7302_v46 = vpop.f32.mrb[49].mxu0  ;;  %v8255_v47 = vmul.f32 %v14369_v37, %v7667_v31 }
 0x394   :  { %v8385_v60 = vsel %vm8292_vm8, %v8252_v3, 0.0  ;;  %v8253_v49 = vmul.f32 %v14368_v11, %v7665_v22  ;;  %v10309_v52 = vadd.f32 %v7302_v46, %v4012_v39  ;;  %v10217_v43 = vpop.f32.mrb[50].mxu0  ;;  %v8389_v39 = vsel %vm8292_vm8, %v8254_v17, 0.0  ;;  %v14158_v31 = vpop.permute.xlu1 %8150 }
 0x395   :  { %v8386_v48 = vadd.f32 %v8385_v60, %v8384_v55  ;;  %v7586_v20 = vadd.f32 %v10308_v35, %v13902_v26  ;;  %v7305_v29 = vpop.f32.mrb[51].mxu0  ;;  %v10310_v9 = vadd.f32 %v10217_v43, %v9873_v0  ;;  %v14370_v55 = vld [vmem:[#allocation20_spill] sm:$0xff]  ;;  %v8391_v34 = vsel %vm8292_vm8, %v8255_v47, 0.0  ;;  %v14372_v35 = vld [vmem:[#allocation25_spill] sm:$0xff] }
 0x396   :  { %v8387_v50 = vsel %vm8292_vm8, %v8253_v49, 0.0  ;;  %v7584_v24 = vadd.f32 %v10309_v52, %v13902_v26  ;;  %v10311_v36 = vadd.f32 %v7305_v29, %v4015_v25 }
 0x397   :  { %v8388_v27 = vadd.f32 %v8387_v50, %v8386_v48  ;;  %v7670_v14 = vmax.f32 %v7586_v20, 0.0  ;;  %v7587_v53 = vadd.f32 %v10310_v9, %v13902_v26 }
 0x398   :  { %v9880_v33 = vpop.f32.mrb[56].mxu1  ;;  %v7668_v54 = vmax.f32 %v7584_v24, 0.0  ;;  %v7585_v13 = vadd.f32 %v10311_v36, %v13902_v26 }
 0x399   :  { %v4044_v1 = vpop.f32.mrb[57].mxu1  ;;  %v8390_v45 = vadd.f32 %v8389_v39, %v8388_v27  ;;  %v8258_v44 = vmul.f32 %v14370_v55, %v7670_v14  ;;  %v7671_v25 = vmax.f32 %v7587_v53, 0.0  ;;  %v14169_v14 = vpop.permute.xlu1 %8155  ;;  %v14374_v53 = vld [vmem:[#allocation31_spill] sm:$0xff] }
 0x39a   :  { %v9881_v30 = vpop.f32.mrb[58].mxu1  ;;  %v8256_v0 = vmul.f32 %v14371_v51, %v7668_v54  ;;  %v7669_v5 = vmax.f32 %v7585_v13, 0.0  ;;  %v10220_v19 = vpop.f32.mrb[52].mxu0 }
 0x39b   :  { %v4047_v58 = vpop.f32.mrb[59].mxu1  ;;  %v8392_v57 = vadd.f32 %v8391_v34, %v8390_v45  ;;  %v10312_v3 = vadd.f32 %v10220_v19, %v9876_v7  ;;  %v7318_v22 = vpop.f32.mrb[53].mxu0  ;;  %v8259_v46 = vmul.f32 %v14372_v35, %v7671_v25  ;;  %v8397_v24 = vsel %vm8292_vm8, %v8258_v44, 0.0  ;;  %v14375_v25 = vld [vmem:[#allocation39_spill] sm:$0xff] }
 0x39c   :  { %v8393_v40 = vsel %vm8292_vm8, %v8256_v0, 0.0  ;;  %v8257_v17 = vmul.f32 %v14373_v28, %v7669_v5  ;;  %v10313_v60 = vadd.f32 %v7318_v22, %v4028_v62  ;;  %v10221_v11 = vpop.f32.mrb[54].mxu0 }
 0x39d   :  { %v8394_v49 = vadd.f32 %v8393_v40, %v8392_v57  ;;  %v7590_v52 = vadd.f32 %v10312_v3, %v13902_v26  ;;  %v10314_v43 = vadd.f32 %v10221_v11, %v9877_v10  ;;  %v7321_v48 = vpop.f32.mrb[55].mxu0  ;;  %v8399_v54 = vsel %vm8292_vm8, %v8259_v46, 0.0  ;;  %v14376_v57 = vld [vmem:[#allocation35_spill] sm:$0xff] }
 0x39e   :  { %v8395_v37 = vsel %vm8292_vm8, %v8257_v17, 0.0  ;;  %v7588_v47 = vadd.f32 %v10313_v60, %v13902_v26  ;;  %v10315_v20 = vadd.f32 %v7321_v48, %v4031_v59  ;;  %v14377_v60 = vld [vmem:[#allocation41_spill] sm:$0xff] }
 0x39f   :  { %v8396_v7 = vadd.f32 %v8395_v37, %v8394_v49  ;;  %v7591_v29 = vadd.f32 %v10314_v43, %v13902_v26  ;;  %v7674_v9 = vmax.f32 %v7590_v52, 0.0  ;;  %v14180_v43 = vpop.permute.xlu1 %8160 }
 0x3a0   :  { %v9884_v50 = vpop.f32.mrb[60].mxu1  ;;  %v7672_v36 = vmax.f32 %v7588_v47, 0.0  ;;  %v7589_v62 = vadd.f32 %v10315_v20, %v13902_v26 }
 0x3a1   :  { %v4060_v27 = vpop.f32.mrb[61].mxu1  ;;  %v8398_v10 = vadd.f32 %v8397_v24, %v8396_v7  ;;  %v7675_v59 = vmax.f32 %v7591_v29, 0.0  ;;  %v8262_v5 = vmul.f32 %v14375_v25, %v7674_v9 }
 0x3a2   :  { %v9885_v39 = vpop.f32.mrb[62].mxu1  ;;  %v8260_v13 = vmul.f32 %v14374_v53, %v7672_v36  ;;  %v7673_v45 = vmax.f32 %v7589_v62, 0.0  ;;  %v10224_v55 = vpop.f32.mrb[56].mxu0 }
 0x3a3   :  { %v4063_v34 = vpop.f32.mrb[63].mxu1  ;;  %v8400_v51 = vadd.f32 %v8399_v54, %v8398_v10  ;;  %v10316_v0 = vadd.f32 %v10224_v55, %v9880_v33  ;;  %v7334_v44 = vpop.f32.mrb[57].mxu0  ;;  %v8263_v11 = vmul.f32 %v14377_v60, %v7675_v59 }
 0x3a4   :  { %v8401_v19 = vsel %vm8292_vm8, %v8260_v13, 0.0  ;;  %v8261_v3 = vmul.f32 %v14376_v57, %v7673_v45  ;;  %v10317_v22 = vadd.f32 %v7334_v44, %v4044_v1  ;;  %v10225_v40 = vpop.f32.mrb[58].mxu0  ;;  %v8405_v1 = vsel %vm8292_vm8, %v8262_v5, 0.0  ;;  %v14190_v5 = vpop.permute.xlu1 %8165 }
 0x3a5   :  { %v8402_v35 = vadd.f32 %v8401_v19, %v8400_v51  ;;  %v7594_v46 = vadd.f32 %v10316_v0, %v13902_v26  ;;  %v10318_v28 = vadd.f32 %v10225_v40, %v9881_v30  ;;  %v7337_v17 = vpop.f32.mrb[59].mxu0  ;;  %v8407_v36 = vsel %vm8292_vm8, %v8263_v11, 0.0 }
 0x3a6   :  { %v8403_v49 = vsel %vm8292_vm8, %v8261_v3, 0.0  ;;  %v7592_v33 = vadd.f32 %v10317_v22, %v13902_v26  ;;  %v10319_v52 = vadd.f32 %v7337_v17, %v4047_v58 }
 0x3a7   :  { %v8404_v48 = vadd.f32 %v8403_v49, %v8402_v35  ;;  %v7595_v37 = vadd.f32 %v10318_v28, %v13902_v26  ;;  %v7678_v20 = vmax.f32 %v7594_v46, 0.0 }
 0x3a8   :  { %v9888_v47 = vpop.f32.mrb[64].mxu1  ;;  %v7676_v7 = vmax.f32 %v7592_v33, 0.0  ;;  %v7593_v30 = vadd.f32 %v10319_v52, %v13902_v26 }
 0x3a9   :  { %v4076_v29 = vpop.f32.mrb[65].mxu1  ;;  %v8406_v24 = vadd.f32 %v8405_v1, %v8404_v48  ;;  %v7679_v58 = vmax.f32 %v7595_v37, 0.0  ;;  %v8266_v55 = vmul.f32 %v13954_v32, %v7678_v20  ;;  %v14201_v1 = vpop.permute.xlu1 %8170 }
 0x3aa   :  { %v9889_v9 = vpop.f32.mrb[66].mxu1  ;;  %v8264_v62 = vmul.f32 %v13919_v42, %v7676_v7  ;;  %v7677_v10 = vmax.f32 %v7593_v30, 0.0  ;;  %v10228_v54 = vpop.f32.mrb[60].mxu0 }
 0x3ab   :  { %v4079_v53 = vpop.f32.mrb[67].mxu1  ;;  %v8408_v13 = vadd.f32 %v8407_v36, %v8406_v24  ;;  %v10320_v59 = vadd.f32 %v10228_v54, %v9884_v50  ;;  %v7350_v45 = vpop.f32.mrb[61].mxu0  ;;  %v8267_v22 = vmul.f32 %v13968_v18, %v7679_v58 }
 0x3ac   :  { %v8409_v51 = vsel %vm8292_vm8, %v8264_v62, 0.0  ;;  %v8265_v0 = vmul.f32 %v13937_v23, %v7677_v10  ;;  %v10321_v44 = vadd.f32 %v7350_v45, %v4060_v27  ;;  %v10229_v25 = vpop.f32.mrb[62].mxu0  ;;  %v8413_v27 = vsel %vm8292_vm8, %v8266_v55, 0.0 }
 0x3ad   :  { %v8410_v19 = vadd.f32 %v8409_v51, %v8408_v13  ;;  %v7598_v42 = vadd.f32 %v10320_v59, %v13902_v26  ;;  %v10322_v57 = vadd.f32 %v10229_v25, %v9885_v39  ;;  %v7353_v3 = vpop.f32.mrb[63].mxu0  ;;  %v8415_v18 = vsel %vm8292_vm8, %v8267_v22, 0.0 }
 0x3ae   :  { %v8411_v50 = vsel %vm8292_vm8, %v8265_v0, 0.0  ;;  %v7596_v40 = vadd.f32 %v10321_v44, %v13902_v26  ;;  %v10323_v32 = vadd.f32 %v7353_v3, %v4063_v34 }
 0x3af   :  { %v8412_v35 = vadd.f32 %v8411_v50, %v8410_v19  ;;  %v7599_v46 = vadd.f32 %v10322_v57, %v13902_v26  ;;  %v7682_v28 = vmax.f32 %v7598_v42, 0.0 }
 0x3b0   :  { %v9892_v23 = vpop.f32.mrb[68].mxu1  ;;  %v7680_v17 = vmax.f32 %v7596_v40, 0.0  ;;  %v7597_v60 = vadd.f32 %v10323_v32, %v13902_v26 }
 0x3b1   :  { %v4092_v11 = vpop.f32.mrb[69].mxu1  ;;  %v8414_v39 = vadd.f32 %v8413_v27, %v8412_v35  ;;  %v7683_v52 = vmax.f32 %v7599_v46, 0.0  ;;  %v8270_v24 = vmul.f32 %v14021_v41, %v7682_v28 }
 0x3b2   :  { %v9893_v49 = vpop.f32.mrb[70].mxu1  ;;  %v8268_v33 = vmul.f32 %v13983_v61, %v7680_v17  ;;  %v7681_v48 = vmax.f32 %v7597_v60, 0.0  ;;  %v10232_v34 = vpop.f32.mrb[64].mxu0  ;;  %v14209_v61 = vld [vmem:[%s14297_s2] ss:$0 sm:$0xff] }
 0x3b3   :  { %v4095_v37 = vpop.f32.mrb[71].mxu1  ;;  %v8416_v20 = vadd.f32 %v8415_v18, %v8414_v39  ;;  %v10324_v7 = vadd.f32 %v10232_v34, %v9888_v47  ;;  %v7366_v30 = vpop.f32.mrb[65].mxu0  ;;  %v8271_v47 = vmul.f32 %v14035_v21, %v7683_v52  ;;  %v8421_v0 = vsel %vm8292_vm8, %v8270_v24, 0.0 }
 0x3b4   :  { %v8417_v26 = vsel %vm8292_vm8, %v8268_v33, 0.0  ;;  %v8269_v36 = vmul.f32 %v14001_v6, %v7681_v48  ;;  %v10325_v62 = vadd.f32 %v7366_v30, %v4076_v29  ;;  %v10233_v58 = vpop.f32.mrb[66].mxu0 }
 0x3b5   :  { %v8418_v10 = vadd.f32 %v8417_v26, %v8416_v20  ;;  %v7602_v54 = vadd.f32 %v14209_v61, %v10324_v7  ;;  %v10326_v13 = vadd.f32 %v10233_v58, %v9889_v9  ;;  %v7369_v59 = vpop.f32.mrb[67].mxu0  ;;  %v14218_v9 = vpop.permute.xlu1 %8175  ;;  %v8423_v3 = vsel %vm8292_vm8, %v8271_v47, 0.0 }
 0x3b6   :  { %v8419_v41 = vsel %vm8292_vm8, %v8269_v36, 0.0  ;;  %v7600_v45 = vadd.f32 %v14209_v61, %v10325_v62  ;;  %v10327_v55 = vadd.f32 %v7369_v59, %v4079_v53 }
 0x3b7   :  { %v8420_v6 = vadd.f32 %v8419_v41, %v8418_v10  ;;  %v7603_v29 = vadd.f32 %v14209_v61, %v10326_v13  ;;  %v7686_v44 = vmax.f32 %v7602_v54, 0.0 }
 0x3b8   :  { %v9896_v51 = vpop.f32.mrb[72].mxu1  ;;  %v7684_v25 = vmax.f32 %v7600_v45, 0.0  ;;  %v7601_v19 = vadd.f32 %v14209_v61, %v10327_v55 }
 0x3b9   :  { %v4108_v42 = vpop.f32.mrb[73].mxu1  ;;  %v8422_v57 = vadd.f32 %v8421_v0, %v8420_v6  ;;  %v7687_v53 = vmax.f32 %v7603_v29, 0.0  ;;  %v8274_v28 = vmul.f32 %v14086_v38, %v7686_v44  ;;  %v14229_v30 = vpop.permute.xlu1 %8180 }
 0x3ba   :  { %v9897_v21 = vpop.f32.mrb[74].mxu1  ;;  %v8272_v22 = vmul.f32 %v14050_v63, %v7684_v25  ;;  %v7685_v50 = vmax.f32 %v7601_v19, 0.0  ;;  %v10236_v40 = vpop.f32.mrb[68].mxu0 }
 0x3bb   :  { %v4111_v32 = vpop.f32.mrb[75].mxu1  ;;  %v8424_v35 = vadd.f32 %v8423_v3, %v8422_v57  ;;  %v10328_v46 = vadd.f32 %v10236_v40, %v9892_v23  ;;  %v7382_v27 = vpop.f32.mrb[69].mxu0  ;;  %v8275_v34 = vmul.f32 %v14098_v56, %v7687_v53 }
 0x3bc   :  { %v8425_v17 = vsel %vm8292_vm8, %v8272_v22, 0.0  ;;  %v8273_v60 = vmul.f32 %v14068_v12, %v7685_v50  ;;  %v10329_v39 = vadd.f32 %v7382_v27, %v4092_v11  ;;  %v10237_v18 = vpop.f32.mrb[70].mxu0  ;;  %v8429_v11 = vsel %vm8292_vm8, %v8274_v28, 0.0 }
 0x3bd   :  { %v8426_v33 = vadd.f32 %v8425_v17, %v8424_v35  ;;  %v7606_v52 = vadd.f32 %v14209_v61, %v10328_v46  ;;  %v10330_v48 = vadd.f32 %v10237_v18, %v9893_v49  ;;  %v7385_v63 = vpop.f32.mrb[71].mxu0  ;;  %v8431_v10 = vsel %vm8292_vm8, %v8275_v34, 0.0  ;;  %v14239_v19 = vpop.permute.xlu1 %8185 }
 0x3be   :  { %v8427_v20 = vsel %vm8292_vm8, %v8273_v60, 0.0  ;;  %v7604_v23 = vadd.f32 %v14209_v61, %v10329_v39  ;;  %v10331_v7 = vadd.f32 %v7385_v63, %v4095_v37 }
 0x3bf   :  { %v8428_v38 = vadd.f32 %v8427_v20, %v8426_v33  ;;  %v7607_v24 = vadd.f32 %v14209_v61, %v10330_v48  ;;  %v7690_v26 = vmax.f32 %v7606_v52, 0.0 }
 0x3c0   :  { %v9900_v12 = vpop.f32.mrb[76].mxu1  ;;  %v7688_v36 = vmax.f32 %v7604_v23, 0.0  ;;  %v7605_v49 = vadd.f32 %v14209_v61, %v10331_v7 }
 0x3c1   :  { %v4124_v62 = vpop.f32.mrb[77].mxu1  ;;  %v8430_v58 = vadd.f32 %v8429_v11, %v8428_v38  ;;  %v7691_v37 = vmax.f32 %v7607_v24, 0.0  ;;  %v8278_v6 = vmul.f32 %v14136_v15, %v7690_v26  ;;  %v8191_v48 = vpop.permute.xlu1 %8190 }
 0x3c2   :  { %v9901_v56 = vpop.f32.mrb[78].mxu1  ;;  %v8276_v54 = vmul.f32 %v14111_v2, %v7688_v36  ;;  %v7689_v13 = vmax.f32 %v7605_v49, 0.0  ;;  %v10240_v59 = vpop.f32.mrb[72].mxu0 }
 0x3c3   :  { %v4127_v47 = vpop.f32.mrb[79].mxu1  ;;  %v8432_v41 = vadd.f32 %v8431_v10, %v8430_v58  ;;  %v10332_v45 = vadd.f32 %v10240_v59, %v9896_v51  ;;  %v7398_v55 = vpop.f32.mrb[73].mxu0  ;;  %v8279_v53 = vmul.f32 %v14146_v8, %v7691_v37 }
 0x3c4   :  { %v8433_v29 = vsel %vm8292_vm8, %v8276_v54, 0.0  ;;  %v8277_v0 = vmul.f32 %v14125_v4, %v7689_v13  ;;  %v10333_v44 = vadd.f32 %v7398_v55, %v4108_v42  ;;  %v10241_v25 = vpop.f32.mrb[74].mxu0  ;;  %v8437_v42 = vsel %vm8292_vm8, %v8278_v6, 0.0 }
 0x3c5   :  { %v8434_v57 = vadd.f32 %v8433_v29, %v8432_v41  ;;  %v7610_v2 = vadd.f32 %v14209_v61, %v10332_v45  ;;  %v10334_v3 = vadd.f32 %v10241_v25, %v9897_v21  ;;  %v7401_v22 = vpop.f32.mrb[75].mxu0  ;;  %v8439_v8 = vsel %vm8292_vm8, %v8279_v53, 0.0  ;;  %v8196_v41 = vpop.permute.xlu1 %8195 }
 0x3c6   :  { %v8435_v51 = vsel %vm8292_vm8, %v8277_v0, 0.0  ;;  %v7608_v50 = vadd.f32 %v14209_v61, %v10333_v44  ;;  %v10335_v15 = vadd.f32 %v7401_v22, %v4111_v32 }
 0x3c7   :  { %v8436_v40 = vadd.f32 %v8435_v51, %v8434_v57  ;;  %v7611_v35 = vadd.f32 %v14209_v61, %v10334_v3  ;;  %v7694_v46 = vmax.f32 %v7610_v2, 0.0 }
 0x3c8   :  { %v9904_v4 = vpop.f32.mrb[80].mxu1  ;;  %v7692_v27 = vmax.f32 %v7608_v50, 0.0  ;;  %v7609_v28 = vadd.f32 %v14209_v61, %v10335_v15 }
 0x3c9   :  { %v4140_v17 = vpop.f32.mrb[81].mxu1  ;;  %v8438_v21 = vadd.f32 %v8437_v42, %v8436_v40  ;;  %v7695_v18 = vmax.f32 %v7611_v35, 0.0  ;;  %v8282_v23 = vmul.f32 %v14180_v43, %v7694_v46  ;;  %v8201_v42 = vpop.permute.xlu1 %8200 }
 0x3ca   :  { %v9905_v60 = vpop.f32.mrb[82].mxu1  ;;  %v8280_v39 = vmul.f32 %v14158_v31, %v7692_v27  ;;  %v7693_v33 = vmax.f32 %v7609_v28, 0.0  ;;  %v10244_v32 = vpop.f32.mrb[76].mxu0 }
 0x3cb   :  { %v4143_v52 = vpop.f32.mrb[83].mxu1  ;;  %v8440_v63 = vadd.f32 %v8439_v8, %v8438_v21  ;;  %v10336_v34 = vadd.f32 %v10244_v32, %v9900_v12  ;;  %v7414_v20 = vpop.f32.mrb[77].mxu0  ;;  %v8283_v58 = vmul.f32 %v14190_v5, %v7695_v18  ;;  %v8445_v13 = vsel %vm8292_vm8, %v8282_v23, 0.0 }
 0x3cc   :  { %v8441_v7 = vsel %vm8292_vm8, %v8280_v39, 0.0  ;;  %v8281_v38 = vmul.f32 %v14169_v14, %v7693_v33  ;;  %v10337_v24 = vadd.f32 %v7414_v20, %v4124_v62  ;;  %v10245_v11 = vpop.f32.mrb[78].mxu0 }
 0x3cd   :  { %v8442_v26 = vadd.f32 %v8441_v7, %v8440_v63  ;;  %v7614_v36 = vadd.f32 %v14209_v61, %v10336_v34  ;;  %v10338_v31 = vadd.f32 %v10245_v11, %v9901_v56  ;;  %v7417_v49 = vpop.f32.mrb[79].mxu0  ;;  %v8447_v56 = vsel %vm8292_vm8, %v8283_v58, 0.0  ;;  %v8206_v20 = vpop.permute.xlu1 %8205 }
 0x3ce   :  { %v8443_v10 = vsel %vm8292_vm8, %v8281_v38, 0.0  ;;  %v7612_v12 = vadd.f32 %v14209_v61, %v10337_v24  ;;  %v10339_v54 = vadd.f32 %v7417_v49, %v4127_v47 }
 0x3cf   :  { %v8444_v37 = vadd.f32 %v8443_v10, %v8442_v26  ;;  %v7615_v43 = vadd.f32 %v14209_v61, %v10338_v31  ;;  %v7698_v14 = vmax.f32 %v7614_v36, 0.0 }
 0x3d0   :  { %v7696_v62 = vmax.f32 %v7612_v12, 0.0  ;;  %v7613_v59 = vadd.f32 %v14209_v61, %v10339_v54 }
 0x3d1   :  { %v8446_v45 = vadd.f32 %v8445_v13, %v8444_v37  ;;  %v7699_v55 = vmax.f32 %v7615_v43, 0.0  ;;  %v8286_v25 = vmul.f32 %v14229_v30, %v7698_v14  ;;  %v8376_v30 = vrot.slane %v14138_v16, 4 }
 0x3d2   :  { %v8284_v5 = vmul.f32 %v14201_v1, %v7696_v62  ;;  %v7697_v6 = vmax.f32 %v7613_v59, 0.0  ;;  %v10248_v29 = vpop.f32.mrb[80].mxu0 }
 0x3d3   :  { %v8448_v0 = vadd.f32 %v8447_v56, %v8446_v45  ;;  %v10340_v47 = vadd.f32 %v10248_v29, %v9904_v4  ;;  %v7430_v44 = vpop.f32.mrb[81].mxu0  ;;  %v8287_v1 = vmul.f32 %v14239_v19, %v7699_v55  ;;  %v8453_v27 = vsel %vm8292_vm8, %v8286_v25, 0.0  ;;  %v9082_v56 = vld [vmem:[%s14300_s5] ss:$0 sm:$0xff] }
 0x3d4   :  { %v8449_v57 = vsel %vm8292_vm8, %v8284_v5, 0.0  ;;  %v8285_v2 = vmul.f32 %v14218_v9, %v7697_v6  ;;  %v10341_v3 = vadd.f32 %v7430_v44, %v4140_v17  ;;  %v10249_v22 = vpop.f32.mrb[82].mxu0  ;;  %v8377_v33 = vadd.f32 %v8376_v30, %v14138_v16 }
 0x3d5   :  { %v8450_v53 = vadd.f32 %v8449_v57, %v8448_v0  ;;  %v7618_v51 = vadd.f32 %v14209_v61, %v10340_v47  ;;  %v10342_v50 = vadd.f32 %v10249_v22, %v9905_v60  ;;  %v7433_v15 = vpop.f32.mrb[83].mxu0  ;;  %v8455_v19 = vsel %vm8292_vm8, %v8287_v1, 0.0 }
 0x3d6   :  { %v8451_v40 = vsel %vm8292_vm8, %v8285_v2, 0.0  ;;  %v7616_v35 = vadd.f32 %v14209_v61, %v10341_v3  ;;  %v10343_v4 = vadd.f32 %v7433_v15, %v4143_v52  ;;  %v8378_v24 = vrot.slane %v8377_v33, 2 }
 0x3d7   :  { %v8452_v46 = vadd.f32 %v8451_v40, %v8450_v53  ;;  %v7619_v9 = vadd.f32 %v14209_v61, %v10342_v50  ;;  %v7702_v28 = vmax.f32 %v7618_v51, 0.0 }
 0x3d8   :  { %v7700_v17 = vmax.f32 %v7616_v35, 0.0  ;;  %v7617_v21 = vadd.f32 %v14209_v61, %v10343_v4  ;;  %v8379_v36 = vadd.f32 %v8378_v24, %v8377_v33 }
 0x3d9   :  { %v8454_v60 = vadd.f32 %v8453_v27, %v8452_v46  ;;  %v7703_v39 = vmax.f32 %v7619_v9, 0.0  ;;  %v8290_v52 = vmul.f32 %v8201_v42, %v7702_v28 }
 0x3da   :  { %v8288_v8 = vmul.f32 %v8191_v48, %v7700_v17  ;;  %v7701_v18 = vmax.f32 %v7617_v21, 0.0  ;;  %v8380_v49 = vrot.slane %v8379_v36, 1 }
 0x3db   :  { %v8456_v32 = vadd.f32 %v8455_v19, %v8454_v60  ;;  %v8291_v7 = vmul.f32 %v8206_v20, %v7703_v39  ;;  %v8461_v11 = vsel %vm8292_vm8, %v8290_v52, 0.0 }
 0x3dc   :  { %v8457_v63 = vsel %vm8292_vm8, %v8288_v8, 0.0  ;;  %v8289_v34 = vmul.f32 %v8196_v41, %v7701_v18  ;;  %v8381_v12 = vadd.f32 %v8380_v49, %v8379_v36 }
 0x3dd   :  { %v8458_v23 = vadd.f32 %v8457_v63, %v8456_v32  ;;  %v8463_v48 = vsel %vm8292_vm8, %v8291_v7, 0.0 }
 0x3de   :  { %v8459_v38 = vsel %vm8292_vm8, %v8289_v34, 0.0  ;;  %v8471_v43 = vpack.c.bf16 %v8381_v12, %v8381_v12 }
 0x3df   :  { %v8460_v61 = vadd.f32 %v8459_v38, %v8458_v23 }
 0x3e0   :  { %v8486_v62 = vunpack.c.l.b16 %v8471_v43 }
 0x3e1   :  { %v8462_v26 = vadd.f32 %v8461_v11, %v8460_v61 }
 0x3e3   :  { %v8464_v31 = vadd.f32 %v8463_v48, %v8462_v26 }
 0x3e5   :  { %v8465_v16 = vrot.slane %v8464_v31, 4 }
 0x3e7   :  { %v8466_v58 = vadd.f32 %v8465_v16, %v8464_v31 }
 0x3e9   :  { %v8467_v10 = vrot.slane %v8466_v58, 2 }
 0x3eb   :  { %v8468_v54 = vadd.f32 %v8467_v10, %v8466_v58 }
 0x3ed   :  { %v8469_v37 = vrot.slane %v8468_v54, 1 }
 0x3ef   :  { %v8470_v13 = vadd.f32 %v8469_v37, %v8468_v54 }
 0x3f1   :  { %v8472_v14 = vpack.c.bf16 %v8470_v13, %v8470_v13 }
 0x3f3   :  { %v8487_v59 = vunpack.c.l.b16 %v8472_v14 }
 0x3f5   :  { %v8489_v41 = vsel %vm8488_vm10, %v8487_v59, %v8486_v62 }
 0x3f6   :  { %v8490_v45 = vpack.c.b16 %v8489_v41, %v8489_v41 }
 0x3f8   :  { %10255 = vmatmul.mubr.msk.bf16.vlgmr.msra.gmra.mrb[84].mxu1 %vm8292_vm8, %v8490_v45 }
 0x4cb   :  { %v8540_v5 = vpop.f32.mrb[84].mxu1 }
 0x4cc   :  { %v8541_v55 = vadd.f32 %v9082_v56, %v8540_v5  ;;  %v10256_v6 = vpop.f32.mrb[85].mxu1 }
 0x4cd   :  { %v8543_v29 = vpop.f32.mrb[86].mxu1 }
 0x4ce   :  { %8546 = vst [vmem:[#allocation2] sm:$0x3] %v8541_v55  ;;  %v10257_v0 = vpop.f32.mrb[87].mxu1 }
 0x4cf   :  { %11224 = shalt.err (!%p11221_p4)
}
 0x4d0   :  { %s11225_s5 = scalar_lea.hbm %s14301_s6, 32 }
 0x4d1   :  { %p11226_p5 = scmp.ne.s32.totalorder %s14301_s6, %s11225_s5  ;;  %p11229_p6 = scmp.lt.u32.totalorder %s11225_s5, %s14301_s6 }
 0x4d3   :  { %p11231_p7 = pnand %p11229_p6, %p11226_p5 }
 0x4d5   :  { %11234 = shalt.err (!%p11231_p7)
}
 0x4d6   :  { %8556 = dma.vmem_to_hbm [thread:$0]  %s8554_s27, 32, %s14301_s6, [#allocation3]  }
 0x4d7   :  { %11235 = dma.done.wait [#allocation3], 32  }
 0x4d8   :  { %11236 = vsyncadd [#allocation3], 4294967264 }
 0x4d9   :  { %8560 = vsyncpa [#allocation3], 1 }

</bundles_post_ra>
